<compile_context>
chip_gen: v6e
topology: v6e:2x2x1
jax: 0.10.0
libtpu: 0.0.40
codegen_flags: <defaults>
</compile_context>

<pallas_src>
import functools

import jax
import jax.numpy as jnp
from jax.experimental import pallas as pl
from jax.experimental.pallas import tpu as pltpu

_BN_EPS = 1e-5
_LANES = 128
_SUBLANES = 8
_LN2 = 0.6931471805599453
_SMALL_K = 16  # contraction depths <= this use the VPU MAC instead of the MXU
_SMEM = pl.BlockSpec(memory_space=pltpu.MemorySpace.SMEM)


# ---------------------------------------------------------------------------
# hardware / tiling helpers
# ---------------------------------------------------------------------------
def _vmem_capacity():
    try:
        return int(pltpu.get_tpu_info().vmem_capacity_bytes)
    except Exception:
        return 64 * 1024 * 1024  # conservative (v7x per-core VMEM)


def _row_tile(m, target=1024):
    """Largest row tile <= target that is a multiple of 8 and divides m (else m)."""
    if m <= target:
        return m
    t = (target // _SUBLANES) * _SUBLANES
    while t >= _SUBLANES:
        if m % t == 0:
            return t
        t -= _SUBLANES
    return m  # TODO(synk): pad+mask the last tile instead of one huge block


def _fold_lanes(mat):
    """View (M, C) as (M//r, 128) when 128 % C == 0, for lane-dense loads/stores."""
    m, c = mat.shape
    if c < _LANES and _LANES % c == 0:
        r = _LANES // c
        if m % r == 0:
            return mat.reshape(m // r, _LANES), r
    return mat, 1


# ---------------------------------------------------------------------------
# quantization helpers
# ---------------------------------------------------------------------------
def _quant_params(max_value, bitwidth=8):
    """XLA-side per-tensor symmetric quant params [lo, hi, inv_interval, interval]."""
    eff = bitwidth - 1
    mv = jnp.maximum(jnp.asarray(max_value, jnp.float32).reshape(()), 1e-30)
    msb = jnp.ceil(jnp.log2(mv))
    interval = jnp.exp2(msb - eff)
    inv_interval = jnp.exp2(eff - msb)
    lo = -(2.0 ** eff) * interval
    hi = (2.0 ** eff - 1.0) * interval
    return jnp.stack([lo, hi, inv_interval, interval]).astype(jnp.float32)


def _quantize_with(x, qp_ref):
    """In-kernel quantize using precomputed params read from SMEM (tiled path)."""
    xc = jnp.clip(x, qp_ref[0], qp_ref[1])
    return jnp.round(xc * qp_ref[2]) * qp_ref[3]


def _quantize_tensor(x, bitwidth=8):
    """Wrapper-side full quantize with per-tensor max - used for the (small) weights."""
    qp = _quant_params(jnp.max(jnp.abs(x)), bitwidth)
    return jnp.round(jnp.clip(x, qp[0], qp[1]) * qp[2]) * qp[3]


def _quantize_value(x, bitwidth=8):
    """Fully in-kernel quantize of a VMEM-resident value with max|x| computed here.

    interval = 2^(ceil(log2(max|x|)) - 7); computed via exp/log (EUP) - the tiny (~ulp)
    deviation from an exact power of two is snapped away again by the bf16 cast of the
    quantized operands on the MXU path.
    """
    eff = 2.0 ** (bitwidth - 1)
    mv = jnp.maximum(jnp.max(jnp.abs(x)), 1e-30)
    mv = jnp.broadcast_to(mv, (1, 1))
    msb = jnp.ceil(jnp.log(mv) * (1.0 / _LN2))
    interval = jnp.exp(_LN2 * (msb - (bitwidth - 1.0)))
    inv = jnp.exp(_LN2 * ((bitwidth - 1.0) - msb))
    lo = -eff * interval
    hi = (eff - 1.0) * interval
    return jnp.round(jnp.clip(x, lo, hi) * inv) * interval


# ---------------------------------------------------------------------------
# fused in-kernel building blocks
# ---------------------------------------------------------------------------
def _small_k_matmul(x, w):
    """1x1 conv as a VPU multiply-accumulate for tiny contraction depth K.

    x: (M, K) f32, w: (K, N) f32.  Avoids masked/underfilled MXU passes when K << MXU
    (feedback: lane under-utilization for cin/cout below ~32).
    """
    k = w.shape[0]
    acc = x[:, 0:1] * w[0:1, :]
    for c in range(1, k):
        acc = acc + x[:, c:c + 1] * w[c:c + 1, :]
    return acc


def _bn_train_2d(y, gamma, beta, relu6):
    """Training-mode BatchNorm on a (M, C) value; two-pass (well-conditioned) variance."""
    m = y.shape[0]
    mean = jnp.sum(y, axis=0, keepdims=True) * (1.0 / m)
    d = y - mean
    var = jnp.sum(d * d, axis=0, keepdims=True) * (1.0 / m)
    out = d * (gamma * jax.lax.rsqrt(var + _BN_EPS)) + beta
    if relu6:
        out = jnp.clip(out, 0.0, 6.0)
    return out


# ---------------------------------------------------------------------------
# fused path: three VMEM-resident stage kernels (one pallas_call per conv stage)
# ---------------------------------------------------------------------------
def _expand_stage_kernel(x_ref, w1_ref, g1_ref, b1_ref, a1q_ref, *, use_mxu):
    """Conv2dFix(1x1 expand) + BN(train) + ReLU6 + input-quant for the next conv."""
    x = x_ref[...]                                   # (M, Cin) f32
    xq = _quantize_value(x)                          # quantize conv input with max|x|
    w1 = w1_ref[...]                                 # (Cin, hidden) pre-quantized f32
    if use_mxu:
        y1 = jnp.dot(xq.astype(jnp.bfloat16), w1.astype(jnp.bfloat16),
                     preferred_element_type=jnp.float32)
    else:
        y1 = _small_k_matmul(xq, w1)
    y1q = _quantize_value(y1)                        # quantize conv output with max|y1|
    a1 = _bn_train_2d(y1q, g1_ref[...], b1_ref[...], relu6=True)
    a1q_ref[...] = _quantize_value(a1)               # input quant of the depthwise conv


def _dw_stage_kernel(a_ref, w2_ref, y2q_ref, pad_ref, *, stride, quant_input):
    """Depthwise 3x3 Conv2dFix (pad=1) + output quantization, all in VMEM.

    Halo-only zeroing and a sublane-aligned (w-offset 8) interior store into the padded
    scratch (feedback: avoid the full-tile zero pass and the misaligned offset-1 store).
    """
    n, h, w, c = a_ref.shape
    ho, wo = y2q_ref.shape[1], y2q_ref.shape[2]
    wpad = pad_ref.shape[2]

    a = a_ref[...]
    if quant_input:                                   # expand_ratio == 1: first Conv2dFix
        a = _quantize_value(a)

    # zero only the 1-wide halo (rows 0 / h+1 fully, columns 7 and w+8 in the interior)
    pad_ref[:, pl.ds(0, 1), :, :] = jnp.zeros((n, 1, wpad, c), jnp.float32)
    pad_ref[:, pl.ds(h + 1, 1), :, :] = jnp.zeros((n, 1, wpad, c), jnp.float32)
    pad_ref[:, pl.ds(1, h), pl.ds(7, 1), :] = jnp.zeros((n, h, 1, c), jnp.float32)
    pad_ref[:, pl.ds(1, h), pl.ds(8 + w, 1), :] = jnp.zeros((n, h, 1, c), jnp.float32)
    # interior, sublane-aligned store
    pad_ref[:, pl.ds(1, h), pl.ds(8, w), :] = a

    wq = w2_ref[...]                                  # (3, 3, c) pre-quantized f32
    acc = jnp.zeros((n, ho, wo, c), jnp.float32)
    for kh in range(3):
        for kw in range(3):
            if stride == 1:
                patch = pad_ref[:, pl.ds(kh, ho), pl.ds(7 + kw, wo), :]
            else:
                patch = pad_ref[:, pl.ds(kh, ho, stride), pl.ds(7 + kw, wo, stride), :]
            acc = acc + patch * wq[kh, kw]            # (c,) broadcast over lanes
    y2q_ref[...] = _quantize_value(acc)               # quantize conv output with max|y2|


def _project_stage_kernel(*refs, use_mxu, use_res):
    """BN2(train)+ReLU6 on the quantized dw output, Conv2dFix(1x1 project), BN3, +res."""
    if use_res:
        (y2q_ref, g2_ref, b2_ref, w3_ref, g3_ref, b3_ref, res_ref, out_ref) = refs
    else:
        (y2q_ref, g2_ref, b2_ref, w3_ref, g3_ref, b3_ref, out_ref) = refs
        res_ref = None

    a2 = _bn_train_2d(y2q_ref[...], g2_ref[...], b2_ref[...], relu6=True)
    a2q = _quantize_value(a2)                         # input quant of the projection conv
    w3 = w3_ref[...]
    if use_mxu:
        y3 = jnp.dot(a2q.astype(jnp.bfloat16), w3.astype(jnp.bfloat16),
                     preferred_element_type=jnp.float32)
    else:
        y3 = _small_k_matmul(a2q, w3)
    y3q = _quantize_value(y3)                         # output quant with max|y3|
    out = _bn_train_2d(y3q, g3_ref[...], b3_ref[...], relu6=False)
    if res_ref is not None:
        out = out + res_ref[...]                      # residual uses the original float x
    out_ref[...] = out


def _fused_fits(n, h, w, cin, hidden, oup):
    """Can the fused (whole-tensor VMEM resident) stage kernels be used for this shape?"""
    cap = _vmem_capacity()
    m = n * h * w
    est = 4 * (m * cin + 6 * m * hidden + m * oup + n * (h + 2) * (w + 9) * hidden)
    return est <= int(0.35 * cap)


def _forward_fused(x_nchw, params, *, stride, expand_ratio):
    n, cin, h, w = x_nchw.shape
    oup = params["w3"].shape[1]
    use_res = (stride == 1) and (cin == oup)
    ho = (h - 1) // stride + 1
    wo = (w - 1) // stride + 1
    m, m2 = n * h * w, n * ho * wo

    x_nhwc = jnp.transpose(x_nchw, (0, 2, 3, 1)).astype(jnp.float32)
    x2 = x_nhwc.reshape(m, cin)

    cap = _vmem_capacity()
    cparams = pltpu.CompilerParams(
        vmem_limit_bytes=max(32 * 1024 * 1024, min(int(0.9 * cap), 120 * 1024 * 1024)))

    # weights are tiny: quantize once in XLA
    w2q = _quantize_tensor(params["w2"])
    w3q = _quantize_tensor(params["w3"])

    if expand_ratio != 1:
        hidden = params["w1"].shape[1]
        w1q = _quantize_tensor(params["w1"])
        a1q = pl.pallas_call(
            functools.partial(_expand_stage_kernel, use_mxu=cin > _SMALL_K),
            out_shape=jax.ShapeDtypeStruct((m, hidden), jnp.float32),
            compiler_params=cparams,
        )(x2, w1q, params["g1"].reshape(1, hidden), params["b1"].reshape(1, hidden))
        a_dw4 = a1q.reshape(n, h, w, hidden)          # free layout change in XLA
        quant_input = False
    else:
        hidden = cin
        a_dw4 = x_nhwc
        quant_input = True

    y2q4 = pl.pallas_call(
        functools.partial(_dw_stage_kernel, stride=stride, quant_input=quant_input),
        out_shape=jax.ShapeDtypeStruct((n, ho, wo, hidden), jnp.float32),
        scratch_shapes=[pltpu.VMEM((n, h + 2, w + 9, hidden), jnp.float32)],
        compiler_params=cparams,
    )(a_dw4, w2q)

    y2q = y2q4.reshape(m2, hidden)
    args = [y2q, params["g2"].reshape(1, hidden), params["b2"].reshape(1, hidden),
            w3q, params["g3"].reshape(1, oup), params["b3"].reshape(1, oup)]
    if use_res:
        args.append(x2)
    out2 = pl.pallas_call(
        functools.partial(_project_stage_kernel, use_mxu=hidden > _SMALL_K,
                          use_res=use_res),
        out_shape=jax.ShapeDtypeStruct((m2, oup), jnp.float32),
        compiler_params=cparams,
    )(*args)

    return jnp.transpose(out2.reshape(n, ho, wo, oup), (0, 3, 1, 2))


# ---------------------------------------------------------------------------
# tiled fallback path (large shapes): streaming kernels with per-tile partial
# reductions (parallel grid) instead of serialized grid accumulators
# ---------------------------------------------------------------------------
def _absmax_kernel(x_ref, mx_ref):
    mx_ref[...] = jnp.broadcast_to(jnp.max(jnp.abs(x_ref[...])), (1, 1))


def _absmax(mat):
    matf, _ = _fold_lanes(mat)
    mf, cl = matf.shape
    tm = _row_tile(mf)
    nt = mf // tm
    parts = pl.pallas_call(
        _absmax_kernel,
        grid=(nt,),
        in_specs=[pl.BlockSpec((tm, cl), lambda i: (i, 0))],
        out_specs=pl.BlockSpec((1, 1), lambda i: (i, 0)),
        out_shape=jax.ShapeDtypeStruct((nt, 1), jnp.float32),
        compiler_params=pltpu.CompilerParams(dimension_semantics=("parallel",)),
    )(matf)
    return jnp.max(parts)


def _matmul_kernel(qp_ref, x_ref, w_ref, y_ref, my_ref):
    xq = _quantize_with(x_ref[...], qp_ref).astype(jnp.bfloat16)  # exact: 8-bit grid * 2^k
    y = jnp.dot(xq, w_ref[...], preferred_element_type=jnp.float32)
    y_ref[...] = y
    my_ref[...] = jnp.broadcast_to(jnp.max(jnp.abs(y)), (1, 1))


def _matmul_maxout(x_mat, qp_in, w_q_bf16):
    m, cin = x_mat.shape
    cout = w_q_bf16.shape[1]
    tm = _row_tile(m)
    nt = m // tm
    y, my = pl.pallas_call(
        _matmul_kernel,
        grid=(nt,),
        in_specs=[
            _SMEM,
            pl.BlockSpec((tm, cin), lambda i: (i, 0)),
            pl.BlockSpec((cin, cout), lambda i: (0, 0)),
        ],
        out_specs=[
            pl.BlockSpec((tm, cout), lambda i: (i, 0)),
            pl.BlockSpec((1, 1), lambda i: (i, 0)),
        ],
        out_shape=[
            jax.ShapeDtypeStruct((m, cout), jnp.float32),
            jax.ShapeDtypeStruct((nt, 1), jnp.float32),
        ],
        compiler_params=pltpu.CompilerParams(dimension_semantics=("parallel",)),
        cost_estimate=pl.CostEstimate(
            flops=2 * m * cin * cout,
            transcendentals=0,
            bytes_accessed=4 * (m * cin + m * cout) + 2 * cin * cout,
        ),
    )(qp_in, x_mat, w_q_bf16)
    return y, jnp.max(my)


def _quant_stats_kernel(qp_ref, y_ref, s_ref, s2_ref):
    yq = _quantize_with(y_ref[...], qp_ref)
    s_ref[...] = jnp.sum(yq, axis=0, keepdims=True)
    s2_ref[...] = jnp.sum(yq * yq, axis=0, keepdims=True)


def _quant_channel_stats(y_mat, qp_out):
    m, c = y_mat.shape
    yf, r = _fold_lanes(y_mat)
    mf, cl = yf.shape
    tm = _row_tile(mf)
    nt = mf // tm
    s, s2 = pl.pallas_call(
        _quant_stats_kernel,
        grid=(nt,),
        in_specs=[_SMEM, pl.BlockSpec((tm, cl), lambda i: (i, 0))],
        out_specs=[pl.BlockSpec((1, cl), lambda i: (i, 0)),
                   pl.BlockSpec((1, cl), lambda i: (i, 0))],
        out_shape=[jax.ShapeDtypeStruct((nt, cl), jnp.float32),
                   jax.ShapeDtypeStruct((nt, cl), jnp.float32)],
        compiler_params=pltpu.CompilerParams(dimension_semantics=("parallel",)),
    )(qp_out, yf)
    s = s.sum(axis=0)
    s2 = s2.sum(axis=0)
    if r > 1:
        s = s.reshape(r, c).sum(axis=0)
        s2 = s2.reshape(r, c).sum(axis=0)
    return s, s2


def _bn_apply_kernel(qp_ref, y_ref, scale_ref, shift_ref, *rest,
                     relu6, has_res, want_max):
    if has_res and want_max:
        res_ref, a_ref, ma_ref = rest
    elif has_res:
        res_ref, a_ref = rest
    elif want_max:
        a_ref, ma_ref = rest
    else:
        (a_ref,) = rest

    yq = _quantize_with(y_ref[...], qp_ref)
    out = yq * scale_ref[...] + shift_ref[...]
    if relu6:
        out = jnp.clip(out, 0.0, 6.0)
    if has_res:
        out = out + res_ref[...]
    a_ref[...] = out
    if want_max:
        ma_ref[...] = jnp.broadcast_to(jnp.max(jnp.abs(out)), (1, 1))


def _quant_bn_act(y_mat, max_y, gamma, beta, *, relu6, residual=None, want_max):
    """quantize(y, max|y|) -> BatchNorm2d(training) -> [ReLU6] -> [+res]; optional max|out|."""
    m, c = y_mat.shape
    qp_out = _quant_params(max_y)

    # single-pass batch stats (tiled); the fused path uses the two-pass form
    s, s2 = _quant_channel_stats(y_mat, qp_out)
    mean = s / m
    var = jnp.maximum(s2 / m - mean * mean, 0.0)
    scale = gamma * jax.lax.rsqrt(var + _BN_EPS)
    shift = beta - mean * scale

    yf, r = _fold_lanes(y_mat)
    mf, cl = yf.shape
    tm = _row_tile(mf)
    nt = mf // tm
    if r > 1:
        scale_l = jnp.tile(scale, r).reshape(1, cl)
        shift_l = jnp.tile(shift, r).reshape(1, cl)
    else:
        scale_l = scale.reshape(1, cl)
        shift_l = shift.reshape(1, cl)

    args = [qp_out, yf, scale_l, shift_l]
    in_specs = [_SMEM,
                pl.BlockSpec((tm, cl), lambda i: (i, 0)),
                pl.BlockSpec((1, cl), lambda i: (0, 0)),
                pl.BlockSpec((1, cl), lambda i: (0, 0))]
    if residual is not None:
        args.append(residual.reshape(mf, cl))
        in_specs.append(pl.BlockSpec((tm, cl), lambda i: (i, 0)))

    out_specs = [pl.BlockSpec((tm, cl), lambda i: (i, 0))]
    out_shape = [jax.ShapeDtypeStruct((mf, cl), jnp.float32)]
    if want_max:
        out_specs.append(pl.BlockSpec((1, 1), lambda i: (i, 0)))
        out_shape.append(jax.ShapeDtypeStruct((nt, 1), jnp.float32))

    kern = functools.partial(_bn_apply_kernel, relu6=relu6,
                             has_res=residual is not None, want_max=want_max)
    res = pl.pallas_call(
        kern,
        grid=(nt,),
        in_specs=in_specs,
        out_specs=out_specs,
        out_shape=out_shape,
        compiler_params=pltpu.CompilerParams(dimension_semantics=("parallel",)),
    )(*args)
    if want_max:
        a, ma = res
        return a.reshape(m, c), jnp.max(ma)
    (a,) = res
    return a.reshape(m, c), None


def _dwconv_kernel(qp_ref, x_ref, w_ref, y_ref, my_ref, pad_ref, *, stride):
    _, hh, ww, _ = x_ref.shape
    _, ho, wo, _ = y_ref.shape

    pad_ref[...] = jnp.zeros_like(pad_ref)
    pad_ref[pl.ds(1, hh), pl.ds(1, ww), :] = _quantize_with(x_ref[0], qp_ref)

    wq = w_ref[...]                                     # pre-quantized in the wrapper
    acc = jnp.zeros((ho, wo, wq.shape[-1]), jnp.float32)
    for kh in range(3):
        for kw in range(3):
            if stride == 1:
                patch = pad_ref[pl.ds(kh, ho), pl.ds(kw, wo), :]
            else:
                patch = pad_ref[pl.ds(kh, ho, stride), pl.ds(kw, wo, stride), :]
            acc = acc + patch * wq[kh, kw]
    y_ref[...] = acc[None]
    my_ref[...] = jnp.broadcast_to(jnp.max(jnp.abs(acc)), (1, 1))


def _dwconv(a_nhwc, max_in, w_dw_q, *, stride):
    n, h, w, c = a_nhwc.shape
    ho = (h + 2 - 3) // stride + 1
    wo = (w + 2 - 3) // stride + 1
    qp_in = _quant_params(max_in)
    y, my = pl.pallas_call(
        functools.partial(_dwconv_kernel, stride=stride),
        grid=(n,),
        in_specs=[
            _SMEM,
            pl.BlockSpec((1, h, w, c), lambda b: (b, 0, 0, 0)),
            pl.BlockSpec((3, 3, c), lambda b: (0, 0, 0)),
        ],
        out_specs=[
            pl.BlockSpec((1, ho, wo, c), lambda b: (b, 0, 0, 0)),
            pl.BlockSpec((1, 1), lambda b: (b, 0)),
        ],
        out_shape=[
            jax.ShapeDtypeStruct((n, ho, wo, c), jnp.float32),
            jax.ShapeDtypeStruct((n, 1), jnp.float32),
        ],
        scratch_shapes=[pltpu.VMEM((h + 2, w + 2, c), jnp.float32)],
        compiler_params=pltpu.CompilerParams(dimension_semantics=("parallel",)),
    )(qp_in, a_nhwc, w_dw_q)
    return y, jnp.max(my)


def _conv1x1_block(x_mat, max_in, w, gamma, beta, *, relu6, residual=None, want_max):
    qp_in = _quant_params(max_in)
    wq = _quantize_tensor(w).astype(jnp.bfloat16)   # hoisted weight quant; bf16 cast exact
    y, max_y = _matmul_maxout(x_mat, qp_in, wq)
    return _quant_bn_act(y, max_y, gamma, beta, relu6=relu6,
                         residual=residual, want_max=want_max)


def _forward_tiled(x_nchw, params, *, stride, expand_ratio):
    n, cin, h, w = x_nchw.shape
    oup = params["w3"].shape[1]
    use_res_connect = (stride == 1) and (cin == oup)

    x_nhwc = jnp.transpose(x_nchw, (0, 2, 3, 1)).astype(jnp.float32)
    m = n * h * w
    x_mat = x_nhwc.reshape(m, cin)

    max_x = _absmax(x_mat)

    if expand_ratio != 1:
        hidden = params["w1"].shape[1]
        a1, max_a1 = _conv1x1_block(x_mat, max_x, params["w1"], params["g1"],
                                    params["b1"], relu6=True, want_max=True)
    else:
        hidden = cin
        a1, max_a1 = x_mat, max_x

    w2q = _quantize_tensor(params["w2"])
    y2, max_y2 = _dwconv(a1.reshape(n, h, w, hidden), max_a1, w2q, stride=stride)
    n2, ho, wo, _ = y2.shape
    a2, max_a2 = _quant_bn_act(y2.reshape(n2 * ho * wo, hidden), max_y2,
                               params["g2"], params["b2"], relu6=True, want_max=True)

    residual = x_mat if use_res_connect else None
    out, _ = _conv1x1_block(a2, max_a2, params["w3"], params["g3"], params["b3"],
                            relu6=False, residual=residual, want_max=False)

    return jnp.transpose(out.reshape(n2, ho, wo, oup), (0, 3, 1, 2))


# ---------------------------------------------------------------------------
# public forward
# ---------------------------------------------------------------------------
def inverted_residual_forward(x_nchw, params, *, stride, expand_ratio,
                              force_tiled=False):
    assert stride in (1, 2)
    n, cin, h, w = x_nchw.shape
    oup = params["w3"].shape[1]
    hidden = params["w1"].shape[1] if expand_ratio != 1 else cin
    if (not force_tiled) and _fused_fits(n, h, w, cin, hidden, oup):
        return _forward_fused(x_nchw, params, stride=stride, expand_ratio=expand_ratio)
    return _forward_tiled(x_nchw, params, stride=stride, expand_ratio=expand_ratio)


# ---------------------------------------------------------------------------
# parameters / demo
# ---------------------------------------------------------------------------
def _make_params(key, inp, oup, hidden):
    ks = jax.random.split(key, 9)
    f32 = jnp.float32
    return dict(
        # Conv2dFix(inp, hidden, 1) weight [hidden, inp, 1, 1] -> stored transposed (inp, hidden)
        w1=(0.1 * jax.random.normal(ks[0], (inp, hidden))).astype(f32),
        g1=(1.0 + 0.1 * jax.random.normal(ks[1], (hidden,))).astype(f32),
        b1=(0.1 * jax.random.normal(ks[2], (hidden,))).astype(f32),
        # depthwise Conv2dFix(hidden, hidden, 3, groups=hidden) weight [hidden,1,3,3] -> (3,3,hidden)
        w2=(0.1 * jax.random.normal(ks[3], (3, 3, hidden))).astype(f32),
        g2=(1.0 + 0.1 * jax.random.normal(ks[4], (hidden,))).astype(f32),
        b2=(0.1 * jax.random.normal(ks[5], (hidden,))).astype(f32),
        # Conv2dFix(hidden, oup, 1) weight [oup, hidden, 1, 1] -> (hidden, oup)
        w3=(0.1 * jax.random.normal(ks[6], (hidden, oup))).astype(f32),
        g3=(1.0 + 0.1 * jax.random.normal(ks[7], (oup,))).astype(f32),
        b3=(0.1 * jax.random.normal(ks[8], (oup,))).astype(f32),
    )


if __name__ == "__main__":
    key = jax.random.PRNGKey(0)
    k_x, k_p = jax.random.split(key)

    # InvertedResidual(inp=8, oup=8, stride=1, expand_ratio=4) -> hidden=32, residual connect.
    N, INP, H, W = 2, 8, 8, 8
    OUP, STRIDE, EXPAND = 8, 1, 4
    HIDDEN = int(round(INP * EXPAND))

    x = jax.random.normal(k_x, (N, INP, H, W), jnp.float32)
    params = _make_params(k_p, INP, OUP, HIDDEN)

    fwd_fused = jax.jit(functools.partial(
        inverted_residual_forward, stride=STRIDE, expand_ratio=EXPAND))
    y_fused = fwd_fused(x, params)
    jax.block_until_ready(y_fused)

    # also exercise the tiled fallback path and cross-check the two implementations
    fwd_tiled = jax.jit(functools.partial(
        inverted_residual_forward, stride=STRIDE, expand_ratio=EXPAND, force_tiled=True))
    y_tiled = fwd_tiled(x, params)
    jax.block_until_ready(y_tiled)

    ho = (H - 1) // STRIDE + 1
    wo = (W - 1) // STRIDE + 1
    assert y_fused.shape == (N, OUP, ho, wo)
    assert y_tiled.shape == y_fused.shape
    assert bool(jnp.all(jnp.isfinite(y_fused)))
    assert bool(jnp.all(jnp.isfinite(y_tiled)))
    # loose tolerance: the paths differ only in summation order / variance formulation,
    # which can flip an occasional 8-bit quantization rounding boundary
    assert float(jnp.max(jnp.abs(y_fused - y_tiled))) < 0.5
    print("KERNEL_OK")
</pallas_src>

<mosaic_0001>
module attributes {stable_mosaic.version = 11 : i64} {
  func.func @_expand_stage_kernel(%arg0: memref<128x8xf32, #tpu.memory_space<vmem>>, %arg1: memref<8x32xf32, #tpu.memory_space<vmem>>, %arg2: memref<1x32xf32, #tpu.memory_space<vmem>>, %arg3: memref<1x32xf32, #tpu.memory_space<vmem>>, %arg4: memref<128x32xf32, #tpu.memory_space<vmem>>) attributes {dimension_semantics = [], scalar_prefetch = 0 : i64, scratch_operands = 0 : i64, tpu.core_type = #tpu.core_type<tc>} {
    %c0 = arith.constant 0 : index
    %c0_0 = arith.constant 0 : index
    %0 = vector.load %arg0[%c0, %c0_0] : memref<128x8xf32, #tpu.memory_space<vmem>>, vector<128x8xf32>
    %1 = math.absf %0 : vector<128x8xf32>
    %2 = vector.shape_cast %1 : vector<128x8xf32> to vector<1x128x8xf32>
    %cst = arith.constant dense<0xFF800000> : vector<1xf32>
    %3 = vector.multi_reduction <maximumf>, %2, %cst [1, 2] : vector<1x128x8xf32> to vector<1xf32>
    %4 = vector.shape_cast %3 : vector<1xf32> to vector<1x1x1xf32>
    %5 = vector.extract %4[0, 0, 0] : f32 from vector<1x1x1xf32>
    %cst_1 = arith.constant 1.000000e-30 : f32
    %6 = arith.maximumf %5, %cst_1 : f32
    %7 = vector.broadcast %6 : f32 to vector<1x1xf32>
    %8 = math.log %7 : vector<1x1xf32>
    %cst_2 = arith.constant 1.44269502 : f32
    %9 = vector.broadcast %cst_2 : f32 to vector<1x1xf32>
    %10 = arith.mulf %8, %9 : vector<1x1xf32>
    %11 = math.ceil %10 : vector<1x1xf32>
    %cst_3 = arith.constant 7.000000e+00 : f32
    %12 = vector.broadcast %cst_3 : f32 to vector<1x1xf32>
    %13 = arith.subf %11, %12 : vector<1x1xf32>
    %cst_4 = arith.constant 0.693147182 : f32
    %14 = vector.broadcast %cst_4 : f32 to vector<1x1xf32>
    %15 = arith.mulf %14, %13 : vector<1x1xf32>
    %16 = math.exp %15 : vector<1x1xf32>
    %cst_5 = arith.constant 7.000000e+00 : f32
    %17 = vector.broadcast %cst_5 : f32 to vector<1x1xf32>
    %18 = arith.subf %17, %11 : vector<1x1xf32>
    %cst_6 = arith.constant 0.693147182 : f32
    %19 = vector.broadcast %cst_6 : f32 to vector<1x1xf32>
    %20 = arith.mulf %19, %18 : vector<1x1xf32>
    %21 = math.exp %20 : vector<1x1xf32>
    %cst_7 = arith.constant -1.280000e+02 : f32
    %22 = vector.broadcast %cst_7 : f32 to vector<1x1xf32>
    %23 = arith.mulf %22, %16 : vector<1x1xf32>
    %cst_8 = arith.constant 1.270000e+02 : f32
    %24 = vector.broadcast %cst_8 : f32 to vector<1x1xf32>
    %25 = arith.mulf %24, %16 : vector<1x1xf32>
    %26 = vector.broadcast %23 : vector<1x1xf32> to vector<128x8xf32>
    %27 = arith.maximumf %26, %0 : vector<128x8xf32>
    %28 = vector.broadcast %25 : vector<1x1xf32> to vector<128x8xf32>
    %29 = arith.minimumf %28, %27 : vector<128x8xf32>
    %30 = vector.broadcast %21 : vector<1x1xf32> to vector<128x8xf32>
    %31 = arith.mulf %29, %30 : vector<128x8xf32>
    %32 = math.roundeven %31 : vector<128x8xf32>
    %33 = vector.broadcast %16 : vector<1x1xf32> to vector<128x8xf32>
    %34 = arith.mulf %32, %33 : vector<128x8xf32>
    %c0_9 = arith.constant 0 : index
    %c0_10 = arith.constant 0 : index
    %35 = vector.load %arg1[%c0_9, %c0_10] : memref<8x32xf32, #tpu.memory_space<vmem>>, vector<8x32xf32>
    %36 = vector.extract_strided_slice %34 {offsets = [0, 0], sizes = [128, 1], strides = [1, 1]} : vector<128x8xf32> to vector<128x1xf32>
    %37 = vector.extract_strided_slice %35 {offsets = [0, 0], sizes = [1, 32], strides = [1, 1]} : vector<8x32xf32> to vector<1x32xf32>
    %38 = vector.broadcast %36 : vector<128x1xf32> to vector<128x32xf32>
    %39 = vector.broadcast %37 : vector<1x32xf32> to vector<128x32xf32>
    %40 = arith.mulf %38, %39 : vector<128x32xf32>
    %41 = vector.extract_strided_slice %34 {offsets = [0, 1], sizes = [128, 1], strides = [1, 1]} : vector<128x8xf32> to vector<128x1xf32>
    %42 = vector.extract_strided_slice %35 {offsets = [1, 0], sizes = [1, 32], strides = [1, 1]} : vector<8x32xf32> to vector<1x32xf32>
    %43 = vector.broadcast %41 : vector<128x1xf32> to vector<128x32xf32>
    %44 = vector.broadcast %42 : vector<1x32xf32> to vector<128x32xf32>
    %45 = arith.mulf %43, %44 : vector<128x32xf32>
    %46 = arith.addf %40, %45 : vector<128x32xf32>
    %47 = vector.extract_strided_slice %34 {offsets = [0, 2], sizes = [128, 1], strides = [1, 1]} : vector<128x8xf32> to vector<128x1xf32>
    %48 = vector.extract_strided_slice %35 {offsets = [2, 0], sizes = [1, 32], strides = [1, 1]} : vector<8x32xf32> to vector<1x32xf32>
    %49 = vector.broadcast %47 : vector<128x1xf32> to vector<128x32xf32>
    %50 = vector.broadcast %48 : vector<1x32xf32> to vector<128x32xf32>
    %51 = arith.mulf %49, %50 : vector<128x32xf32>
    %52 = arith.addf %46, %51 : vector<128x32xf32>
    %53 = vector.extract_strided_slice %34 {offsets = [0, 3], sizes = [128, 1], strides = [1, 1]} : vector<128x8xf32> to vector<128x1xf32>
    %54 = vector.extract_strided_slice %35 {offsets = [3, 0], sizes = [1, 32], strides = [1, 1]} : vector<8x32xf32> to vector<1x32xf32>
    %55 = vector.broadcast %53 : vector<128x1xf32> to vector<128x32xf32>
    %56 = vector.broadcast %54 : vector<1x32xf32> to vector<128x32xf32>
    %57 = arith.mulf %55, %56 : vector<128x32xf32>
    %58 = arith.addf %52, %57 : vector<128x32xf32>
    %59 = vector.extract_strided_slice %34 {offsets = [0, 4], sizes = [128, 1], strides = [1, 1]} : vector<128x8xf32> to vector<128x1xf32>
    %60 = vector.extract_strided_slice %35 {offsets = [4, 0], sizes = [1, 32], strides = [1, 1]} : vector<8x32xf32> to vector<1x32xf32>
    %61 = vector.broadcast %59 : vector<128x1xf32> to vector<128x32xf32>
    %62 = vector.broadcast %60 : vector<1x32xf32> to vector<128x32xf32>
    %63 = arith.mulf %61, %62 : vector<128x32xf32>
    %64 = arith.addf %58, %63 : vector<128x32xf32>
    %65 = vector.extract_strided_slice %34 {offsets = [0, 5], sizes = [128, 1], strides = [1, 1]} : vector<128x8xf32> to vector<128x1xf32>
    %66 = vector.extract_strided_slice %35 {offsets = [5, 0], sizes = [1, 32], strides = [1, 1]} : vector<8x32xf32> to vector<1x32xf32>
    %67 = vector.broadcast %65 : vector<128x1xf32> to vector<128x32xf32>
    %68 = vector.broadcast %66 : vector<1x32xf32> to vector<128x32xf32>
    %69 = arith.mulf %67, %68 : vector<128x32xf32>
    %70 = arith.addf %64, %69 : vector<128x32xf32>
    %71 = vector.extract_strided_slice %34 {offsets = [0, 6], sizes = [128, 1], strides = [1, 1]} : vector<128x8xf32> to vector<128x1xf32>
    %72 = vector.extract_strided_slice %35 {offsets = [6, 0], sizes = [1, 32], strides = [1, 1]} : vector<8x32xf32> to vector<1x32xf32>
    %73 = vector.broadcast %71 : vector<128x1xf32> to vector<128x32xf32>
    %74 = vector.broadcast %72 : vector<1x32xf32> to vector<128x32xf32>
    %75 = arith.mulf %73, %74 : vector<128x32xf32>
    %76 = arith.addf %70, %75 : vector<128x32xf32>
    %77 = vector.extract_strided_slice %34 {offsets = [0, 7], sizes = [128, 1], strides = [1, 1]} : vector<128x8xf32> to vector<128x1xf32>
    %78 = vector.extract_strided_slice %35 {offsets = [7, 0], sizes = [1, 32], strides = [1, 1]} : vector<8x32xf32> to vector<1x32xf32>
    %79 = vector.broadcast %77 : vector<128x1xf32> to vector<128x32xf32>
    %80 = vector.broadcast %78 : vector<1x32xf32> to vector<128x32xf32>
    %81 = arith.mulf %79, %80 : vector<128x32xf32>
    %82 = arith.addf %76, %81 : vector<128x32xf32>
    %83 = math.absf %82 : vector<128x32xf32>
    %84 = vector.shape_cast %83 : vector<128x32xf32> to vector<1x128x32xf32>
    %cst_11 = arith.constant dense<0xFF800000> : vector<1xf32>
    %85 = vector.multi_reduction <maximumf>, %84, %cst_11 [1, 2] : vector<1x128x32xf32> to vector<1xf32>
    %86 = vector.shape_cast %85 : vector<1xf32> to vector<1x1x1xf32>
    %87 = vector.extract %86[0, 0, 0] : f32 from vector<1x1x1xf32>
    %cst_12 = arith.constant 1.000000e-30 : f32
    %88 = arith.maximumf %87, %cst_12 : f32
    %89 = vector.broadcast %88 : f32 to vector<1x1xf32>
    %90 = math.log %89 : vector<1x1xf32>
    %cst_13 = arith.constant 1.44269502 : f32
    %91 = vector.broadcast %cst_13 : f32 to vector<1x1xf32>
    %92 = arith.mulf %90, %91 : vector<1x1xf32>
    %93 = math.ceil %92 : vector<1x1xf32>
    %cst_14 = arith.constant 7.000000e+00 : f32
    %94 = vector.broadcast %cst_14 : f32 to vector<1x1xf32>
    %95 = arith.subf %93, %94 : vector<1x1xf32>
    %cst_15 = arith.constant 0.693147182 : f32
    %96 = vector.broadcast %cst_15 : f32 to vector<1x1xf32>
    %97 = arith.mulf %96, %95 : vector<1x1xf32>
    %98 = math.exp %97 : vector<1x1xf32>
    %cst_16 = arith.constant 7.000000e+00 : f32
    %99 = vector.broadcast %cst_16 : f32 to vector<1x1xf32>
    %100 = arith.subf %99, %93 : vector<1x1xf32>
    %cst_17 = arith.constant 0.693147182 : f32
    %101 = vector.broadcast %cst_17 : f32 to vector<1x1xf32>
    %102 = arith.mulf %101, %100 : vector<1x1xf32>
    %103 = math.exp %102 : vector<1x1xf32>
    %cst_18 = arith.constant -1.280000e+02 : f32
    %104 = vector.broadcast %cst_18 : f32 to vector<1x1xf32>
    %105 = arith.mulf %104, %98 : vector<1x1xf32>
    %cst_19 = arith.constant 1.270000e+02 : f32
    %106 = vector.broadcast %cst_19 : f32 to vector<1x1xf32>
    %107 = arith.mulf %106, %98 : vector<1x1xf32>
    %108 = vector.broadcast %105 : vector<1x1xf32> to vector<128x32xf32>
    %109 = arith.maximumf %108, %82 : vector<128x32xf32>
    %110 = vector.broadcast %107 : vector<1x1xf32> to vector<128x32xf32>
    %111 = arith.minimumf %110, %109 : vector<128x32xf32>
    %112 = vector.broadcast %103 : vector<1x1xf32> to vector<128x32xf32>
    %113 = arith.mulf %111, %112 : vector<128x32xf32>
    %114 = math.roundeven %113 : vector<128x32xf32>
    %115 = vector.broadcast %98 : vector<1x1xf32> to vector<128x32xf32>
    %116 = arith.mulf %114, %115 : vector<128x32xf32>
    %c0_20 = arith.constant 0 : index
    %c0_21 = arith.constant 0 : index
    %117 = vector.load %arg2[%c0_20, %c0_21] : memref<1x32xf32, #tpu.memory_space<vmem>>, vector<1x32xf32>
    %c0_22 = arith.constant 0 : index
    %c0_23 = arith.constant 0 : index
    %118 = vector.load %arg3[%c0_22, %c0_23] : memref<1x32xf32, #tpu.memory_space<vmem>>, vector<1x32xf32>
    %cst_24 = arith.constant dense<0.000000e+00> : vector<32xf32>
    %119 = vector.multi_reduction <add>, %116, %cst_24 [0] : vector<128x32xf32> to vector<32xf32>
    %120 = vector.shape_cast %119 : vector<32xf32> to vector<1x32xf32>
    %cst_25 = arith.constant 7.812500e-03 : f32
    %121 = vector.broadcast %cst_25 : f32 to vector<1x32xf32>
    %122 = arith.mulf %120, %121 : vector<1x32xf32>
    %123 = vector.broadcast %122 : vector<1x32xf32> to vector<128x32xf32>
    %124 = arith.subf %116, %123 : vector<128x32xf32>
    %125 = arith.mulf %124, %124 : vector<128x32xf32>
    %cst_26 = arith.constant dense<0.000000e+00> : vector<32xf32>
    %126 = vector.multi_reduction <add>, %125, %cst_26 [0] : vector<128x32xf32> to vector<32xf32>
    %127 = vector.shape_cast %126 : vector<32xf32> to vector<1x32xf32>
    %cst_27 = arith.constant 7.812500e-03 : f32
    %128 = vector.broadcast %cst_27 : f32 to vector<1x32xf32>
    %129 = arith.mulf %127, %128 : vector<1x32xf32>
    %cst_28 = arith.constant 9.99999974E-6 : f32
    %130 = vector.broadcast %cst_28 : f32 to vector<1x32xf32>
    %131 = arith.addf %129, %130 : vector<1x32xf32>
    %132 = math.rsqrt %131 : vector<1x32xf32>
    %133 = arith.mulf %117, %132 : vector<1x32xf32>
    %134 = vector.broadcast %133 : vector<1x32xf32> to vector<128x32xf32>
    %135 = arith.mulf %124, %134 : vector<128x32xf32>
    %136 = vector.broadcast %118 : vector<1x32xf32> to vector<128x32xf32>
    %137 = arith.addf %135, %136 : vector<128x32xf32>
    %cst_29 = arith.constant 0.000000e+00 : f32
    %cst_30 = arith.constant 6.000000e+00 : f32
    %138 = vector.broadcast %cst_29 : f32 to vector<128x32xf32>
    %139 = arith.maximumf %138, %137 : vector<128x32xf32>
    %140 = vector.broadcast %cst_30 : f32 to vector<128x32xf32>
    %141 = arith.minimumf %140, %139 : vector<128x32xf32>
    %142 = math.absf %141 : vector<128x32xf32>
    %143 = vector.shape_cast %142 : vector<128x32xf32> to vector<1x128x32xf32>
    %cst_31 = arith.constant dense<0xFF800000> : vector<1xf32>
    %144 = vector.multi_reduction <maximumf>, %143, %cst_31 [1, 2] : vector<1x128x32xf32> to vector<1xf32>
    %145 = vector.shape_cast %144 : vector<1xf32> to vector<1x1x1xf32>
    %146 = vector.extract %145[0, 0, 0] : f32 from vector<1x1x1xf32>
    %cst_32 = arith.constant 1.000000e-30 : f32
    %147 = arith.maximumf %146, %cst_32 : f32
    %148 = vector.broadcast %147 : f32 to vector<1x1xf32>
    %149 = math.log %148 : vector<1x1xf32>
    %cst_33 = arith.constant 1.44269502 : f32
    %150 = vector.broadcast %cst_33 : f32 to vector<1x1xf32>
    %151 = arith.mulf %149, %150 : vector<1x1xf32>
    %152 = math.ceil %151 : vector<1x1xf32>
    %cst_34 = arith.constant 7.000000e+00 : f32
    %153 = vector.broadcast %cst_34 : f32 to vector<1x1xf32>
    %154 = arith.subf %152, %153 : vector<1x1xf32>
    %cst_35 = arith.constant 0.693147182 : f32
    %155 = vector.broadcast %cst_35 : f32 to vector<1x1xf32>
    %156 = arith.mulf %155, %154 : vector<1x1xf32>
    %157 = math.exp %156 : vector<1x1xf32>
    %cst_36 = arith.constant 7.000000e+00 : f32
    %158 = vector.broadcast %cst_36 : f32 to vector<1x1xf32>
    %159 = arith.subf %158, %152 : vector<1x1xf32>
    %cst_37 = arith.constant 0.693147182 : f32
    %160 = vector.broadcast %cst_37 : f32 to vector<1x1xf32>
    %161 = arith.mulf %160, %159 : vector<1x1xf32>
    %162 = math.exp %161 : vector<1x1xf32>
    %cst_38 = arith.constant -1.280000e+02 : f32
    %163 = vector.broadcast %cst_38 : f32 to vector<1x1xf32>
    %164 = arith.mulf %163, %157 : vector<1x1xf32>
    %cst_39 = arith.constant 1.270000e+02 : f32
    %165 = vector.broadcast %cst_39 : f32 to vector<1x1xf32>
    %166 = arith.mulf %165, %157 : vector<1x1xf32>
    %167 = vector.broadcast %164 : vector<1x1xf32> to vector<128x32xf32>
    %168 = arith.maximumf %167, %141 : vector<128x32xf32>
    %169 = vector.broadcast %166 : vector<1x1xf32> to vector<128x32xf32>
    %170 = arith.minimumf %169, %168 : vector<128x32xf32>
    %171 = vector.broadcast %162 : vector<1x1xf32> to vector<128x32xf32>
    %172 = arith.mulf %170, %171 : vector<128x32xf32>
    %173 = math.roundeven %172 : vector<128x32xf32>
    %174 = vector.broadcast %157 : vector<1x1xf32> to vector<128x32xf32>
    %175 = arith.mulf %173, %174 : vector<128x32xf32>
    %c0_40 = arith.constant 0 : index
    %c0_41 = arith.constant 0 : index
    %176 = vector.load %arg4[%c0_40, %c0_41] : memref<128x32xf32, #tpu.memory_space<vmem>>, vector<128x32xf32>
    tpu.vector_store %arg4[%c0_40, %c0_41], %175 {strides = array<i32>} : memref<128x32xf32, #tpu.memory_space<vmem>>, vector<128x32xf32>,
    return
  }
}

module attributes {stable_mosaic.version = 11 : i64} {
  func.func @_dw_stage_kernel(%arg0: memref<2x8x8x32xf32, #tpu.memory_space<vmem>>, %arg1: memref<3x3x32xf32, #tpu.memory_space<vmem>>, %arg2: memref<2x8x8x32xf32, #tpu.memory_space<vmem>>, %arg3: memref<2x10x17x32xf32, #tpu.memory_space<vmem>>) attributes {dimension_semantics = [], scalar_prefetch = 0 : i64, scratch_operands = 1 : i64, tpu.core_type = #tpu.core_type<tc>} {
    %c0 = arith.constant 0 : index
    %c0_0 = arith.constant 0 : index
    %c0_1 = arith.constant 0 : index
    %c0_2 = arith.constant 0 : index
    %0 = vector.load %arg0[%c0, %c0_0, %c0_1, %c0_2] : memref<2x8x8x32xf32, #tpu.memory_space<vmem>>, vector<2x8x8x32xf32>
    %cst = arith.constant 0.000000e+00 : f32
    %1 = vector.broadcast %cst : f32 to vector<2x1x17x32xf32>
    %c0_3 = arith.constant 0 : index
    %c0_4 = arith.constant 0 : index
    %c0_5 = arith.constant 0 : index
    %c0_6 = arith.constant 0 : index
    %2 = vector.load %arg3[%c0_3, %c0_4, %c0_5, %c0_6] : memref<2x10x17x32xf32, #tpu.memory_space<vmem>>, vector<2x1x17x32xf32>
    tpu.vector_store %arg3[%c0_3, %c0_4, %c0_5, %c0_6], %1 {strides = array<i32>} : memref<2x10x17x32xf32, #tpu.memory_space<vmem>>, vector<2x1x17x32xf32>,
    %cst_7 = arith.constant 0.000000e+00 : f32
    %3 = vector.broadcast %cst_7 : f32 to vector<2x1x17x32xf32>
    %c0_8 = arith.constant 0 : index
    %c9 = arith.constant 9 : index
    %c0_9 = arith.constant 0 : index
    %c0_10 = arith.constant 0 : index
    %4 = vector.load %arg3[%c0_8, %c9, %c0_9, %c0_10] : memref<2x10x17x32xf32, #tpu.memory_space<vmem>>, vector<2x1x17x32xf32>
    tpu.vector_store %arg3[%c0_8, %c9, %c0_9, %c0_10], %3 {strides = array<i32>} : memref<2x10x17x32xf32, #tpu.memory_space<vmem>>, vector<2x1x17x32xf32>,
    %cst_11 = arith.constant 0.000000e+00 : f32
    %5 = vector.broadcast %cst_11 : f32 to vector<2x8x1x32xf32>
    %c0_12 = arith.constant 0 : index
    %c1 = arith.constant 1 : index
    %c7 = arith.constant 7 : index
    %c0_13 = arith.constant 0 : index
    %6 = vector.load %arg3[%c0_12, %c1, %c7, %c0_13] : memref<2x10x17x32xf32, #tpu.memory_space<vmem>>, vector<2x8x1x32xf32>
    tpu.vector_store %arg3[%c0_12, %c1, %c7, %c0_13], %5 {strides = array<i32>} : memref<2x10x17x32xf32, #tpu.memory_space<vmem>>, vector<2x8x1x32xf32>,
    %cst_14 = arith.constant 0.000000e+00 : f32
    %7 = vector.broadcast %cst_14 : f32 to vector<2x8x1x32xf32>
    %c0_15 = arith.constant 0 : index
    %c1_16 = arith.constant 1 : index
    %c16 = arith.constant 16 : index
    %c0_17 = arith.constant 0 : index
    %8 = vector.load %arg3[%c0_15, %c1_16, %c16, %c0_17] : memref<2x10x17x32xf32, #tpu.memory_space<vmem>>, vector<2x8x1x32xf32>
    tpu.vector_store %arg3[%c0_15, %c1_16, %c16, %c0_17], %7 {strides = array<i32>} : memref<2x10x17x32xf32, #tpu.memory_space<vmem>>, vector<2x8x1x32xf32>,
    %c0_18 = arith.constant 0 : index
    %c1_19 = arith.constant 1 : index
    %c8 = arith.constant 8 : index
    %c0_20 = arith.constant 0 : index
    %9 = vector.load %arg3[%c0_18, %c1_19, %c8, %c0_20] : memref<2x10x17x32xf32, #tpu.memory_space<vmem>>, vector<2x8x8x32xf32>
    tpu.vector_store %arg3[%c0_18, %c1_19, %c8, %c0_20], %0 {strides = array<i32>} : memref<2x10x17x32xf32, #tpu.memory_space<vmem>>, vector<2x8x8x32xf32>,
    %c0_21 = arith.constant 0 : index
    %c0_22 = arith.constant 0 : index
    %c0_23 = arith.constant 0 : index
    %10 = vector.load %arg1[%c0_21, %c0_22, %c0_23] : memref<3x3x32xf32, #tpu.memory_space<vmem>>, vector<3x3x32xf32>
    %cst_24 = arith.constant 0.000000e+00 : f32
    %11 = vector.broadcast %cst_24 : f32 to vector<2x8x8x32xf32>
    %c0_25 = arith.constant 0 : index
    %c0_26 = arith.constant 0 : index
    %c7_27 = arith.constant 7 : index
    %c0_28 = arith.constant 0 : index
    %12 = vector.load %arg3[%c0_25, %c0_26, %c7_27, %c0_28] : memref<2x10x17x32xf32, #tpu.memory_space<vmem>>, vector<2x8x8x32xf32>
    %13 = vector.extract_strided_slice %10 {offsets = [0, 0, 0], sizes = [1, 1, 32], strides = [1, 1, 1]} : vector<3x3x32xf32> to vector<1x1x32xf32>
    %14 = vector.shape_cast %13 : vector<1x1x32xf32> to vector<32xf32>
    %15 = vector.shape_cast %14 : vector<32xf32> to vector<1x1x1x32xf32>
    %16 = vector.broadcast %15 : vector<1x1x1x32xf32> to vector<2x8x8x32xf32>
    %17 = arith.mulf %12, %16 : vector<2x8x8x32xf32>
    %18 = arith.addf %11, %17 : vector<2x8x8x32xf32>
    %c0_29 = arith.constant 0 : index
    %c0_30 = arith.constant 0 : index
    %c8_31 = arith.constant 8 : index
    %c0_32 = arith.constant 0 : index
    %19 = vector.load %arg3[%c0_29, %c0_30, %c8_31, %c0_32] : memref<2x10x17x32xf32, #tpu.memory_space<vmem>>, vector<2x8x8x32xf32>
    %20 = vector.extract_strided_slice %10 {offsets = [0, 1, 0], sizes = [1, 1, 32], strides = [1, 1, 1]} : vector<3x3x32xf32> to vector<1x1x32xf32>
    %21 = vector.shape_cast %20 : vector<1x1x32xf32> to vector<32xf32>
    %22 = vector.shape_cast %21 : vector<32xf32> to vector<1x1x1x32xf32>
    %23 = vector.broadcast %22 : vector<1x1x1x32xf32> to vector<2x8x8x32xf32>
    %24 = arith.mulf %19, %23 : vector<2x8x8x32xf32>
    %25 = arith.addf %18, %24 : vector<2x8x8x32xf32>
    %c0_33 = arith.constant 0 : index
    %c0_34 = arith.constant 0 : index
    %c9_35 = arith.constant 9 : index
    %c0_36 = arith.constant 0 : index
    %26 = vector.load %arg3[%c0_33, %c0_34, %c9_35, %c0_36] : memref<2x10x17x32xf32, #tpu.memory_space<vmem>>, vector<2x8x8x32xf32>
    %27 = vector.extract_strided_slice %10 {offsets = [0, 2, 0], sizes = [1, 1, 32], strides = [1, 1, 1]} : vector<3x3x32xf32> to vector<1x1x32xf32>
    %28 = vector.shape_cast %27 : vector<1x1x32xf32> to vector<32xf32>
    %29 = vector.shape_cast %28 : vector<32xf32> to vector<1x1x1x32xf32>
    %30 = vector.broadcast %29 : vector<1x1x1x32xf32> to vector<2x8x8x32xf32>
    %31 = arith.mulf %26, %30 : vector<2x8x8x32xf32>
    %32 = arith.addf %25, %31 : vector<2x8x8x32xf32>
    %c0_37 = arith.constant 0 : index
    %c1_38 = arith.constant 1 : index
    %c7_39 = arith.constant 7 : index
    %c0_40 = arith.constant 0 : index
    %33 = vector.load %arg3[%c0_37, %c1_38, %c7_39, %c0_40] : memref<2x10x17x32xf32, #tpu.memory_space<vmem>>, vector<2x8x8x32xf32>
    %34 = vector.extract_strided_slice %10 {offsets = [1, 0, 0], sizes = [1, 1, 32], strides = [1, 1, 1]} : vector<3x3x32xf32> to vector<1x1x32xf32>
    %35 = vector.shape_cast %34 : vector<1x1x32xf32> to vector<32xf32>
    %36 = vector.shape_cast %35 : vector<32xf32> to vector<1x1x1x32xf32>
    %37 = vector.broadcast %36 : vector<1x1x1x32xf32> to vector<2x8x8x32xf32>
    %38 = arith.mulf %33, %37 : vector<2x8x8x32xf32>
    %39 = arith.addf %32, %38 : vector<2x8x8x32xf32>
    %c0_41 = arith.constant 0 : index
    %c1_42 = arith.constant 1 : index
    %c8_43 = arith.constant 8 : index
    %c0_44 = arith.constant 0 : index
    %40 = vector.load %arg3[%c0_41, %c1_42, %c8_43, %c0_44] : memref<2x10x17x32xf32, #tpu.memory_space<vmem>>, vector<2x8x8x32xf32>
    %41 = vector.extract_strided_slice %10 {offsets = [1, 1, 0], sizes = [1, 1, 32], strides = [1, 1, 1]} : vector<3x3x32xf32> to vector<1x1x32xf32>
    %42 = vector.shape_cast %41 : vector<1x1x32xf32> to vector<32xf32>
    %43 = vector.shape_cast %42 : vector<32xf32> to vector<1x1x1x32xf32>
    %44 = vector.broadcast %43 : vector<1x1x1x32xf32> to vector<2x8x8x32xf32>
    %45 = arith.mulf %40, %44 : vector<2x8x8x32xf32>
    %46 = arith.addf %39, %45 : vector<2x8x8x32xf32>
    %c0_45 = arith.constant 0 : index
    %c1_46 = arith.constant 1 : index
    %c9_47 = arith.constant 9 : index
    %c0_48 = arith.constant 0 : index
    %47 = vector.load %arg3[%c0_45, %c1_46, %c9_47, %c0_48] : memref<2x10x17x32xf32, #tpu.memory_space<vmem>>, vector<2x8x8x32xf32>
    %48 = vector.extract_strided_slice %10 {offsets = [1, 2, 0], sizes = [1, 1, 32], strides = [1, 1, 1]} : vector<3x3x32xf32> to vector<1x1x32xf32>
    %49 = vector.shape_cast %48 : vector<1x1x32xf32> to vector<32xf32>
    %50 = vector.shape_cast %49 : vector<32xf32> to vector<1x1x1x32xf32>
    %51 = vector.broadcast %50 : vector<1x1x1x32xf32> to vector<2x8x8x32xf32>
    %52 = arith.mulf %47, %51 : vector<2x8x8x32xf32>
    %53 = arith.addf %46, %52 : vector<2x8x8x32xf32>
    %c0_49 = arith.constant 0 : index
    %c2 = arith.constant 2 : index
    %c7_50 = arith.constant 7 : index
    %c0_51 = arith.constant 0 : index
    %54 = vector.load %arg3[%c0_49, %c2, %c7_50, %c0_51] : memref<2x10x17x32xf32, #tpu.memory_space<vmem>>, vector<2x8x8x32xf32>
    %55 = vector.extract_strided_slice %10 {offsets = [2, 0, 0], sizes = [1, 1, 32], strides = [1, 1, 1]} : vector<3x3x32xf32> to vector<1x1x32xf32>
    %56 = vector.shape_cast %55 : vector<1x1x32xf32> to vector<32xf32>
    %57 = vector.shape_cast %56 : vector<32xf32> to vector<1x1x1x32xf32>
    %58 = vector.broadcast %57 : vector<1x1x1x32xf32> to vector<2x8x8x32xf32>
    %59 = arith.mulf %54, %58 : vector<2x8x8x32xf32>
    %60 = arith.addf %53, %59 : vector<2x8x8x32xf32>
    %c0_52 = arith.constant 0 : index
    %c2_53 = arith.constant 2 : index
    %c8_54 = arith.constant 8 : index
    %c0_55 = arith.constant 0 : index
    %61 = vector.load %arg3[%c0_52, %c2_53, %c8_54, %c0_55] : memref<2x10x17x32xf32, #tpu.memory_space<vmem>>, vector<2x8x8x32xf32>
    %62 = vector.extract_strided_slice %10 {offsets = [2, 1, 0], sizes = [1, 1, 32], strides = [1, 1, 1]} : vector<3x3x32xf32> to vector<1x1x32xf32>
    %63 = vector.shape_cast %62 : vector<1x1x32xf32> to vector<32xf32>
    %64 = vector.shape_cast %63 : vector<32xf32> to vector<1x1x1x32xf32>
    %65 = vector.broadcast %64 : vector<1x1x1x32xf32> to vector<2x8x8x32xf32>
    %66 = arith.mulf %61, %65 : vector<2x8x8x32xf32>
    %67 = arith.addf %60, %66 : vector<2x8x8x32xf32>
    %c0_56 = arith.constant 0 : index
    %c2_57 = arith.constant 2 : index
    %c9_58 = arith.constant 9 : index
    %c0_59 = arith.constant 0 : index
    %68 = vector.load %arg3[%c0_56, %c2_57, %c9_58, %c0_59] : memref<2x10x17x32xf32, #tpu.memory_space<vmem>>, vector<2x8x8x32xf32>
    %69 = vector.extract_strided_slice %10 {offsets = [2, 2, 0], sizes = [1, 1, 32], strides = [1, 1, 1]} : vector<3x3x32xf32> to vector<1x1x32xf32>
    %70 = vector.shape_cast %69 : vector<1x1x32xf32> to vector<32xf32>
    %71 = vector.shape_cast %70 : vector<32xf32> to vector<1x1x1x32xf32>
    %72 = vector.broadcast %71 : vector<1x1x1x32xf32> to vector<2x8x8x32xf32>
    %73 = arith.mulf %68, %72 : vector<2x8x8x32xf32>
    %74 = arith.addf %67, %73 : vector<2x8x8x32xf32>
    %75 = math.absf %74 : vector<2x8x8x32xf32>
    %76 = vector.shape_cast %75 : vector<2x8x8x32xf32> to vector<1x2x8x8x32xf32>
    %cst_60 = arith.constant dense<0xFF800000> : vector<1xf32>
    %77 = vector.multi_reduction <maximumf>, %76, %cst_60 [1, 2, 3, 4] : vector<1x2x8x8x32xf32> to vector<1xf32>
    %78 = vector.shape_cast %77 : vector<1xf32> to vector<1x1x1x1x1xf32>
    %79 = vector.extract %78[0, 0, 0, 0, 0] : f32 from vector<1x1x1x1x1xf32>
    %cst_61 = arith.constant 1.000000e-30 : f32
    %80 = arith.maximumf %79, %cst_61 : f32
    %81 = vector.broadcast %80 : f32 to vector<1x1xf32>
    %82 = math.log %81 : vector<1x1xf32>
    %cst_62 = arith.constant 1.44269502 : f32
    %83 = vector.broadcast %cst_62 : f32 to vector<1x1xf32>
    %84 = arith.mulf %82, %83 : vector<1x1xf32>
    %85 = math.ceil %84 : vector<1x1xf32>
    %cst_63 = arith.constant 7.000000e+00 : f32
    %86 = vector.broadcast %cst_63 : f32 to vector<1x1xf32>
    %87 = arith.subf %85, %86 : vector<1x1xf32>
    %cst_64 = arith.constant 0.693147182 : f32
    %88 = vector.broadcast %cst_64 : f32 to vector<1x1xf32>
    %89 = arith.mulf %88, %87 : vector<1x1xf32>
    %90 = math.exp %89 : vector<1x1xf32>
    %cst_65 = arith.constant 7.000000e+00 : f32
    %91 = vector.broadcast %cst_65 : f32 to vector<1x1xf32>
    %92 = arith.subf %91, %85 : vector<1x1xf32>
    %cst_66 = arith.constant 0.693147182 : f32
    %93 = vector.broadcast %cst_66 : f32 to vector<1x1xf32>
    %94 = arith.mulf %93, %92 : vector<1x1xf32>
    %95 = math.exp %94 : vector<1x1xf32>
    %cst_67 = arith.constant -1.280000e+02 : f32
    %96 = vector.broadcast %cst_67 : f32 to vector<1x1xf32>
    %97 = arith.mulf %96, %90 : vector<1x1xf32>
    %cst_68 = arith.constant 1.270000e+02 : f32
    %98 = vector.broadcast %cst_68 : f32 to vector<1x1xf32>
    %99 = arith.mulf %98, %90 : vector<1x1xf32>
    %100 = vector.shape_cast %97 : vector<1x1xf32> to vector<1x1x1x1xf32>
    %101 = vector.broadcast %100 : vector<1x1x1x1xf32> to vector<2x8x8x32xf32>
    %102 = arith.maximumf %101, %74 : vector<2x8x8x32xf32>
    %103 = vector.shape_cast %99 : vector<1x1xf32> to vector<1x1x1x1xf32>
    %104 = vector.broadcast %103 : vector<1x1x1x1xf32> to vector<2x8x8x32xf32>
    %105 = arith.minimumf %104, %102 : vector<2x8x8x32xf32>
    %106 = vector.shape_cast %95 : vector<1x1xf32> to vector<1x1x1x1xf32>
    %107 = vector.broadcast %106 : vector<1x1x1x1xf32> to vector<2x8x8x32xf32>
    %108 = arith.mulf %105, %107 : vector<2x8x8x32xf32>
    %109 = math.roundeven %108 : vector<2x8x8x32xf32>
    %110 = vector.shape_cast %90 : vector<1x1xf32> to vector<1x1x1x1xf32>
    %111 = vector.broadcast %110 : vector<1x1x1x1xf32> to vector<2x8x8x32xf32>
    %112 = arith.mulf %109, %111 : vector<2x8x8x32xf32>
    %c0_69 = arith.constant 0 : index
    %c0_70 = arith.constant 0 : index
    %c0_71 = arith.constant 0 : index
    %c0_72 = arith.constant 0 : index
    %113 = vector.load %arg2[%c0_69, %c0_70, %c0_71, %c0_72] : memref<2x8x8x32xf32, #tpu.memory_space<vmem>>, vector<2x8x8x32xf32>
    tpu.vector_store %arg2[%c0_69, %c0_70, %c0_71, %c0_72], %112 {strides = array<i32>} : memref<2x8x8x32xf32, #tpu.memory_space<vmem>>, vector<2x8x8x32xf32>,
    return
  }
}

module attributes {stable_mosaic.version = 11 : i64} {
  func.func @_project_stage_kernel(%arg0: memref<128x32xf32, #tpu.memory_space<vmem>>, %arg1: memref<1x32xf32, #tpu.memory_space<vmem>>, %arg2: memref<1x32xf32, #tpu.memory_space<vmem>>, %arg3: memref<32x8xf32, #tpu.memory_space<vmem>>, %arg4: memref<1x8xf32, #tpu.memory_space<vmem>>, %arg5: memref<1x8xf32, #tpu.memory_space<vmem>>, %arg6: memref<128x8xf32, #tpu.memory_space<vmem>>, %arg7: memref<128x8xf32, #tpu.memory_space<vmem>>) attributes {dimension_semantics = [], scalar_prefetch = 0 : i64, scratch_operands = 0 : i64, tpu.core_type = #tpu.core_type<tc>} {
    %c0 = arith.constant 0 : index
    %c0_0 = arith.constant 0 : index
    %0 = vector.load %arg0[%c0, %c0_0] : memref<128x32xf32, #tpu.memory_space<vmem>>, vector<128x32xf32>
    %c0_1 = arith.constant 0 : index
    %c0_2 = arith.constant 0 : index
    %1 = vector.load %arg1[%c0_1, %c0_2] : memref<1x32xf32, #tpu.memory_space<vmem>>, vector<1x32xf32>
    %c0_3 = arith.constant 0 : index
    %c0_4 = arith.constant 0 : index
    %2 = vector.load %arg2[%c0_3, %c0_4] : memref<1x32xf32, #tpu.memory_space<vmem>>, vector<1x32xf32>
    %cst = arith.constant dense<0.000000e+00> : vector<32xf32>
    %3 = vector.multi_reduction <add>, %0, %cst [0] : vector<128x32xf32> to vector<32xf32>
    %4 = vector.shape_cast %3 : vector<32xf32> to vector<1x32xf32>
    %cst_5 = arith.constant 7.812500e-03 : f32
    %5 = vector.broadcast %cst_5 : f32 to vector<1x32xf32>
    %6 = arith.mulf %4, %5 : vector<1x32xf32>
    %7 = vector.broadcast %6 : vector<1x32xf32> to vector<128x32xf32>
    %8 = arith.subf %0, %7 : vector<128x32xf32>
    %9 = arith.mulf %8, %8 : vector<128x32xf32>
    %cst_6 = arith.constant dense<0.000000e+00> : vector<32xf32>
    %10 = vector.multi_reduction <add>, %9, %cst_6 [0] : vector<128x32xf32> to vector<32xf32>
    %11 = vector.shape_cast %10 : vector<32xf32> to vector<1x32xf32>
    %cst_7 = arith.constant 7.812500e-03 : f32
    %12 = vector.broadcast %cst_7 : f32 to vector<1x32xf32>
    %13 = arith.mulf %11, %12 : vector<1x32xf32>
    %cst_8 = arith.constant 9.99999974E-6 : f32
    %14 = vector.broadcast %cst_8 : f32 to vector<1x32xf32>
    %15 = arith.addf %13, %14 : vector<1x32xf32>
    %16 = math.rsqrt %15 : vector<1x32xf32>
    %17 = arith.mulf %1, %16 : vector<1x32xf32>
    %18 = vector.broadcast %17 : vector<1x32xf32> to vector<128x32xf32>
    %19 = arith.mulf %8, %18 : vector<128x32xf32>
    %20 = vector.broadcast %2 : vector<1x32xf32> to vector<128x32xf32>
    %21 = arith.addf %19, %20 : vector<128x32xf32>
    %cst_9 = arith.constant 0.000000e+00 : f32
    %cst_10 = arith.constant 6.000000e+00 : f32
    %22 = vector.broadcast %cst_9 : f32 to vector<128x32xf32>
    %23 = arith.maximumf %22, %21 : vector<128x32xf32>
    %24 = vector.broadcast %cst_10 : f32 to vector<128x32xf32>
    %25 = arith.minimumf %24, %23 : vector<128x32xf32>
    %26 = math.absf %25 : vector<128x32xf32>
    %27 = vector.shape_cast %26 : vector<128x32xf32> to vector<1x128x32xf32>
    %cst_11 = arith.constant dense<0xFF800000> : vector<1xf32>
    %28 = vector.multi_reduction <maximumf>, %27, %cst_11 [1, 2] : vector<1x128x32xf32> to vector<1xf32>
    %29 = vector.shape_cast %28 : vector<1xf32> to vector<1x1x1xf32>
    %30 = vector.extract %29[0, 0, 0] : f32 from vector<1x1x1xf32>
    %cst_12 = arith.constant 1.000000e-30 : f32
    %31 = arith.maximumf %30, %cst_12 : f32
    %32 = vector.broadcast %31 : f32 to vector<1x1xf32>
    %33 = math.log %32 : vector<1x1xf32>
    %cst_13 = arith.constant 1.44269502 : f32
    %34 = vector.broadcast %cst_13 : f32 to vector<1x1xf32>
    %35 = arith.mulf %33, %34 : vector<1x1xf32>
    %36 = math.ceil %35 : vector<1x1xf32>
    %cst_14 = arith.constant 7.000000e+00 : f32
    %37 = vector.broadcast %cst_14 : f32 to vector<1x1xf32>
    %38 = arith.subf %36, %37 : vector<1x1xf32>
    %cst_15 = arith.constant 0.693147182 : f32
    %39 = vector.broadcast %cst_15 : f32 to vector<1x1xf32>
    %40 = arith.mulf %39, %38 : vector<1x1xf32>
    %41 = math.exp %40 : vector<1x1xf32>
    %cst_16 = arith.constant 7.000000e+00 : f32
    %42 = vector.broadcast %cst_16 : f32 to vector<1x1xf32>
    %43 = arith.subf %42, %36 : vector<1x1xf32>
    %cst_17 = arith.constant 0.693147182 : f32
    %44 = vector.broadcast %cst_17 : f32 to vector<1x1xf32>
    %45 = arith.mulf %44, %43 : vector<1x1xf32>
    %46 = math.exp %45 : vector<1x1xf32>
    %cst_18 = arith.constant -1.280000e+02 : f32
    %47 = vector.broadcast %cst_18 : f32 to vector<1x1xf32>
    %48 = arith.mulf %47, %41 : vector<1x1xf32>
    %cst_19 = arith.constant 1.270000e+02 : f32
    %49 = vector.broadcast %cst_19 : f32 to vector<1x1xf32>
    %50 = arith.mulf %49, %41 : vector<1x1xf32>
    %51 = vector.broadcast %48 : vector<1x1xf32> to vector<128x32xf32>
    %52 = arith.maximumf %51, %25 : vector<128x32xf32>
    %53 = vector.broadcast %50 : vector<1x1xf32> to vector<128x32xf32>
    %54 = arith.minimumf %53, %52 : vector<128x32xf32>
    %55 = vector.broadcast %46 : vector<1x1xf32> to vector<128x32xf32>
    %56 = arith.mulf %54, %55 : vector<128x32xf32>
    %57 = math.roundeven %56 : vector<128x32xf32>
    %58 = vector.broadcast %41 : vector<1x1xf32> to vector<128x32xf32>
    %59 = arith.mulf %57, %58 : vector<128x32xf32>
    %c0_20 = arith.constant 0 : index
    %c0_21 = arith.constant 0 : index
    %60 = vector.load %arg3[%c0_20, %c0_21] : memref<32x8xf32, #tpu.memory_space<vmem>>, vector<32x8xf32>
    %61 = arith.truncf %59 : vector<128x32xf32> to vector<128x32xbf16>
    %62 = arith.truncf %60 : vector<32x8xf32> to vector<32x8xbf16>
    %cst_22 = arith.constant dense<0.000000e+00> : vector<128x8xf32>
    %63 = tpu.matmul %61, %62, %cst_22 {dimension_numbers = #tpu.dot_dimension_numbers<[1], [0], [0], [1], [0, 0, 1, 1], [], []>} : vector<128x32xbf16>, vector<32x8xbf16>, vector<128x8xf32> -> vector<128x8xf32>
    %64 = math.absf %63 : vector<128x8xf32>
    %65 = vector.shape_cast %64 : vector<128x8xf32> to vector<1x128x8xf32>
    %cst_23 = arith.constant dense<0xFF800000> : vector<1xf32>
    %66 = vector.multi_reduction <maximumf>, %65, %cst_23 [1, 2] : vector<1x128x8xf32> to vector<1xf32>
    %67 = vector.shape_cast %66 : vector<1xf32> to vector<1x1x1xf32>
    %68 = vector.extract %67[0, 0, 0] : f32 from vector<1x1x1xf32>
    %cst_24 = arith.constant 1.000000e-30 : f32
    %69 = arith.maximumf %68, %cst_24 : f32
    %70 = vector.broadcast %69 : f32 to vector<1x1xf32>
    %71 = math.log %70 : vector<1x1xf32>
    %cst_25 = arith.constant 1.44269502 : f32
    %72 = vector.broadcast %cst_25 : f32 to vector<1x1xf32>
    %73 = arith.mulf %71, %72 : vector<1x1xf32>
    %74 = math.ceil %73 : vector<1x1xf32>
    %cst_26 = arith.constant 7.000000e+00 : f32
    %75 = vector.broadcast %cst_26 : f32 to vector<1x1xf32>
    %76 = arith.subf %74, %75 : vector<1x1xf32>
    %cst_27 = arith.constant 0.693147182 : f32
    %77 = vector.broadcast %cst_27 : f32 to vector<1x1xf32>
    %78 = arith.mulf %77, %76 : vector<1x1xf32>
    %79 = math.exp %78 : vector<1x1xf32>
    %cst_28 = arith.constant 7.000000e+00 : f32
    %80 = vector.broadcast %cst_28 : f32 to vector<1x1xf32>
    %81 = arith.subf %80, %74 : vector<1x1xf32>
    %cst_29 = arith.constant 0.693147182 : f32
    %82 = vector.broadcast %cst_29 : f32 to vector<1x1xf32>
    %83 = arith.mulf %82, %81 : vector<1x1xf32>
    %84 = math.exp %83 : vector<1x1xf32>
    %cst_30 = arith.constant -1.280000e+02 : f32
    %85 = vector.broadcast %cst_30 : f32 to vector<1x1xf32>
    %86 = arith.mulf %85, %79 : vector<1x1xf32>
    %cst_31 = arith.constant 1.270000e+02 : f32
    %87 = vector.broadcast %cst_31 : f32 to vector<1x1xf32>
    %88 = arith.mulf %87, %79 : vector<1x1xf32>
    %89 = vector.broadcast %86 : vector<1x1xf32> to vector<128x8xf32>
    %90 = arith.maximumf %89, %63 : vector<128x8xf32>
    %91 = vector.broadcast %88 : vector<1x1xf32> to vector<128x8xf32>
    %92 = arith.minimumf %91, %90 : vector<128x8xf32>
    %93 = vector.broadcast %84 : vector<1x1xf32> to vector<128x8xf32>
    %94 = arith.mulf %92, %93 : vector<128x8xf32>
    %95 = math.roundeven %94 : vector<128x8xf32>
    %96 = vector.broadcast %79 : vector<1x1xf32> to vector<128x8xf32>
    %97 = arith.mulf %95, %96 : vector<128x8xf32>
    %c0_32 = arith.constant 0 : index
    %c0_33 = arith.constant 0 : index
    %98 = vector.load %arg4[%c0_32, %c0_33] : memref<1x8xf32, #tpu.memory_space<vmem>>, vector<1x8xf32>
    %c0_34 = arith.constant 0 : index
    %c0_35 = arith.constant 0 : index
    %99 = vector.load %arg5[%c0_34, %c0_35] : memref<1x8xf32, #tpu.memory_space<vmem>>, vector<1x8xf32>
    %cst_36 = arith.constant dense<0.000000e+00> : vector<8xf32>
    %100 = vector.multi_reduction <add>, %97, %cst_36 [0] : vector<128x8xf32> to vector<8xf32>
    %101 = vector.shape_cast %100 : vector<8xf32> to vector<1x8xf32>
    %cst_37 = arith.constant 7.812500e-03 : f32
    %102 = vector.broadcast %cst_37 : f32 to vector<1x8xf32>
    %103 = arith.mulf %101, %102 : vector<1x8xf32>
    %104 = vector.broadcast %103 : vector<1x8xf32> to vector<128x8xf32>
    %105 = arith.subf %97, %104 : vector<128x8xf32>
    %106 = arith.mulf %105, %105 : vector<128x8xf32>
    %cst_38 = arith.constant dense<0.000000e+00> : vector<8xf32>
    %107 = vector.multi_reduction <add>, %106, %cst_38 [0] : vector<128x8xf32> to vector<8xf32>
    %108 = vector.shape_cast %107 : vector<8xf32> to vector<1x8xf32>
    %cst_39 = arith.constant 7.812500e-03 : f32
    %109 = vector.broadcast %cst_39 : f32 to vector<1x8xf32>
    %110 = arith.mulf %108, %109 : vector<1x8xf32>
    %cst_40 = arith.constant 9.99999974E-6 : f32
    %111 = vector.broadcast %cst_40 : f32 to vector<1x8xf32>
    %112 = arith.addf %110, %111 : vector<1x8xf32>
    %113 = math.rsqrt %112 : vector<1x8xf32>
    %114 = arith.mulf %98, %113 : vector<1x8xf32>
    %115 = vector.broadcast %114 : vector<1x8xf32> to vector<128x8xf32>
    %116 = arith.mulf %105, %115 : vector<128x8xf32>
    %117 = vector.broadcast %99 : vector<1x8xf32> to vector<128x8xf32>
    %118 = arith.addf %116, %117 : vector<128x8xf32>
    %c0_41 = arith.constant 0 : index
    %c0_42 = arith.constant 0 : index
    %119 = vector.load %arg6[%c0_41, %c0_42] : memref<128x8xf32, #tpu.memory_space<vmem>>, vector<128x8xf32>
    %120 = arith.addf %118, %119 : vector<128x8xf32>
    %c0_43 = arith.constant 0 : index
    %c0_44 = arith.constant 0 : index
    %121 = vector.load %arg7[%c0_43, %c0_44] : memref<128x8xf32, #tpu.memory_space<vmem>>, vector<128x8xf32>
    tpu.vector_store %arg7[%c0_43, %c0_44], %120 {strides = array<i32>} : memref<128x8xf32, #tpu.memory_space<vmem>>, vector<128x8xf32>,
    return
  }
}

</mosaic_0001>

<bundles_post_ra>
// kernel: inverted_residual_forward.3
= control target key start
LH: loop header
LB: loop body
LE: loop exit
PB: predicated region body
PF: predicated region fallthrough
CT: control target
= control target key end

     0   :  { %vm49_vm0 = vcmask 64512   ;;  %v1968_v63 = vmov 0   ;;  %s1969_s21 = smov 1e-30   ;;  %s3686_s0 = inlined_call_operand.vmem [shape: f32[128,8], index: 0, kind: input, shape index: {}]   ;;  %s3687_s1 = inlined_call_operand.vmem [shape: f32[8,32], index: 1, kind: input, shape index: {}]   ;;  %s3688_s2 = inlined_call_operand.vmem [shape: f32[1,32], index: 2, kind: input, shape index: {}]   ;;  %s3689_s3 = inlined_call_operand.vmem [shape: f32[1,32], index: 3, kind: input, shape index: {}]   ;;  %s3690_s4 = inlined_call_operand.vmem [shape: f32[128,32], index: 4, kind: output, shape index: {}]  }
   0x1   :  { %v2005_v0 = vld [vmem:[%s3686_s0] sm:$0xff]  ;;  %v2010_v1 = vld [vmem:[%s3686_s0 + $0x8] sm:$0xff]  ;;  %v2015_v2 = vld [vmem:[%s3686_s0 + $0x10] sm:$0xff]  ;;  %1905 = vset.pattern.permute.xlu1 %v1968_v63  ;;  %1904 = vset.pattern.permute.xlu0 %v1968_v63 }
   0x2   :  { %v2020_v3 = vld [vmem:[%s3686_s0 + $0x18] sm:$0xff]  ;;  %v2025_v4 = vld [vmem:[%s3686_s0 + $0x20] sm:$0xff]  ;;  %v2030_v5 = vld [vmem:[%s3686_s0 + $0x28] sm:$0xff]  ;;  %v33_v6 = vand.u32 2147483647, %v2005_v0 }
   0x3   :  { %v2036_v7 = vld [vmem:[%s3686_s0 + $0x30] sm:$0xff]  ;;  %v2041_v8 = vld [vmem:[%s3686_s0 + $0x38] sm:$0xff]  ;;  %v2046_v9 = vld [vmem:[%s3686_s0 + $0x40] sm:$0xff]  ;;  %v34_v10 = vand.u32 2147483647, %v2010_v1 }
   0x4   :  { %v2052_v11 = vld [vmem:[%s3686_s0 + $0x48] sm:$0xff]  ;;  %v2057_v12 = vld [vmem:[%s3686_s0 + $0x50] sm:$0xff]  ;;  %v2062_v13 = vld [vmem:[%s3686_s0 + $0x58] sm:$0xff]  ;;  %v35_v14 = vand.u32 2147483647, %v2015_v2  ;;  %v50_v15 = vsel %vm49_vm0, %v33_v6, -inf }
   0x5   :  { %v2069_v16 = vld [vmem:[%s3686_s0 + $0x60] sm:$0xff]  ;;  %v2074_v17 = vld [vmem:[%s3686_s0 + $0x68] sm:$0xff]  ;;  %v2079_v18 = vld [vmem:[%s3686_s0 + $0x70] sm:$0xff]  ;;  %v36_v19 = vand.u32 2147483647, %v2020_v3  ;;  %v51_v20 = vsel %vm49_vm0, %v34_v10, -inf }
   0x6   :  { %v2086_v21 = vld [vmem:[%s3686_s0 + $0x78] sm:$0xff]  ;;  %v37_v22 = vand.u32 2147483647, %v2025_v4  ;;  %v38_v23 = vand.u32 2147483647, %v2030_v5  ;;  %v52_v24 = vsel %vm49_vm0, %v35_v14, -inf }
   0x7   :  { %v39_v25 = vand.u32 2147483647, %v2036_v7  ;;  %v40_v26 = vand.u32 2147483647, %v2041_v8  ;;  %v41_v27 = vand.u32 2147483647, %v2046_v9 }
   0x8   :  { %v42_v28 = vand.u32 2147483647, %v2052_v11  ;;  %v43_v29 = vand.u32 2147483647, %v2057_v12  ;;  %v44_v30 = vand.u32 2147483647, %v2062_v13 }
   0x9   :  { %v45_v31 = vand.u32 2147483647, %v2069_v16  ;;  %v46_v32 = vand.u32 2147483647, %v2074_v17  ;;  %v47_v33 = vand.u32 2147483647, %v2079_v18 }
   0xa   :  { %v48_v34 = vand.u32 2147483647, %v2086_v21  ;;  %v53_v35 = vsel %vm49_vm0, %v36_v19, -inf  ;;  %v54_v36 = vsel %vm49_vm0, %v37_v22, -inf  ;;  %v56_v37 = vsel %vm49_vm0, %v38_v23, -inf }
   0xb   :  { %v55_v38 = vmax.f32 %v50_v15, %v54_v36  ;;  %v57_v39 = vmax.f32 %v51_v20, %v56_v37  ;;  %v58_v40 = vsel %vm49_vm0, %v39_v25, -inf  ;;  %v60_v41 = vsel %vm49_vm0, %v40_v26, -inf }
   0xc   :  { %v59_v42 = vmax.f32 %v52_v24, %v58_v40  ;;  %v61_v43 = vmax.f32 %v53_v35, %v60_v41  ;;  %v62_v44 = vsel %vm49_vm0, %v41_v27, -inf  ;;  %v64_v45 = vsel %vm49_vm0, %v42_v28, -inf }
   0xd   :  { %v63_v46 = vmax.f32 %v55_v38, %v62_v44  ;;  %v65_v47 = vmax.f32 %v57_v39, %v64_v45  ;;  %v66_v48 = vsel %vm49_vm0, %v43_v29, -inf  ;;  %v68_v49 = vsel %vm49_vm0, %v44_v30, -inf }
   0xe   :  { %v67_v50 = vmax.f32 %v59_v42, %v66_v48  ;;  %v69_v51 = vmax.f32 %v61_v43, %v68_v49  ;;  %v70_v52 = vsel %vm49_vm0, %v45_v31, -inf  ;;  %v72_v53 = vsel %vm49_vm0, %v46_v32, -inf }
   0xf   :  { %v71_v54 = vmax.f32 %v63_v46, %v70_v52  ;;  %v73_v55 = vmax.f32 %v65_v47, %v72_v53  ;;  %v74_v56 = vsel %vm49_vm0, %v47_v33, -inf  ;;  %v76_v57 = vsel %vm49_vm0, %v48_v34, -inf }
  0x10   :  { %v75_v58 = vmax.f32 %v67_v50, %v74_v56  ;;  %v77_v59 = vmax.f32 %v69_v51, %v76_v57 }
  0x11   :  { %v78_v60 = vmax.f32 %v71_v54, %v73_v55 }
  0x12   :  { %v79_v61 = vmax.f32 %v75_v58, %v77_v59 }
  0x14   :  { %v80_v62 = vmax.f32 %v78_v60, %v79_v61 }
  0x16   :  { %81 = vmax.xlane.f32.xlu0 %v80_v62 }
  0x9f   :  { %v82_v6 = vpop.xlane.xlu0 %81 }
  0xa0   :  { %v83_v10 = vrot.slane %v82_v6, 4 }
  0xa2   :  { %v84_v14 = vmax.f32 %v82_v6, %v83_v10 }
  0xa4   :  { %v85_v15 = vrot.slane %v84_v14, 2 }
  0xa6   :  { %v86_v19 = vmax.f32 %v84_v14, %v85_v15 }
  0xa8   :  { %v87_v20 = vrot.slane %v86_v19, 1 }
  0xaa   :  { %v88_v22 = vmax.f32 %v86_v19, %v87_v20 }
  0xac   :  { %1505 = vpush %v88_v22 }
  0xdd   :  { %s1506_s0 = spop %1505 }
  0xde   :  { %s90_s22 = smax.f32 %s1969_s21, %s1506_s0 }
  0xdf   :  { %v91_v23 = vstv %s90_s22 }
  0xe0   :  { %1948 = vlog2.f32 %v91_v23 }
  0xed   :  { %v1949_v24 = vpop.eup %1948 }
  0xee   :  { %v93_v25 = vmul.f32 0.6931472, %v1949_v24 }
  0xf0   :  { %v94_v26 = vmul.f32 1.442695, %v93_v25 }
  0xf2   :  { %v95_v27 = vceil.f32 %v94_v26 }
  0xf4   :  { %v1501_v28 = vadd.f32 -7.0, %v95_v27  ;;  %v100_v29 = vsub.f32 7.0, %v95_v27 }
  0xf6   :  { %v97_v30 = vmul.f32 0.6931472, %v1501_v28  ;;  %v101_v32 = vmul.f32 0.6931472, %v100_v29 }
  0xf8   :  { %v98_v31 = vmul.f32 1.442695, %v97_v30  ;;  %v102_v33 = vmul.f32 1.442695, %v101_v32 }
  0xfa   :  { %1950 = vpow2.f32 %v98_v31 }
  0xfb   :  { %1952 = vpow2.f32 %v102_v33 }
 0x107   :  { %v2117_v34 = vpop.eup %1950 }
 0x108   :  { %v2120_v35 = vmul.f32 -128.0, %v2117_v34  ;;  %v2123_v36 = vmul.f32 127.0, %v2117_v34  ;;  %v2145_v45 = vpop.eup %1952 }
 0x10a   :  { %v107_v37 = vmax.f32 %v2120_v35, %v2010_v1  ;;  %v106_v38 = vmax.f32 %v2120_v35, %v2005_v0  ;;  %v108_v39 = vmax.f32 %v2120_v35, %v2015_v2  ;;  %v111_v40 = vmax.f32 %v2120_v35, %v2030_v5 }
 0x10b   :  { %v109_v41 = vmax.f32 %v2120_v35, %v2020_v3  ;;  %v114_v42 = vmax.f32 %v2120_v35, %v2046_v9  ;;  %v110_v43 = vmax.f32 %v2120_v35, %v2025_v4  ;;  %v117_v1 = vmax.f32 %v2120_v35, %v2062_v13 }
 0x10c   :  { %v123_v0 = vmin.f32 %v2123_v36, %v107_v37  ;;  %v122_v44 = vmin.f32 %v2123_v36, %v106_v38  ;;  %v124_v2 = vmin.f32 %v2123_v36, %v108_v39  ;;  %v127_v5 = vmin.f32 %v2123_v36, %v111_v40 }
 0x10d   :  { %v125_v3 = vmin.f32 %v2123_v36, %v109_v41  ;;  %v130_v9 = vmin.f32 %v2123_v36, %v114_v42  ;;  %v126_v46 = vmin.f32 %v2123_v36, %v110_v43  ;;  %v133_v48 = vmin.f32 %v2123_v36, %v117_v1 }
 0x10e   :  { %v139_v4 = vmul.f32 %v2145_v45, %v123_v0  ;;  %v138_v13 = vmul.f32 %v2145_v45, %v122_v44  ;;  %v140_v47 = vmul.f32 %v2145_v45, %v124_v2  ;;  %v2155_v49 = vmul.f32 %v2145_v45, %v127_v5 }
 0x10f   :  { %v2158_v50 = vmul.f32 %v2145_v45, %v125_v3  ;;  %v2161_v54 = vmul.f32 %v2145_v45, %v130_v9  ;;  %v2164_v58 = vmul.f32 %v2145_v45, %v126_v46  ;;  %v2167_v62 = vmul.f32 %v2145_v45, %v133_v48 }
 0x110   :  { %v1515_v51 = vand.u32 2147483647, %v139_v4  ;;  %v1517_v52 = vcvt.f32.s32 %v139_v4  ;;  %v1507_v53 = vand.u32 2147483647, %v138_v13  ;;  %v1509_v55 = vcvt.f32.s32 %v138_v13 }
 0x111   :  { %v1523_v56 = vand.u32 2147483647, %v140_v47  ;;  %v1525_v57 = vcvt.f32.s32 %v140_v47  ;;  %v1520_v60 = vand.u32 2147483648, %v139_v4  ;;  %v1512_v61 = vand.u32 2147483648, %v138_v13 }
 0x112   :  { %v1518_v59 = vcvt.s32.f32 %v1517_v52  ;;  %vm2169_vm1 = vcmp.lt.f32.partialorder %v1515_v51, 8388608.0  ;;  %vm2173_vm2 = vcmp.lt.f32.partialorder %v1507_v53, 8388608.0  ;;  %v1510_v14 = vcvt.s32.f32 %v1509_v55 }
 0x113   :  { %v1526_v15 = vcvt.s32.f32 %v1525_v57  ;;  %vm2177_vm3 = vcmp.lt.f32.partialorder %v1523_v56, 8388608.0  ;;  %v1528_v22 = vand.u32 2147483648, %v140_v47  ;;  %v1549_v23 = vcvt.f32.s32 %v2155_v49 }
 0x114   :  { %v1519_v19 = vand.u32 2147483647, %v1518_v59  ;;  %v1511_v24 = vand.u32 2147483647, %v1510_v14  ;;  %v1547_v26 = vand.u32 2147483647, %v2155_v49  ;;  %v1533_v27 = vcvt.f32.s32 %v2158_v50 }
 0x115   :  { %v1527_v25 = vand.u32 2147483647, %v1526_v15  ;;  %v1550_v29 = vcvt.s32.f32 %v1549_v23  ;;  %v1552_v30 = vand.u32 2147483648, %v2155_v49  ;;  %v1531_v31 = vand.u32 2147483647, %v2158_v50 }
 0x116   :  { %v1521_v28 = vor.u32 %v1520_v60, %v1519_v19  ;;  %v1513_v32 = vor.u32 %v1512_v61, %v1511_v24  ;;  %v1534_v37 = vcvt.s32.f32 %v1533_v27  ;;  %v1536_v38 = vand.u32 2147483648, %v2158_v50 }
 0x117   :  { %v1529_v33 = vor.u32 %v1528_v22, %v1527_v25  ;;  %v1551_v40 = vand.u32 2147483647, %v1550_v29  ;;  %v1571_v41 = vand.u32 2147483647, %v2161_v54  ;;  %v1573_v42 = vcvt.f32.s32 %v2161_v54 }
 0x118   :  { %v1522_v39 = vsel %vm2169_vm1, %v1521_v28, %v139_v4  ;;  %v1514_v1 = vsel %vm2173_vm2, %v1513_v32, %v138_v13  ;;  %v1535_v44 = vand.u32 2147483647, %v1534_v37  ;;  %vm2201_vm4 = vcmp.lt.f32.partialorder %v1547_v26, 8388608.0 }
 0x119   :  { %v2192_v43 = vmul.f32 %v2117_v34, %v1522_v39  ;;  %v1530_v0 = vsel %vm2177_vm3, %v1529_v33, %v140_v47  ;;  %v2199_v2 = vmul.f32 %v2117_v34, %v1514_v1  ;;  %v1553_v3 = vor.u32 %v1552_v30, %v1551_v40 }
 0x11a   :  { %vm2206_vm5 = vcmp.lt.f32.partialorder %v1531_v31, 8388608.0  ;;  %v1537_v46 = vor.u32 %v1536_v38, %v1535_v44  ;;  %v1574_v4 = vcvt.s32.f32 %v1573_v42  ;;  %v1541_v13 = vcvt.f32.s32 %v2164_v58 }
 0x11b   :  { %194 = vperm.xlu1 %1905, %v2192_v43   ;;  %189 = vperm.xlu0 %1904, %v2199_v2   ;;  %v2213_v47 = vmul.f32 %v2117_v34, %v1530_v0  ;;  %v1554_v48 = vsel %vm2201_vm4, %v1553_v3, %v2155_v49  ;;  %v1576_v51 = vand.u32 2147483648, %v2161_v54  ;;  %v1597_v52 = vcvt.f32.s32 %v2167_v62 }
 0x11c   :  { %vm2220_vm6 = vcmp.lt.f32.partialorder %v1571_v41, 8388608.0  ;;  %v1575_v55 = vand.u32 2147483647, %v1574_v4  ;;  %v1539_v56 = vand.u32 2147483647, %v2164_v58  ;;  %v1544_v57 = vand.u32 2147483648, %v2164_v58 }
 0x11d   :  { %v1538_v59 = vsel %vm2206_vm5, %v1537_v46, %v2158_v50  ;;  %v1542_v60 = vcvt.s32.f32 %v1541_v13  ;;  %v1595_v49 = vand.u32 2147483647, %v2167_v62  ;;  %v1598_v61 = vcvt.s32.f32 %v1597_v52 }
 0x11e   :  { %v2232_v6 = vmul.f32 %v2117_v34, %v1554_v48  ;;  %v1577_v10 = vor.u32 %v1576_v51, %v1575_v55  ;;  %v115_v14 = vmax.f32 %v2120_v35, %v2052_v11  ;;  %v112_v15 = vmax.f32 %v2120_v35, %v2036_v7 }
 0x11f   :  { %199 = vperm.xlu1 %1905, %v2213_v47   ;;  %v1970_v19 = vmov 1   ;;  %v1543_v50 = vand.u32 2147483647, %v1542_v60  ;;  %v1599_v20 = vand.u32 2147483647, %v1598_v61  ;;  %v1600_v22 = vand.u32 2147483648, %v2167_v62 }
 0x120   :  { %1907 = vset.pattern.permute.xlu0 %v1970_v19  ;;  %v113_v23 = vmax.f32 %v2120_v35, %v2041_v8  ;;  %v2244_v24 = vmul.f32 %v2117_v34, %v1538_v59  ;;  %v1578_v11 = vsel %vm2220_vm6, %v1577_v10, %v2161_v54  ;;  %v131_v7 = vmin.f32 %v2123_v36, %v115_v14 }
 0x121   :  { %308 = vperm.xlu0 %1907, %v2232_v6   ;;  %v128_v25 = vmin.f32 %v2123_v36, %v112_v15  ;;  %v1545_v26 = vor.u32 %v1544_v57, %v1543_v50  ;;  %v1601_v27 = vor.u32 %v1600_v22, %v1599_v20  ;;  %vm1540_vm7 = vcmp.lt.f32.partialorder %v1539_v56, 8388608.0 }
 0x122   :  { %v129_v28 = vmin.f32 %v2123_v36, %v113_v23  ;;  %vm2253_vm8 = vcmp.lt.f32.partialorder %v1595_v49, 8388608.0  ;;  %v147_v29 = vmul.f32 %v2145_v45, %v131_v7  ;;  %v2260_v54 = vmul.f32 %v2117_v34, %v1578_v11 }
 0x123   :  { %204 = vperm.xlu1 %1905, %v2244_v24   ;;  %v144_v30 = vmul.f32 %v2145_v45, %v128_v25  ;;  %v1546_v31 = vsel %vm1540_vm7, %v1545_v26, %v2164_v58  ;;  %v119_v33 = vmax.f32 %v2120_v35, %v2074_v17  ;;  %v1602_v38 = vsel %vm2253_vm8, %v1601_v27, %v2167_v62 }
 0x124   :  { %v145_v32 = vmul.f32 %v2145_v45, %v129_v28  ;;  %v2268_v37 = vmul.f32 %v2117_v34, %v1546_v31  ;;  %v1581_v39 = vcvt.f32.s32 %v147_v29  ;;  %v2276_v42 = vmul.f32 %v2117_v34, %v1602_v38 }
 0x125   :  { %1908 = vset.pattern.permute.xlu0 %v1968_v63  ;;  %v1557_v40 = vcvt.f32.s32 %v144_v30  ;;  %v1579_v17 = vand.u32 2147483647, %v147_v29  ;;  %v135_v0 = vmin.f32 %v2123_v36, %v119_v33  ;;  %v1584_v5 = vand.u32 2147483648, %v147_v29 }
 0x126   :  { %229 = vperm.xlu0 %1908, %v2260_v54   ;;  %v1582_v58 = vcvt.s32.f32 %v1581_v39  ;;  %v1565_v41 = vcvt.f32.s32 %v145_v32  ;;  %v1555_v3 = vand.u32 2147483647, %v144_v30  ;;  %v1560_v46 = vand.u32 2147483648, %v144_v30 }
 0x127   :  { %209 = vperm.xlu1 %1905, %v2268_v37   ;;  %v1558_v1 = vcvt.s32.f32 %v1557_v40  ;;  %v118_v4 = vmax.f32 %v2120_v35, %v2069_v16  ;;  %v121_v13 = vmax.f32 %v2120_v35, %v2086_v21  ;;  %v1563_v51 = vand.u32 2147483647, %v145_v32 }
 0x128   :  { %v1583_v44 = vand.u32 2147483647, %v1582_v58  ;;  %v1566_v9 = vcvt.s32.f32 %v1565_v41  ;;  %v1568_v53 = vand.u32 2147483648, %v145_v32  ;;  %vm1580_vm9 = vcmp.lt.f32.partialorder %v1579_v17, 8388608.0 }
 0x129   :  { %v1559_v62 = vand.u32 2147483647, %v1558_v1  ;;  %v2286_v56 = vmul.f32 %v2145_v45, %v135_v0  ;;  %vm1556_vm10 = vcmp.lt.f32.partialorder %v1555_v3, 8388608.0  ;;  %v134_v60 = vmin.f32 %v2123_v36, %v118_v4 }
 0x12a   :  { %244 = vperm.xlu0 %1908, %v2276_v42   ;;  %v1585_v48 = vor.u32 %v1584_v5, %v1583_v44  ;;  %v1567_v52 = vand.u32 2147483647, %v1566_v9  ;;  %v137_v49 = vmin.f32 %v2123_v36, %v121_v13  ;;  %vm1564_vm11 = vcmp.lt.f32.partialorder %v1563_v51, 8388608.0 }
 0x12b   :  { %214 = vperm.xlu1 %1905, %v2232_v6   ;;  %v1561_v55 = vor.u32 %v1560_v46, %v1559_v62  ;;  %v116_v10 = vmax.f32 %v2120_v35, %v2057_v12  ;;  %v1613_v15 = vcvt.f32.s32 %v2286_v56  ;;  %v120_v20 = vmax.f32 %v2120_v35, %v2079_v18 }
 0x12c   :  { %v1586_v57 = vsel %vm1580_vm9, %v1585_v48, %v147_v29  ;;  %v1569_v59 = vor.u32 %v1568_v53, %v1567_v52  ;;  %v153_v50 = vmul.f32 %v2145_v45, %v137_v49  ;;  %v2307_v23 = vmul.f32 %v2145_v45, %v134_v60 }
 0x12d   :  { %v2290_v16 = vmul.f32 %v2117_v34, %v1586_v57  ;;  %v1562_v21 = vsel %vm1556_vm10, %v1561_v55, %v144_v30  ;;  %v132_v22 = vmin.f32 %v2123_v36, %v116_v10  ;;  %v136_v25 = vmin.f32 %v2123_v36, %v120_v20 }
 0x12e   :  { %1911 = vset.pattern.permute.xlu0 %v1970_v19  ;;  %v2295_v61 = vmul.f32 %v2117_v34, %v1562_v21  ;;  %v1570_v14 = vsel %vm1564_vm11, %v1569_v59, %v145_v32  ;;  %v1629_v11 = vcvt.f32.s32 %v153_v50  ;;  %v1971_v26 = vmov 2  }
 0x12f   :  { %324 = vperm.xlu0 %1911, %v2290_v16   ;;  %v2310_v12 = vmul.f32 %v2117_v34, %v1570_v14  ;;  %v148_v7 = vmul.f32 %v2145_v45, %v132_v22  ;;  %v1614_v27 = vcvt.s32.f32 %v1613_v15  ;;  %v1627_v35 = vand.u32 2147483647, %v153_v50 }
 0x130   :  { %219 = vperm.xlu1 %1905, %v2295_v61   ;;  %v1630_v18 = vcvt.s32.f32 %v1629_v11  ;;  %v152_v8 = vmul.f32 %v2145_v45, %v136_v25  ;;  %v1605_v29 = vcvt.f32.s32 %v2307_v23  ;;  %v1632_v31 = vand.u32 2147483648, %v153_v50 }
 0x131   :  { %v1589_v28 = vcvt.f32.s32 %v148_v7  ;;  %v1615_v36 = vand.u32 2147483647, %v1614_v27  ;;  %v1587_v39 = vand.u32 2147483647, %v148_v7  ;;  %vm1628_vm12 = vcmp.lt.f32.partialorder %v1627_v35, 8388608.0 }
 0x132   :  { %v1631_v30 = vand.u32 2147483647, %v1630_v18  ;;  %v1621_v33 = vcvt.f32.s32 %v152_v8  ;;  %v1592_v58 = vand.u32 2147483648, %v148_v7  ;;  %v1616_v45 = vand.u32 2147483648, %v2286_v56 }
 0x133   :  { %1912 = vset.pattern.permute.xlu0 %v1971_v26  ;;  %v1590_v32 = vcvt.s32.f32 %v1589_v28  ;;  %v1606_v17 = vcvt.s32.f32 %v1605_v29  ;;  %v1619_v0 = vand.u32 2147483647, %v152_v8  ;;  %v1624_v9 = vand.u32 2147483648, %v152_v8 }
 0x134   :  { %224 = vperm.xlu1 %1905, %v2310_v12   ;;  %388 = vperm.xlu0 %1912, %v2199_v2   ;;  %v1633_v38 = vor.u32 %v1632_v31, %v1631_v30  ;;  %v1622_v41 = vcvt.s32.f32 %v1621_v33  ;;  %v1611_v62 = vand.u32 2147483647, %v2286_v56  ;;  %vm1588_vm13 = vcmp.lt.f32.partialorder %v1587_v39, 8388608.0 }
 0x135   :  { %v1591_v40 = vand.u32 2147483647, %v1590_v32  ;;  %v1617_v46 = vor.u32 %v1616_v45, %v1615_v36  ;;  %v1607_v48 = vand.u32 2147483647, %v1606_v17  ;;  %vm1620_vm14 = vcmp.lt.f32.partialorder %v1619_v0, 8388608.0 }
 0x136   :  { %v1634_v1 = vsel %vm1628_vm12, %v1633_v38, %v153_v50  ;;  %v1623_v3 = vand.u32 2147483647, %v1622_v41  ;;  %vm1612_vm15 = vcmp.lt.f32.partialorder %v1611_v62, 8388608.0  ;;  %v1608_v53 = vand.u32 2147483648, %v2307_v23 }
 0x137   :  { %v2324_v44 = vmul.f32 %v2117_v34, %v1634_v1  ;;  %v1593_v5 = vor.u32 %v1592_v58, %v1591_v40  ;;  %v1618_v57 = vsel %vm1612_vm15, %v1617_v46, %v2286_v56  ;;  %v1603_v59 = vand.u32 2147483647, %v2307_v23 }
 0x138   :  { %1906 = vset.pattern.permute.xlu1 %v1970_v19  ;;  %400 = vperm.xlu0 %1912, %v2244_v24   ;;  %v1625_v13 = vor.u32 %v1624_v9, %v1623_v3  ;;  %v1609_v21 = vor.u32 %v1608_v53, %v1607_v48  ;;  %v2341_v60 = vmul.f32 %v2117_v34, %v1618_v57  ;;  %v1973_v56 = vmov 4  }
 0x139   :  { %288 = vperm.xlu1 %1906, %v2199_v2   ;;  %v1594_v4 = vsel %vm1588_vm13, %v1593_v5, %v148_v7  ;;  %vm1604_vm0 = vcmp.lt.f32.partialorder %v1603_v59, 8388608.0  ;;  %v267_v7 = vlaneseq  ;;  %v3694_v33 = vmov 6  }
 0x13a   :  { %v2330_v51 = vmul.f32 %v2117_v34, %v1594_v4  ;;  %v1626_v52 = vsel %vm1620_vm14, %v1625_v13, %v152_v8  ;;  %v1610_v49 = vsel %vm1604_vm0, %v1609_v21, %v2307_v23  ;;  %v2437_v8 = vld [vmem:[%s3687_s1] sm:$0xff]  ;;  %vm1003_vm1 = vcmask 261120  }
 0x13b   :  { %v2334_v55 = vmul.f32 %v2117_v34, %v1626_v52  ;;  %v2348_v10 = vmul.f32 %v2117_v34, %v1610_v49  ;;  %v1972_v34 = vmov 3   ;;  %v2425_v27 = vshrl.u32 %v267_v7, 7 }
 0x13c   :  { %408 = vperm.xlu0 %1912, %v2232_v6  }
 0x13d   :  { %292 = vperm.xlu1 %1906, %v2192_v43   ;;  %v3691_v28 = vsub.s32 0, %v2425_v27  ;;  %v353_v29 = vsub.s32 1, %v2425_v27  ;;  %v453_v31 = vsub.s32 2, %v2425_v27 }
 0x13f   :  { %v2448_v36 = vrot.slane %v2437_v8, %v3691_v28  ;;  %v2453_v38 = vrot.slane %v2437_v8, %v353_v29  ;;  %v2456_v39 = vrot.slane %v2437_v8, %v453_v31 }
 0x140   :  { %416 = vperm.xlu0 %1912, %v2310_v12  }
 0x141   :  { %296 = vperm.xlu1 %1906, %v2213_v47  }
 0x144   :  { %1915 = vset.pattern.permute.xlu0 %v1968_v63 }
 0x145   :  { %300 = vperm.xlu1 %1906, %v2244_v24   ;;  %254 = vperm.xlu0 %1915, %v2341_v60  }
 0x149   :  { %304 = vperm.xlu1 %1906, %v2268_v37   ;;  %1916 = vset.pattern.permute.xlu0 %v1970_v19 }
 0x14a   :  { %336 = vperm.xlu0 %1916, %v2348_v10  }
 0x14d   :  { %312 = vperm.xlu1 %1906, %v2295_v61  }
 0x14e   :  { %348 = vperm.xlu0 %1916, %v2324_v44  }
 0x151   :  { %316 = vperm.xlu1 %1906, %v2310_v12  }
 0x152   :  { %1919 = vset.pattern.permute.xlu0 %v1971_v26 }
 0x153   :  { %424 = vperm.xlu0 %1919, %v2290_v16  }
 0x155   :  { %1909 = vset.pattern.permute.xlu1 %v1968_v63 }
 0x156   :  { %234 = vperm.xlu1 %1909, %v2290_v16  }
 0x157   :  { %1920 = vset.pattern.permute.xlu0 %v1972_v34 }
 0x158   :  { %488 = vperm.xlu0 %1920, %v2199_v2  }
 0x15a   :  { %239 = vperm.xlu1 %1909, %v2330_v51  }
 0x15c   :  { %500 = vperm.xlu0 %1920, %v2244_v24  }
 0x15e   :  { %1910 = vset.pattern.permute.xlu1 %v1970_v19 }
 0x15f   :  { %320 = vperm.xlu1 %1910, %v2260_v54  }
 0x160   :  { %508 = vperm.xlu0 %1920, %v2232_v6  }
 0x163   :  { %328 = vperm.xlu1 %1910, %v2330_v51  }
 0x164   :  { %516 = vperm.xlu0 %1920, %v2310_v12  }
 0x167   :  { %332 = vperm.xlu1 %1910, %v2276_v42  }
 0x168   :  { %1923 = vset.pattern.permute.xlu0 %v1971_v26 }
 0x169   :  { %440 = vperm.xlu0 %1923, %v2341_v60  }
 0x16b   :  { %1913 = vset.pattern.permute.xlu1 %v1971_v26 }
 0x16c   :  { %392 = vperm.xlu1 %1913, %v2192_v43  }
 0x16d   :  { %1924 = vset.pattern.permute.xlu0 %v1972_v34 }
 0x16e   :  { %520 = vperm.xlu0 %1924, %v2260_v54  }
 0x170   :  { %396 = vperm.xlu1 %1913, %v2213_v47  }
 0x172   :  { %532 = vperm.xlu0 %1924, %v2276_v42  }
 0x174   :  { %404 = vperm.xlu1 %1913, %v2268_v37  }
 0x176   :  { %1927 = vset.pattern.permute.xlu0 %v1973_v56 }
 0x177   :  { %592 = vperm.xlu0 %1927, %v2192_v43  }
 0x178   :  { %412 = vperm.xlu1 %1913, %v2295_v61  }
 0x17b   :  { %604 = vperm.xlu0 %1927, %v2268_v37  }
 0x17c   :  { %1914 = vset.pattern.permute.xlu1 %v1968_v63  ;;  %v3696_v63 = vmov 5  }
 0x17d   :  { %249 = vperm.xlu1 %1914, %v2348_v10  }
 0x17f   :  { %612 = vperm.xlu0 %1927, %v2295_v61  }
 0x181   :  { %259 = vperm.xlu1 %1914, %v2334_v55  }
 0x183   :  { %1928 = vset.pattern.permute.xlu0 %v1972_v34 }
 0x184   :  { %536 = vperm.xlu0 %1928, %v2348_v10  }
 0x185   :  { %264 = vperm.xlu1 %1914, %v2324_v44  }
 0x188   :  { %548 = vperm.xlu0 %1928, %v2324_v44  }
 0x189   :  { %1917 = vset.pattern.permute.xlu1 %v1970_v19 }
 0x18a   :  { %340 = vperm.xlu1 %1917, %v2341_v60  }
 0x18c   :  { %1931 = vset.pattern.permute.xlu0 %v1973_v56 }
 0x18d   :  { %624 = vperm.xlu0 %1931, %v2290_v16  }
 0x18e   :  { %344 = vperm.xlu1 %1917, %v2334_v55  }
 0x191   :  { %1932 = vset.pattern.permute.xlu0 %v3696_v63 }
 0x192   :  { %1918 = vset.pattern.permute.xlu1 %v1971_v26  ;;  %688 = vperm.xlu0 %1932, %v2199_v2  }
 0x193   :  { %420 = vperm.xlu1 %1918, %v2260_v54  }
 0x196   :  { %v2400_v14 = vpop.permute.xlu1 %194  ;;  %700 = vperm.xlu0 %1932, %v2244_v24   ;;  %v190_v19 = vpop.permute.xlu0 %189 }
 0x197   :  { %428 = vperm.xlu1 %1918, %v2330_v51   ;;  %v271_v41 = vmul.f32 %v2448_v36, %v190_v19 }
 0x19a   :  { %v2404_v15 = vpop.permute.xlu1 %199  ;;  %708 = vperm.xlu0 %1932, %v2232_v6  }
 0x19b   :  { %432 = vperm.xlu1 %1918, %v2276_v42  }
 0x19c   :  { %v309_v50 = vpop.permute.xlu0 %308 }
 0x19d   :  { %v360_v17 = vmul.f32 %v2453_v38, %v309_v50  ;;  %v553_v50 = vsub.s32 3, %v2425_v27 }
 0x19e   :  { %v2408_v20 = vpop.permute.xlu1 %204  ;;  %716 = vperm.xlu0 %1932, %v2310_v12  }
 0x19f   :  { %1921 = vset.pattern.permute.xlu1 %v1972_v34  ;;  %v2500_v31 = vrot.slane %v2437_v8, %v553_v50 }
 0x1a0   :  { %492 = vperm.xlu1 %1921, %v2192_v43  }
 0x1a1   :  { %v2413_v22 = vpop.permute.xlu0 %229 }
 0x1a2   :  { %v2415_v23 = vpop.permute.xlu1 %209  ;;  %1935 = vset.pattern.permute.xlu0 %v1973_v56  ;;  %v279_v28 = vmul.f32 %v2448_v36, %v2413_v22 }
 0x1a3   :  { %640 = vperm.xlu0 %1935, %v2341_v60  }
 0x1a4   :  { %496 = vperm.xlu1 %1921, %v2213_v47  }
 0x1a5   :  { %v2420_v11 = vpop.permute.xlu0 %244 }
 0x1a6   :  { %v215_v25 = vpop.permute.xlu1 %214  ;;  %v282_v22 = vmul.f32 %v2448_v36, %v2420_v11 }
 0x1a7   :  { %1936 = vset.pattern.permute.xlu0 %v3696_v63 }
 0x1a8   :  { %504 = vperm.xlu1 %1921, %v2268_v37   ;;  %720 = vperm.xlu0 %1936, %v2260_v54  }
 0x1aa   :  { %v2427_v18 = vpop.permute.xlu0 %324 }
 0x1ab   :  { %v2429_v35 = vpop.permute.xlu1 %219 }
 0x1ac   :  { %512 = vperm.xlu1 %1921, %v2295_v61   ;;  %732 = vperm.xlu0 %1936, %v2276_v42  }
 0x1af   :  { %v2440_v30 = vpop.permute.xlu1 %224  ;;  %v389_v32 = vpop.permute.xlu0 %388 }
 0x1b0   :  { %1922 = vset.pattern.permute.xlu1 %v1971_v26  ;;  %1939 = vset.pattern.permute.xlu0 %v3694_v33  ;;  %v276_v26 = vmul.f32 %v2448_v36, %v215_v25  ;;  %v455_v1 = vmul.f32 %v2456_v39, %v389_v32  ;;  %v3692_v25 = vmov 7  }
 0x1b1   :  { %436 = vperm.xlu1 %1922, %v2348_v10   ;;  %792 = vperm.xlu0 %1939, %v2192_v43  }
 0x1b2   :  { %v376_v3 = vadd.f32 %v360_v17, %v276_v26  ;;  %v274_v26 = vmul.f32 %v2448_v36, %v2408_v20 }
 0x1b3   :  { %v401_v40 = vpop.permute.xlu0 %400 }
 0x1b4   :  { %v289_v58 = vpop.permute.xlu1 %288  ;;  %v458_v20 = vmul.f32 %v2456_v39, %v401_v40 }
 0x1b5   :  { %v355_v45 = vmul.f32 %v2453_v38, %v289_v58  ;;  %444 = vperm.xlu1 %1922, %v2334_v55   ;;  %804 = vperm.xlu0 %1939, %v2268_v37   ;;  %v364_v58 = vmul.f32 %v2453_v38, %v2427_v18 }
 0x1b7   :  { %v371_v0 = vadd.f32 %v355_v45, %v271_v41  ;;  %v409_v5 = vpop.permute.xlu0 %408 }
 0x1b8   :  { %v460_v9 = vmul.f32 %v2456_v39, %v409_v5  ;;  %v2466_v62 = vpop.permute.xlu1 %292 }
 0x1b9   :  { %448 = vperm.xlu1 %1922, %v2324_v44   ;;  %812 = vperm.xlu0 %1939, %v2295_v61   ;;  %v471_v46 = vadd.f32 %v455_v1, %v371_v0 }
 0x1ba   :  { %v476_v4 = vadd.f32 %v460_v9, %v376_v3 }
 0x1bb   :  { %v417_v13 = vpop.permute.xlu0 %416 }
 0x1bc   :  { %v2470_v48 = vpop.permute.xlu1 %296 }
 0x1bd   :  { %1925 = vset.pattern.permute.xlu1 %v1972_v34  ;;  %1940 = vset.pattern.permute.xlu0 %v3696_v63 }
 0x1be   :  { %524 = vperm.xlu1 %1925, %v2290_v16   ;;  %736 = vperm.xlu0 %1940, %v2348_v10  }
 0x1c0   :  { %v301_v52 = vpop.permute.xlu1 %300  ;;  %v2476_v53 = vpop.permute.xlu0 %254 }
 0x1c1   :  { %v358_v29 = vmul.f32 %v2453_v38, %v301_v52 }
 0x1c2   :  { %528 = vperm.xlu1 %1925, %v2330_v51   ;;  %748 = vperm.xlu0 %1940, %v2324_v44  }
 0x1c3   :  { %v374_v17 = vadd.f32 %v358_v29, %v274_v26 }
 0x1c4   :  { %v2480_v57 = vpop.permute.xlu1 %304 }
 0x1c5   :  { %v2482_v59 = vpop.permute.xlu0 %336  ;;  %v474_v29 = vadd.f32 %v458_v20, %v374_v17  ;;  %v359_v11 = vmul.f32 %v2453_v38, %v2480_v57 }
 0x1c6   :  { %1926 = vset.pattern.permute.xlu1 %v1973_v56  ;;  %1943 = vset.pattern.permute.xlu0 %v3694_v33 }
 0x1c7   :  { %588 = vperm.xlu1 %1926, %v2199_v2   ;;  %824 = vperm.xlu0 %1943, %v2290_v16  }
 0x1c8   :  { %v2488_v21 = vpop.permute.xlu1 %312 }
 0x1c9   :  { %v2490_v49 = vpop.permute.xlu0 %348 }
 0x1cb   :  { %596 = vperm.xlu1 %1926, %v2213_v47   ;;  %840 = vperm.xlu0 %1943, %v2341_v60  }
 0x1cc   :  { %v317_v19 = vpop.permute.xlu1 %316 }
 0x1cd   :  { %v362_v50 = vmul.f32 %v2453_v38, %v317_v19  ;;  %v462_v19 = vmul.f32 %v2456_v39, %v417_v13 }
 0x1ce   :  { %v425_v7 = vpop.permute.xlu0 %424 }
 0x1cf   :  { %600 = vperm.xlu1 %1926, %v2244_v24   ;;  %1946 = vset.pattern.permute.xlu0 %v3692_v25  ;;  %v464_v1 = vmul.f32 %v2456_v39, %v425_v7 }
 0x1d0   :  { %888 = vperm.xlu0 %1946, %v2199_v2  }
 0x1d1   :  { %v235_v32 = vpop.permute.xlu1 %234 }
 0x1d2   :  { %v280_v41 = vmul.f32 %v2448_v36, %v235_v32  ;;  %v278_v32 = vmul.f32 %v2448_v36, %v2440_v30 }
 0x1d3   :  { %608 = vperm.xlu1 %1926, %v2232_v6   ;;  %v489_v45 = vpop.permute.xlu0 %488 }
 0x1d4   :  { %v380_v0 = vadd.f32 %v364_v58, %v280_v41  ;;  %v555_v5 = vmul.f32 %v2500_v31, %v489_v45  ;;  %900 = vperm.xlu0 %1946, %v2244_v24   ;;  %v378_v58 = vadd.f32 %v362_v50, %v278_v32 }
 0x1d5   :  { %v2511_v3 = vpop.permute.xlu1 %239 }
 0x1d6   :  { %v2514_v9 = vadd.f32 %v555_v5, %v471_v46  ;;  %v2516_v18 = vadd.f32 %v464_v1, %v380_v0  ;;  %v478_v1 = vadd.f32 %v462_v19, %v378_v58  ;;  %v284_v58 = vmul.f32 %v2448_v36, %v2476_v53 }
 0x1d7   :  { %616 = vperm.xlu1 %1926, %v2310_v12   ;;  %v501_v52 = vpop.permute.xlu0 %500 }
 0x1d8   :  { %v558_v7 = vmul.f32 %v2500_v31, %v501_v52  ;;  %908 = vperm.xlu0 %1946, %v2232_v6  }
 0x1da   :  { %v2524_v26 = vadd.f32 %v558_v7, %v474_v29  ;;  %v321_v40 = vpop.permute.xlu1 %320 }
 0x1db   :  { %1929 = vset.pattern.permute.xlu1 %v1972_v34  ;;  %v509_v46 = vpop.permute.xlu0 %508 }
 0x1dc   :  { %v560_v41 = vmul.f32 %v2500_v31, %v509_v46  ;;  %540 = vperm.xlu1 %1929, %v2341_v60   ;;  %916 = vperm.xlu0 %1946, %v2310_v12  }
 0x1de   :  { %v2531_v45 = vadd.f32 %v560_v41, %v476_v4  ;;  %v2533_v17 = vpop.permute.xlu1 %328 }
 0x1df   :  { %v517_v30 = vpop.permute.xlu0 %516 }
 0x1e0   :  { %v562_v0 = vmul.f32 %v2500_v31, %v517_v30  ;;  %544 = vperm.xlu1 %1929, %v2334_v55   ;;  %920 = vperm.xlu0 %1946, %v2260_v54  }
 0x1e2   :  { %v2538_v34 = vadd.f32 %v562_v0, %v478_v1  ;;  %v333_v5 = vpop.permute.xlu1 %332 }
 0x1e4   :  { %1930 = vset.pattern.permute.xlu1 %v1973_v56  ;;  %932 = vperm.xlu0 %1946, %v2276_v42   ;;  %v441_v32 = vpop.permute.xlu0 %440 }
 0x1e5   :  { %620 = vperm.xlu1 %1930, %v2260_v54   ;;  %v468_v19 = vmul.f32 %v2456_v39, %v441_v32 }
 0x1e7   :  { %v2543_v4 = vpop.permute.xlu1 %392 }
 0x1e8   :  { %940 = vperm.xlu0 %1946, %v2341_v60  }
 0x1e9   :  { %628 = vperm.xlu1 %1930, %v2330_v51   ;;  %v521_v25 = vpop.permute.xlu0 %520 }
 0x1ea   :  { %v563_v32 = vmul.f32 %v2500_v31, %v521_v25 }
 0x1eb   :  { %v2547_v13 = vpop.permute.xlu1 %396 }
 0x1ec   :  { %948 = vperm.xlu0 %1946, %v2324_v44  }
 0x1ed   :  { %632 = vperm.xlu1 %1930, %v2276_v42  }
 0x1ef   :  { %v405_v20 = vpop.permute.xlu1 %404 }
 0x1f1   :  { %1933 = vset.pattern.permute.xlu1 %v3696_v63 }
 0x1f2   :  { %692 = vperm.xlu1 %1933, %v2192_v43  }
 0x1f3   :  { %v413_v52 = vpop.permute.xlu1 %412 }
 0x1f6   :  { %696 = vperm.xlu1 %1933, %v2213_v47  }
 0x1f8   :  { %v2554_v50 = vpop.permute.xlu1 %249 }
 0x1fa   :  { %704 = vperm.xlu1 %1933, %v2268_v37  }
 0x1fc   :  { %v2557_v29 = vpop.permute.xlu1 %259 }
 0x1fe   :  { %712 = vperm.xlu1 %1933, %v2295_v61  }
 0x200   :  { %v2560_v7 = vpop.permute.xlu1 %264 }
 0x202   :  { %1934 = vset.pattern.permute.xlu1 %v1973_v56  ;;  %v363_v56 = vmul.f32 %v2453_v38, %v321_v40  ;;  %v366_v40 = vmul.f32 %v2453_v38, %v333_v5 }
 0x203   :  { %636 = vperm.xlu1 %1934, %v2348_v10  }
 0x204   :  { %v379_v33 = vadd.f32 %v363_v56, %v279_v28  ;;  %v382_v56 = vadd.f32 %v366_v40, %v282_v22 }
 0x205   :  { %v341_v46 = vpop.permute.xlu1 %340 }
 0x206   :  { %v368_v41 = vmul.f32 %v2453_v38, %v341_v46 }
 0x207   :  { %644 = vperm.xlu1 %1934, %v2334_v55  }
 0x208   :  { %v384_v30 = vadd.f32 %v368_v41, %v284_v58 }
 0x209   :  { %v2569_v1 = vpop.permute.xlu1 %344 }
 0x20a   :  { %v2571_v0 = vadd.f32 %v468_v19, %v384_v30  ;;  %v533_v30 = vpop.permute.xlu0 %532 }
 0x20b   :  { %648 = vperm.xlu1 %1934, %v2324_v44  }
 0x20e   :  { %v421_v53 = vpop.permute.xlu1 %420  ;;  %v2593_v5 = vpop.permute.xlu0 %592 }
 0x20f   :  { %v463_v46 = vmul.f32 %v2456_v39, %v421_v53  ;;  %1937 = vset.pattern.permute.xlu1 %v3696_v63  ;;  %v3711_v63 = vmov 6   ;;  %3712 = vst [vmem:[#allocation2_spill] sm:$0xff] %v2593_v5  ;;  %v461_v5 = vmul.f32 %v2456_v39, %v413_v52 }
 0x210   :  { %724 = vperm.xlu1 %1937, %v2290_v16  }
 0x211   :  { %v479_v58 = vadd.f32 %v463_v46, %v379_v33  ;;  %v566_v33 = vmul.f32 %v2500_v31, %v533_v30  ;;  %v275_v30 = vmul.f32 %v2448_v36, %v2415_v23 }
 0x212   :  { %v2581_v41 = vpop.permute.xlu1 %428  ;;  %v605_v22 = vpop.permute.xlu0 %604 }
 0x213   :  { %v2584_v19 = vadd.f32 %v563_v32, %v479_v58  ;;  %v653_v58 = vsub.s32 4, %v2425_v27 }
 0x214   :  { %728 = vperm.xlu1 %1937, %v2330_v51  }
 0x216   :  { %v433_v28 = vpop.permute.xlu1 %432 }
 0x217   :  { %v466_v53 = vmul.f32 %v2456_v39, %v433_v28  ;;  %v375_v28 = vadd.f32 %v359_v11, %v275_v30  ;;  %v613_v11 = vpop.permute.xlu0 %612 }
 0x218   :  { %1938 = vset.pattern.permute.xlu1 %v3711_v63 }
 0x219   :  { %v482_v25 = vadd.f32 %v466_v53, %v382_v56  ;;  %788 = vperm.xlu1 %1938, %v2199_v2   ;;  %v459_v2 = vmul.f32 %v2456_v39, %v405_v20  ;;  %v361_v56 = vmul.f32 %v2453_v38, %v2488_v21  ;;  %v2612_v53 = vrot.slane %v2437_v8, %v653_v58 }
 0x21b   :  { %v2595_v46 = vpop.permute.xlu1 %492  ;;  %v2597_v32 = vadd.f32 %v566_v33, %v482_v25  ;;  %v277_v33 = vmul.f32 %v2448_v36, %v2429_v35  ;;  %v475_v25 = vadd.f32 %v459_v2, %v375_v28  ;;  %v283_v35 = vmul.f32 %v2448_v36, %v2554_v50 }
 0x21c   :  { %3713 = vst [vmem:[#allocation3_spill] sm:$0xff] %v2595_v46  ;;  %v661_v52 = vmul.f32 %v2612_v53, %v613_v11 }
 0x21d   :  { %3714 = vst [vmem:[#allocation4_spill] sm:$0xff] %v2597_v32  ;;  %796 = vperm.xlu1 %1938, %v2213_v47   ;;  %v377_v20 = vadd.f32 %v361_v56, %v277_v33  ;;  %v3715_v33 = vmov 5  }
 0x21f   :  { %v2603_v40 = vpop.permute.xlu1 %496  ;;  %v477_v32 = vadd.f32 %v461_v5, %v377_v20 }
 0x221   :  { %800 = vperm.xlu1 %1938, %v2244_v24   ;;  %v659_v24 = vmul.f32 %v2612_v53, %v605_v22  ;;  %v537_v22 = vpop.permute.xlu0 %536 }
 0x222   :  { %v567_v50 = vmul.f32 %v2500_v31, %v537_v22 }
 0x223   :  { %v505_v57 = vpop.permute.xlu1 %504 }
 0x224   :  { %v559_v23 = vmul.f32 %v2500_v31, %v505_v57 }
 0x225   :  { %808 = vperm.xlu1 %1938, %v2232_v6   ;;  %v367_v6 = vmul.f32 %v2453_v38, %v2482_v59  ;;  %v549_v20 = vpop.permute.xlu0 %548 }
 0x226   :  { %v575_v30 = vadd.f32 %v559_v23, %v475_v25  ;;  %v370_v23 = vmul.f32 %v2453_v38, %v2490_v49 }
 0x227   :  { %v513_v21 = vpop.permute.xlu1 %512  ;;  %v383_v5 = vadd.f32 %v367_v6, %v283_v35  ;;  %v753_v6 = vsub.s32 5, %v2425_v27 }
 0x228   :  { %v561_v58 = vmul.f32 %v2500_v31, %v513_v21  ;;  %v2621_v46 = vadd.f32 %v659_v24, %v575_v30  ;;  %v570_v30 = vmul.f32 %v2500_v31, %v549_v20 }
 0x229   :  { %816 = vperm.xlu1 %1938, %v2310_v12  }
 0x22a   :  { %v577_v2 = vadd.f32 %v561_v58, %v477_v32  ;;  %v286_v32 = vmul.f32 %v2448_v36, %v2560_v7  ;;  %v625_v7 = vpop.permute.xlu0 %624 }
 0x22b   :  { %v664_v49 = vmul.f32 %v2612_v53, %v625_v7 }
 0x22c   :  { %v437_v28 = vpop.permute.xlu1 %436  ;;  %v2629_v56 = vadd.f32 %v661_v52, %v577_v2  ;;  %v386_v11 = vadd.f32 %v370_v23, %v286_v32  ;;  %v557_v32 = vmul.f32 %v2500_v31, %v2603_v40 }
 0x22d   :  { %v467_v57 = vmul.f32 %v2456_v39, %v437_v28  ;;  %1941 = vset.pattern.permute.xlu1 %v3715_v33  ;;  %v457_v33 = vmul.f32 %v2456_v39, %v2547_v13 }
 0x22e   :  { %740 = vperm.xlu1 %1941, %v2341_v60  }
 0x22f   :  { %v483_v12 = vadd.f32 %v467_v57, %v383_v5  ;;  %v689_v5 = vpop.permute.xlu0 %688  ;;  %v273_v57 = vmul.f32 %v2448_v36, %v2404_v15 }
 0x230   :  { %v2635_v25 = vpop.permute.xlu1 %444 }
 0x231   :  { %v2639_v59 = vadd.f32 %v567_v50, %v483_v12 }
 0x232   :  { %744 = vperm.xlu1 %1941, %v2334_v55  }
 0x233   :  { %v701_v13 = vpop.permute.xlu0 %700 }
 0x234   :  { %v449_v24 = vpop.permute.xlu1 %448 }
 0x235   :  { %v470_v60 = vmul.f32 %v2456_v39, %v449_v24 }
 0x236   :  { %1942 = vset.pattern.permute.xlu1 %v3711_v63 }
 0x237   :  { %v486_v21 = vadd.f32 %v470_v60, %v386_v11  ;;  %820 = vperm.xlu1 %1942, %v2260_v54   ;;  %v357_v54 = vmul.f32 %v2453_v38, %v2470_v48  ;;  %v3716_v48 = vmov 7  }
 0x239   :  { %v525_v58 = vpop.permute.xlu1 %524  ;;  %v2648_v35 = vadd.f32 %v570_v30, %v486_v21  ;;  %v373_v12 = vadd.f32 %v357_v54, %v273_v57 }
 0x23a   :  { %v564_v52 = vmul.f32 %v2500_v31, %v525_v58 }
 0x23b   :  { %828 = vperm.xlu1 %1942, %v2330_v51  }
 0x23c   :  { %v580_v2 = vadd.f32 %v564_v52, %v2516_v18  ;;  %v2667_v18 = vrot.slane %v2437_v8, %v753_v6 }
 0x23d   :  { %v2655_v22 = vpop.permute.xlu1 %528 }
 0x23e   :  { %v2657_v28 = vadd.f32 %v664_v49, %v580_v2  ;;  %v755_v15 = vmul.f32 %v2667_v18, %v689_v5  ;;  %v758_v58 = vmul.f32 %v2667_v18, %v701_v13  ;;  %v465_v13 = vmul.f32 %v2456_v39, %v2581_v41 }
 0x23f   :  { %832 = vperm.xlu1 %1942, %v2276_v42   ;;  %v473_v42 = vadd.f32 %v457_v33, %v373_v12  ;;  %v272_v41 = vmul.f32 %v2448_v36, %v2400_v14  ;;  %v3718_v14 = vld [vmem:[#allocation4_spill] sm:$0xff] }
 0x241   :  { %v573_v11 = vadd.f32 %v557_v32, %v473_v42  ;;  %v469_v32 = vmul.f32 %v2456_v39, %v2635_v25  ;;  %v281_v25 = vmul.f32 %v2448_v36, %v2511_v3 }
 0x242   :  { %v589_v50 = vpop.permute.xlu1 %588 }
 0x243   :  { %v655_v23 = vmul.f32 %v2612_v53, %v589_v50  ;;  %1944 = vset.pattern.permute.xlu1 %v3716_v48 }
 0x244   :  { %892 = vperm.xlu1 %1944, %v2192_v43   ;;  %v709_v43 = vpop.permute.xlu0 %708 }
 0x245   :  { %v671_v20 = vadd.f32 %v655_v23, %v2514_v9 }
 0x246   :  { %v597_v24 = vpop.permute.xlu1 %596 }
 0x247   :  { %v657_v60 = vmul.f32 %v2612_v53, %v597_v24  ;;  %v2677_v30 = vadd.f32 %v755_v15, %v671_v20  ;;  %v365_v20 = vmul.f32 %v2453_v38, %v2533_v17  ;;  %v356_v17 = vmul.f32 %v2453_v38, %v2466_v62 }
 0x248   :  { %896 = vperm.xlu1 %1944, %v2213_v47   ;;  %v760_v47 = vmul.f32 %v2667_v18, %v709_v43  ;;  %v717_v54 = vpop.permute.xlu0 %716 }
 0x249   :  { %v2680_v40 = vadd.f32 %v657_v60, %v573_v11  ;;  %v381_v11 = vadd.f32 %v365_v20, %v281_v25 }
 0x24a   :  { %v601_v21 = vpop.permute.xlu1 %600 }
 0x24b   :  { %v658_v7 = vmul.f32 %v2612_v53, %v601_v21  ;;  %v456_v21 = vmul.f32 %v2456_v39, %v2543_v4  ;;  %v3719_v39 = vld [vmem:[#allocation2_spill] sm:$0xff] }
 0x24c   :  { %904 = vperm.xlu1 %1944, %v2268_v37   ;;  %v656_v4 = vmul.f32 %v2612_v53, %v3719_v39 }
 0x24d   :  { %v674_v9 = vadd.f32 %v658_v7, %v2524_v26  ;;  %v762_v26 = vmul.f32 %v2667_v18, %v717_v54 }
 0x24e   :  { %v609_v52 = vpop.permute.xlu1 %608 }
 0x24f   :  { %v660_v49 = vmul.f32 %v2612_v53, %v609_v52  ;;  %v2687_v2 = vadd.f32 %v758_v58, %v674_v9  ;;  %v3717_v58 = vld [vmem:[#allocation3_spill] sm:$0xff] }
 0x250   :  { %912 = vperm.xlu1 %1944, %v2295_v61   ;;  %v369_v61 = vmul.f32 %v2453_v38, %v2569_v1  ;;  %v556_v38 = vmul.f32 %v2500_v31, %v3717_v58 }
 0x251   :  { %v676_v6 = vadd.f32 %v660_v49, %v2531_v45  ;;  %v285_v45 = vmul.f32 %v2448_v36, %v2557_v29 }
 0x252   :  { %v617_v5 = vpop.permute.xlu1 %616 }
 0x253   :  { %v662_v57 = vmul.f32 %v2612_v53, %v617_v5  ;;  %v2693_v37 = vadd.f32 %v760_v47, %v676_v6  ;;  %v385_v23 = vadd.f32 %v369_v61, %v285_v45 }
 0x254   :  { %1945 = vset.pattern.permute.xlu1 %v3711_v63 }
 0x255   :  { %v678_v33 = vadd.f32 %v662_v57, %v2538_v34  ;;  %836 = vperm.xlu1 %1945, %v2348_v10   ;;  %v485_v15 = vadd.f32 %v469_v32, %v385_v23 }
 0x257   :  { %v541_v50 = vpop.permute.xlu1 %540  ;;  %v2701_v12 = vadd.f32 %v762_v26, %v678_v33 }
 0x258   :  { %v568_v63 = vmul.f32 %v2500_v31, %v541_v50 }
 0x259   :  { %844 = vperm.xlu1 %1945, %v2334_v55  }
 0x25a   :  { %v2710_v34 = vadd.f32 %v568_v63, %v2571_v0  ;;  %v565_v0 = vmul.f32 %v2500_v31, %v2655_v22 }
 0x25b   :  { %v545_v42 = vpop.permute.xlu1 %544 }
 0x25c   :  { %v569_v1 = vmul.f32 %v2500_v31, %v545_v42 }
 0x25d   :  { %848 = vperm.xlu1 %1945, %v2324_v44   ;;  %v481_v44 = vadd.f32 %v465_v13, %v381_v11 }
 0x25e   :  { %v585_v29 = vadd.f32 %v569_v1, %v485_v15 }
 0x25f   :  { %v581_v7 = vadd.f32 %v565_v0, %v481_v44 }
 0x260   :  { %v621_v24 = vpop.permute.xlu1 %620 }
 0x261   :  { %v663_v60 = vmul.f32 %v2612_v53, %v621_v24  ;;  %1947 = vset.pattern.permute.xlu1 %v3716_v48  ;;  %v372_v48 = vadd.f32 %v356_v17, %v272_v41 }
 0x262   :  { %924 = vperm.xlu1 %1947, %v2290_v16  }
 0x263   :  { %v2728_v3 = vadd.f32 %v663_v60, %v2584_v19  ;;  %v472_v62 = vadd.f32 %v456_v21, %v372_v48  ;;  %v853_v60 = vsub.s32 6, %v2425_v27 }
 0x264   :  { %v629_v22 = vpop.permute.xlu1 %628 }
 0x265   :  { %v665_v43 = vmul.f32 %v2612_v53, %v629_v22  ;;  %v572_v52 = vadd.f32 %v556_v38, %v472_v62  ;;  %v2781_v41 = vrot.slane %v2437_v8, %v853_v60 }
 0x266   :  { %928 = vperm.xlu1 %1947, %v2330_v51   ;;  %v2747_v51 = vpop.permute.xlu0 %640 }
 0x267   :  { %v681_v16 = vadd.f32 %v665_v43, %v581_v7  ;;  %v672_v47 = vadd.f32 %v656_v4, %v572_v52 }
 0x268   :  { %v633_v19 = vpop.permute.xlu1 %632 }
 0x269   :  { %v666_v9 = vmul.f32 %v2612_v53, %v633_v19 }
 0x26a   :  { %936 = vperm.xlu1 %1947, %v2348_v10   ;;  %v721_v26 = vpop.permute.xlu0 %720 }
 0x26b   :  { %v2741_v36 = vadd.f32 %v666_v9, %v3718_v14 }
 0x26d   :  { %v693_v49 = vpop.permute.xlu1 %692 }
 0x26e   :  { %v756_v31 = vmul.f32 %v2667_v18, %v693_v49  ;;  %944 = vperm.xlu1 %1947, %v2334_v55   ;;  %v733_v55 = vpop.permute.xlu0 %732 }
 0x270   :  { %v2749_v6 = vadd.f32 %v756_v31, %v672_v47 }
 0x271   :  { %v697_v54 = vpop.permute.xlu1 %696 }
 0x272   :  { %v757_v5 = vmul.f32 %v2667_v18, %v697_v54 }
 0x274   :  { %v773_v10 = vadd.f32 %v757_v5, %v2680_v40  ;;  %v793_v40 = vpop.permute.xlu0 %792 }
 0x275   :  { %v705_v57 = vpop.permute.xlu1 %704  ;;  %v856_v60 = vmul.f32 %v2781_v41, %v793_v40 }
 0x276   :  { %v759_v33 = vmul.f32 %v2667_v18, %v705_v57 }
 0x278   :  { %v2755_v61 = vadd.f32 %v759_v33, %v2621_v46  ;;  %v805_v13 = vpop.permute.xlu0 %804 }
 0x279   :  { %v713_v50 = vpop.permute.xlu1 %712 }
 0x27a   :  { %v761_v45 = vmul.f32 %v2667_v18, %v713_v50 }
 0x27c   :  { %v2759_v32 = vadd.f32 %v761_v45, %v2629_v56  ;;  %v813_v0 = vpop.permute.xlu0 %812 }
 0x27e   :  { %v637_v63 = vpop.permute.xlu1 %636 }
 0x27f   :  { %v667_v23 = vmul.f32 %v2612_v53, %v637_v63 }
 0x280   :  { %v737_v21 = vpop.permute.xlu0 %736 }
 0x281   :  { %v2763_v42 = vadd.f32 %v667_v23, %v2639_v59  ;;  %v953_v23 = vsub.s32 7, %v2425_v27 }
 0x282   :  { %v645_v15 = vpop.permute.xlu1 %644 }
 0x283   :  { %v669_v1 = vmul.f32 %v2612_v53, %v645_v15 }
 0x284   :  { %v749_v48 = vpop.permute.xlu0 %748 }
 0x285   :  { %v2766_v20 = vadd.f32 %v669_v1, %v585_v29 }
 0x286   :  { %v649_v46 = vpop.permute.xlu1 %648 }
 0x287   :  { %v670_v25 = vmul.f32 %v2612_v53, %v649_v46  ;;  %v2798_v46 = vrot.slane %v2437_v8, %v953_v23  ;;  %v767_v8 = vmul.f32 %v2667_v18, %v737_v21 }
 0x288   :  { %v825_v19 = vpop.permute.xlu0 %824 }
 0x289   :  { %v2770_v24 = vadd.f32 %v670_v25, %v2648_v35  ;;  %v668_v25 = vmul.f32 %v2612_v53, %v2747_v51  ;;  %v864_v51 = vmul.f32 %v2781_v41, %v825_v19 }
 0x28b   :  { %v725_v56 = vpop.permute.xlu1 %724  ;;  %v684_v21 = vadd.f32 %v668_v25, %v2710_v34 }
 0x28c   :  { %v764_v11 = vmul.f32 %v2667_v18, %v725_v56  ;;  %v841_v14 = vpop.permute.xlu0 %840  ;;  %v763_v56 = vmul.f32 %v2667_v18, %v721_v26 }
 0x28d   :  { %v868_v26 = vmul.f32 %v2781_v41, %v841_v14 }
 0x28e   :  { %v2774_v59 = vadd.f32 %v764_v11, %v2657_v28  ;;  %v766_v11 = vmul.f32 %v2667_v18, %v733_v55 }
 0x28f   :  { %v729_v17 = vpop.permute.xlu1 %728 }
 0x290   :  { %v765_v29 = vmul.f32 %v2667_v18, %v729_v17  ;;  %v889_v4 = vpop.permute.xlu0 %888  ;;  %v859_v17 = vmul.f32 %v2781_v41, %v805_v13  ;;  %v782_v34 = vadd.f32 %v766_v11, %v2741_v36 }
 0x291   :  { %v955_v53 = vmul.f32 %v2798_v46, %v889_v4 }
 0x292   :  { %v2778_v44 = vadd.f32 %v765_v29, %v681_v16 }
 0x294   :  { %v789_v35 = vpop.permute.xlu1 %788 }
 0x295   :  { %v855_v22 = vmul.f32 %v2781_v41, %v789_v35 }
 0x297   :  { %v871_v7 = vadd.f32 %v855_v22, %v2677_v30  ;;  %v901_v30 = vpop.permute.xlu0 %900  ;;  %v861_v22 = vmul.f32 %v2781_v41, %v813_v0 }
 0x298   :  { %v797_v43 = vpop.permute.xlu1 %796  ;;  %v958_v55 = vmul.f32 %v2798_v46, %v901_v30 }
 0x299   :  { %v857_v28 = vmul.f32 %v2781_v41, %v797_v43  ;;  %v770_v43 = vmul.f32 %v2667_v18, %v749_v48  ;;  %v2819_v0 = vadd.f32 %v955_v53, %v871_v7 }
 0x29b   :  { %v2786_v58 = vadd.f32 %v857_v28, %v773_v10  ;;  %v909_v54 = vpop.permute.xlu0 %908 }
 0x29c   :  { %v801_v38 = vpop.permute.xlu1 %800  ;;  %v960_v40 = vmul.f32 %v2798_v46, %v909_v54  ;;  %v779_v54 = vadd.f32 %v763_v56, %v2728_v3  ;;  %v880_v56 = vadd.f32 %v864_v51, %v2774_v59 }
 0x29d   :  { %v858_v62 = vmul.f32 %v2781_v41, %v801_v38 }
 0x29f   :  { %v874_v16 = vadd.f32 %v858_v62, %v2687_v2  ;;  %v917_v10 = vpop.permute.xlu0 %916 }
 0x2a0   :  { %v809_v9 = vpop.permute.xlu1 %808  ;;  %v962_v28 = vmul.f32 %v2798_v46, %v917_v10  ;;  %v872_v10 = vadd.f32 %v856_v60, %v2749_v6  ;;  %v783_v6 = vadd.f32 %v767_v8, %v2763_v42 }
 0x2a1   :  { %v860_v29 = vmul.f32 %v2781_v41, %v809_v9  ;;  %v2826_v19 = vadd.f32 %v958_v55, %v874_v16  ;;  %v877_v16 = vadd.f32 %v861_v22, %v2759_v32 }
 0x2a3   :  { %v921_v50 = vpop.permute.xlu0 %920  ;;  %v876_v9 = vadd.f32 %v860_v29, %v2693_v37  ;;  %v990_v3 = vand.u32 2147483647, %v2826_v19 }
 0x2a4   :  { %v817_v52 = vpop.permute.xlu1 %816  ;;  %v963_v38 = vmul.f32 %v2798_v46, %v921_v50  ;;  %v875_v50 = vadd.f32 %v859_v17, %v2755_v61 }
 0x2a5   :  { %v862_v30 = vmul.f32 %v2781_v41, %v817_v52 }
 0x2a7   :  { %v933_v2 = vpop.permute.xlu0 %932  ;;  %v878_v61 = vadd.f32 %v862_v30, %v2701_v12 }
 0x2a8   :  { %v966_v48 = vmul.f32 %v2798_v46, %v933_v2  ;;  %v987_v2 = vand.u32 2147483647, %v2819_v0 }
 0x2a9   :  { %v741_v39 = vpop.permute.xlu1 %740 }
 0x2aa   :  { %v768_v37 = vmul.f32 %v2667_v18, %v741_v39  ;;  %v1004_v12 = vsel %vm1003_vm1, %v987_v2, -inf }
 0x2ab   :  { %v941_v15 = vpop.permute.xlu0 %940 }
 0x2ac   :  { %v2824_v62 = vmul.f32 %v2798_v46, %v941_v15  ;;  %v2842_v15 = vadd.f32 %v960_v40, %v876_v9 }
 0x2ad   :  { %v2790_v49 = vpop.permute.xlu1 %744 }
 0x2ae   :  { %v992_v17 = vand.u32 2147483647, %v2842_v15 }
 0x2af   :  { %v949_v13 = vpop.permute.xlu0 %948 }
 0x2b0   :  { %v970_v4 = vmul.f32 %v2798_v46, %v949_v13  ;;  %v1010_v9 = vsel %vm1003_vm1, %v992_v17, -inf }
 0x2b2   :  { %v821_v47 = vpop.permute.xlu1 %820 }
 0x2b3   :  { %v863_v23 = vmul.f32 %v2781_v41, %v821_v47  ;;  %v786_v47 = vadd.f32 %v770_v43, %v2770_v24 }
 0x2b5   :  { %v879_v60 = vadd.f32 %v863_v23, %v779_v54 }
 0x2b6   :  { %v829_v31 = vpop.permute.xlu1 %828 }
 0x2b7   :  { %v865_v32 = vmul.f32 %v2781_v41, %v829_v31  ;;  %v1007_v31 = vsel %vm1003_vm1, %v990_v3, -inf }
 0x2b9   :  { %v881_v59 = vadd.f32 %v865_v32, %v2778_v44 }
 0x2ba   :  { %v833_v5 = vpop.permute.xlu1 %832 }
 0x2bb   :  { %v866_v52 = vmul.f32 %v2781_v41, %v833_v5 }
 0x2bd   :  { %v882_v42 = vadd.f32 %v866_v52, %v782_v34 }
 0x2bf   :  { %v893_v57 = vpop.permute.xlu1 %892  ;;  %v2877_v44 = vadd.f32 %v966_v48, %v882_v42 }
 0x2c0   :  { %v956_v36 = vmul.f32 %v2798_v46, %v893_v57  ;;  %v784_v57 = vadd.f32 %v768_v37, %v684_v21 }
 0x2c2   :  { %v2858_v29 = vadd.f32 %v956_v36, %v872_v10  ;;  %v884_v13 = vadd.f32 %v868_v26, %v784_v57 }
 0x2c3   :  { %v2792_v33 = vpop.permute.xlu1 %896 }
 0x2c4   :  { %v957_v24 = vmul.f32 %v2798_v46, %v2792_v33  ;;  %v769_v33 = vmul.f32 %v2667_v18, %v2790_v49  ;;  %v988_v21 = vand.u32 2147483647, %v2858_v29  ;;  %v2896_v34 = vadd.f32 %v2824_v62, %v884_v13 }
 0x2c6   :  { %v785_v10 = vadd.f32 %v769_v33, %v2766_v20  ;;  %v1005_v2 = vsel %vm1003_vm1, %v988_v21, -inf  ;;  %v1000_v32 = vand.u32 2147483647, %v2896_v34 }
 0x2c7   :  { %v905_v45 = vpop.permute.xlu1 %904 }
 0x2c8   :  { %v959_v7 = vmul.f32 %v2798_v46, %v905_v45 }
 0x2ca   :  { %v2848_v45 = vadd.f32 %v959_v7, %v875_v50 }
 0x2cb   :  { %v913_v63 = vpop.permute.xlu1 %912 }
 0x2cc   :  { %v961_v39 = vmul.f32 %v2798_v46, %v913_v63  ;;  %v2862_v63 = vadd.f32 %v962_v28, %v878_v61  ;;  %v991_v22 = vand.u32 2147483647, %v2848_v45  ;;  %v2875_v28 = vadd.f32 %v963_v38, %v879_v60 }
 0x2ce   :  { %v2866_v8 = vadd.f32 %v961_v39, %v877_v16  ;;  %v994_v30 = vand.u32 2147483647, %v2862_v63  ;;  %v1008_v26 = vsel %vm1003_vm1, %v991_v22, -inf  ;;  %v995_v50 = vand.u32 2147483647, %v2875_v28 }
 0x2cf   :  { %v998_v16 = vand.u32 2147483647, %v2877_v44  ;;  %v1009_v23 = vmax.f32 %v1004_v12, %v1008_v26 }
 0x2d0   :  { %v2795_v1 = vpop.permute.xlu1 %836  ;;  %v993_v54 = vand.u32 2147483647, %v2866_v8  ;;  %v1014_v37 = vsel %vm1003_vm1, %v994_v30, -inf  ;;  %v1016_v39 = vsel %vm1003_vm1, %v995_v50, -inf }
 0x2d1   :  { %v867_v53 = vmul.f32 %v2781_v41, %v2795_v1  ;;  %v1015_v60 = vmax.f32 %v1007_v31, %v1014_v37  ;;  %v1017_v17 = vmax.f32 %v1009_v23, %v1016_v39 }
 0x2d2   :  { %v1012_v62 = vsel %vm1003_vm1, %v993_v54, -inf }
 0x2d3   :  { %v883_v38 = vadd.f32 %v867_v53, %v783_v6 }
 0x2d4   :  { %v2807_v35 = vpop.permute.xlu1 %844 }
 0x2d5   :  { %v869_v18 = vmul.f32 %v2781_v41, %v2807_v35 }
 0x2d7   :  { %v885_v52 = vadd.f32 %v869_v18, %v785_v10 }
 0x2d8   :  { %v849_v14 = vpop.permute.xlu1 %848 }
 0x2d9   :  { %v870_v5 = vmul.f32 %v2781_v41, %v849_v14  ;;  %v2882_v14 = vadd.f32 %v957_v24, %v2786_v58 }
 0x2db   :  { %v886_v51 = vadd.f32 %v870_v5, %v786_v47  ;;  %v989_v41 = vand.u32 2147483647, %v2882_v14  ;;  %v1011_v47 = vmax.f32 %v1005_v2, %v1010_v9 }
 0x2dd   :  { %v925_v25 = vpop.permute.xlu1 %924  ;;  %v2891_v48 = vadd.f32 %v970_v4, %v886_v51  ;;  %v1006_v5 = vsel %vm1003_vm1, %v989_v41, -inf  ;;  %v1026_v51 = vsel %vm1003_vm1, %v1000_v32, -inf }
 0x2de   :  { %v964_v11 = vmul.f32 %v2798_v46, %v925_v25  ;;  %v1022_v25 = vsel %vm1003_vm1, %v998_v16, -inf  ;;  %v1013_v42 = vmax.f32 %v1006_v5, %v1012_v62 }
 0x2df   :  { %v1002_v20 = vand.u32 2147483647, %v2891_v48 }
 0x2e0   :  { %v2870_v55 = vadd.f32 %v964_v11, %v880_v56 }
 0x2e1   :  { %v929_v43 = vpop.permute.xlu1 %928 }
 0x2e2   :  { %v965_v40 = vmul.f32 %v2798_v46, %v929_v43  ;;  %v996_v7 = vand.u32 2147483647, %v2870_v55 }
 0x2e4   :  { %v2884_v1 = vadd.f32 %v965_v40, %v881_v59  ;;  %v1018_v36 = vsel %vm1003_vm1, %v996_v7, -inf  ;;  %v1023_v59 = vmax.f32 %v1015_v60, %v1022_v25 }
 0x2e5   :  { %v937_v49 = vpop.permute.xlu1 %936  ;;  %v1019_v12 = vmax.f32 %v1011_v47, %v1018_v36 }
 0x2e6   :  { %v967_v58 = vmul.f32 %v2798_v46, %v937_v49  ;;  %v997_v35 = vand.u32 2147483647, %v2884_v1 }
 0x2e7   :  { %v1027_v13 = vmax.f32 %v1019_v12, %v1026_v51 }
 0x2e8   :  { %v2904_v4 = vadd.f32 %v967_v58, %v883_v38  ;;  %v1020_v56 = vsel %vm1003_vm1, %v997_v35, -inf }
 0x2e9   :  { %v945_v3 = vpop.permute.xlu1 %944  ;;  %v1021_v22 = vmax.f32 %v1013_v42, %v1020_v56 }
 0x2ea   :  { %v999_v6 = vand.u32 2147483647, %v2904_v4  ;;  %v969_v61 = vmul.f32 %v2798_v46, %v945_v3  ;;  %v1030_v46 = vsel %vm1003_vm1, %v1002_v20, -inf }
 0x2eb   :  { %v1031_v33 = vmax.f32 %v1023_v59, %v1030_v46 }
 0x2ec   :  { %v1024_v11 = vsel %vm1003_vm1, %v999_v6, -inf  ;;  %v2918_v57 = vadd.f32 %v969_v61, %v885_v52 }
 0x2ed   :  { %v1025_v43 = vmax.f32 %v1017_v17, %v1024_v11 }
 0x2ee   :  { %v1001_v24 = vand.u32 2147483647, %v2918_v57 }
 0x2ef   :  { %v1032_v21 = vmax.f32 %v1025_v43, %v1027_v13 }
 0x2f0   :  { %v1028_v53 = vsel %vm1003_vm1, %v1001_v24, -inf }
 0x2f1   :  { %v1029_v40 = vmax.f32 %v1021_v22, %v1028_v53 }
 0x2f3   :  { %v1033_v9 = vmax.f32 %v1029_v40, %v1031_v33 }
 0x2f5   :  { %v1034_v31 = vmax.f32 %v1032_v21, %v1033_v9 }
 0x2f7   :  { %1035 = vmax.xlane.f32.xlu1 %v1034_v31 }
 0x380   :  { %v1036_v30 = vpop.xlane.xlu1 %1035 }
 0x381   :  { %v1037_v26 = vrot.slane %v1036_v30, 4 }
 0x383   :  { %v1038_v54 = vmax.f32 %v1036_v30, %v1037_v26 }
 0x385   :  { %v1039_v18 = vrot.slane %v1038_v54, 2 }
 0x387   :  { %v1040_v49 = vmax.f32 %v1038_v54, %v1039_v18 }
 0x389   :  { %v1041_v38 = vrot.slane %v1040_v49, 1 }
 0x38b   :  { %v1042_v7 = vmax.f32 %v1040_v49, %v1041_v38 }
 0x38d   :  { %1635 = vpush %v1042_v7 }
 0x3be   :  { %s1636_s1 = spop %1635 }
 0x3bf   :  { %s1044_s25 = smax.f32 %s1969_s21, %s1636_s1 }
 0x3c0   :  { %v1045_v58 = vstv %s1044_s25 }
 0x3c1   :  { %1954 = vlog2.f32 %v1045_v58 }
 0x3ce   :  { %v1955_v10 = vpop.eup %1954 }
 0x3cf   :  { %v1047_v50 = vmul.f32 0.6931472, %v1955_v10 }
 0x3d1   :  { %v1048_v16 = vmul.f32 1.442695, %v1047_v50 }
 0x3d3   :  { %v1049_v2 = vceil.f32 %v1048_v16 }
 0x3d5   :  { %v1502_v41 = vadd.f32 -7.0, %v1049_v2  ;;  %v1054_v23 = vsub.f32 7.0, %v1049_v2 }
 0x3d7   :  { %v1051_v35 = vmul.f32 0.6931472, %v1502_v41  ;;  %v1055_v62 = vmul.f32 0.6931472, %v1054_v23 }
 0x3d9   :  { %v1052_v37 = vmul.f32 1.442695, %v1051_v35  ;;  %v1056_v52 = vmul.f32 1.442695, %v1055_v62 }
 0x3db   :  { %1956 = vpow2.f32 %v1052_v37 }
 0x3dc   :  { %1958 = vpow2.f32 %v1056_v52 }
 0x3e8   :  { %v2925_v3 = vpop.eup %1956 }
 0x3e9   :  { %v1058_v20 = vmul.f32 -128.0, %v2925_v3  ;;  %v1059_v6 = vmul.f32 127.0, %v2925_v3  ;;  %v1959_v56 = vpop.eup %1958 }
 0x3eb   :  { %v1060_v36 = vmax.f32 %v1058_v20, %v2819_v0  ;;  %v1061_v61 = vmax.f32 %v1058_v20, %v2858_v29  ;;  %v1062_v32 = vmax.f32 %v1058_v20, %v2882_v14  ;;  %v1063_v39 = vmax.f32 %v1058_v20, %v2826_v19 }
 0x3ec   :  { %v1064_v47 = vmax.f32 %v1058_v20, %v2848_v45  ;;  %v1065_v60 = vmax.f32 %v1058_v20, %v2842_v15  ;;  %v1066_v0 = vmax.f32 %v1058_v20, %v2866_v8  ;;  %v1067_v17 = vmax.f32 %v1058_v20, %v2862_v63 }
 0x3ed   :  { %v1076_v25 = vmin.f32 %v1059_v6, %v1060_v36  ;;  %v1077_v5 = vmin.f32 %v1059_v6, %v1061_v61  ;;  %v1078_v11 = vmin.f32 %v1059_v6, %v1062_v32  ;;  %v1079_v42 = vmin.f32 %v1059_v6, %v1063_v39 }
 0x3ee   :  { %v1068_v29 = vmax.f32 %v1058_v20, %v2875_v28  ;;  %v1080_v14 = vmin.f32 %v1059_v6, %v1064_v47  ;;  %v1069_v19 = vmax.f32 %v1058_v20, %v2870_v55  ;;  %v1070_v46 = vmax.f32 %v1058_v20, %v2884_v1 }
 0x3ef   :  { %v2935_v12 = vmul.f32 %v1959_v56, %v1076_v25  ;;  %v1071_v45 = vmax.f32 %v1058_v20, %v2877_v44  ;;  %v2943_v24 = vmul.f32 %v1959_v56, %v1077_v5  ;;  %v1072_v15 = vmax.f32 %v1058_v20, %v2904_v4 }
 0x3f0   :  { %v1073_v59 = vmax.f32 %v1058_v20, %v2896_v34  ;;  %v1074_v22 = vmax.f32 %v1058_v20, %v2918_v57  ;;  %v2948_v8 = vmul.f32 %v1959_v56, %v1078_v11  ;;  %v1075_v63 = vmax.f32 %v1058_v20, %v2891_v48 }
 0x3f1   :  { %v1081_v28 = vmin.f32 %v1059_v6, %v1065_v60  ;;  %v2951_v43 = vmul.f32 %v1959_v56, %v1079_v42  ;;  %v1639_v55 = vcvt.f32.s32 %v2935_v12  ;;  %v1082_v1 = vmin.f32 %v1059_v6, %v1066_v0 }
 0x3f2   :  { %v1083_v53 = vmin.f32 %v1059_v6, %v1067_v17  ;;  %v1084_v44 = vmin.f32 %v1059_v6, %v1068_v29  ;;  %v2954_v51 = vmul.f32 %v1959_v56, %v1080_v14  ;;  %v1085_v40 = vmin.f32 %v1059_v6, %v1069_v19 }
 0x3f3   :  { %v1086_v4 = vmin.f32 %v1059_v6, %v1070_v46  ;;  %v1087_v13 = vmin.f32 %v1059_v6, %v1071_v45  ;;  %v1647_v34 = vcvt.f32.s32 %v2943_v24  ;;  %v1088_v57 = vmin.f32 %v1059_v6, %v1072_v15 }
 0x3f4   :  { %v1089_v33 = vmin.f32 %v1059_v6, %v1073_v59  ;;  %v1090_v21 = vmin.f32 %v1059_v6, %v1074_v22  ;;  %v1655_v48 = vcvt.f32.s32 %v2948_v8  ;;  %v1091_v9 = vmin.f32 %v1059_v6, %v1075_v63 }
 0x3f5   :  { %v2958_v31 = vmul.f32 %v1959_v56, %v1081_v28  ;;  %v1640_v30 = vcvt.s32.f32 %v1639_v55  ;;  %v1663_v26 = vcvt.f32.s32 %v2951_v43  ;;  %v2961_v54 = vmul.f32 %v1959_v56, %v1082_v1 }
 0x3f6   :  { %v2963_v18 = vmul.f32 %v1959_v56, %v1083_v53  ;;  %v2965_v49 = vmul.f32 %v1959_v56, %v1084_v44  ;;  %v1671_v38 = vcvt.f32.s32 %v2954_v51  ;;  %v2968_v7 = vmul.f32 %v1959_v56, %v1085_v40 }
 0x3f7   :  { %v2970_v58 = vmul.f32 %v1959_v56, %v1086_v4  ;;  %v2972_v10 = vmul.f32 %v1959_v56, %v1087_v13  ;;  %v1648_v50 = vcvt.s32.f32 %v1647_v34  ;;  %v2974_v16 = vmul.f32 %v1959_v56, %v1088_v57 }
 0x3f8   :  { %v2976_v2 = vmul.f32 %v1959_v56, %v1089_v33  ;;  %v1637_v41 = vand.u32 2147483647, %v2935_v12  ;;  %v1656_v35 = vcvt.s32.f32 %v1655_v48  ;;  %v2979_v37 = vmul.f32 %v1959_v56, %v1090_v21 }
 0x3f9   :  { %v1641_v23 = vand.u32 2147483647, %v1640_v30  ;;  %v1664_v62 = vcvt.s32.f32 %v1663_v26  ;;  %v1679_v52 = vcvt.f32.s32 %v2958_v31  ;;  %v2982_v20 = vmul.f32 %v1959_v56, %v1091_v9 }
 0x3fa   :  { %v1645_v36 = vand.u32 2147483647, %v2943_v24  ;;  %v1672_v6 = vcvt.s32.f32 %v1671_v38  ;;  %v1687_v61 = vcvt.f32.s32 %v2961_v54  ;;  %v1642_v32 = vand.u32 2147483648, %v2935_v12 }
 0x3fb   :  { %v1649_v39 = vand.u32 2147483647, %v1648_v50  ;;  %v1653_v25 = vand.u32 2147483647, %v2948_v8  ;;  %v1695_v47 = vcvt.f32.s32 %v2963_v18  ;;  %vm2989_vm2 = vcmp.lt.f32.partialorder %v1637_v41, 8388608.0 }
 0x3fc   :  { %v1650_v11 = vand.u32 2147483648, %v2943_v24  ;;  %v1657_v56 = vand.u32 2147483647, %v1656_v35  ;;  %v1661_v60 = vand.u32 2147483647, %v2951_v43  ;;  %v1643_v42 = vor.u32 %v1642_v32, %v1641_v23 }
 0x3fd   :  { %v1665_v0 = vand.u32 2147483647, %v1664_v62  ;;  %v1669_v17 = vand.u32 2147483647, %v2954_v51  ;;  %v1680_v29 = vcvt.s32.f32 %v1679_v52  ;;  %vm2996_vm3 = vcmp.lt.f32.partialorder %v1645_v36, 8388608.0 }
 0x3fe   :  { %v1658_v19 = vand.u32 2147483648, %v2948_v8  ;;  %v1673_v46 = vand.u32 2147483647, %v1672_v6  ;;  %v1688_v45 = vcvt.s32.f32 %v1687_v61  ;;  %v1651_v15 = vor.u32 %v1650_v11, %v1649_v39 }
 0x3ff   :  { %vm3001_vm4 = vcmp.lt.f32.partialorder %v1653_v25, 8388608.0  ;;  %v1666_v22 = vand.u32 2147483648, %v2951_v43  ;;  %v1696_v63 = vcvt.s32.f32 %v1695_v47  ;;  %vm3006_vm5 = vcmp.lt.f32.partialorder %v1661_v60, 8388608.0 }
 0x400   :  { %v1659_v28 = vor.u32 %v1658_v19, %v1657_v56  ;;  %v1674_v1 = vand.u32 2147483648, %v2954_v51  ;;  %v1677_v53 = vand.u32 2147483647, %v2958_v31  ;;  %v1644_v44 = vsel %vm2989_vm2, %v1643_v42, %v2935_v12 }
 0x401   :  { %v1667_v40 = vor.u32 %v1666_v22, %v1665_v0  ;;  %vm3015_vm6 = vcmp.lt.f32.partialorder %v1669_v17, 8388608.0  ;;  %v1681_v13 = vand.u32 2147483647, %v1680_v29  ;;  %v1685_v57 = vand.u32 2147483647, %v2961_v54 }
 0x402   :  { %v1675_v34 = vor.u32 %v1674_v1, %v1673_v46  ;;  %v1689_v33 = vand.u32 2147483647, %v1688_v45  ;;  %v1703_v21 = vcvt.f32.s32 %v2965_v49  ;;  %v1652_v48 = vsel %vm2996_vm3, %v1651_v15, %v2943_v24 }
 0x403   :  { %v1682_v9 = vand.u32 2147483648, %v2958_v31  ;;  %v1697_v30 = vand.u32 2147483647, %v1696_v63  ;;  %v1711_v12 = vcvt.f32.s32 %v2968_v7  ;;  %v1660_v26 = vsel %vm3001_vm4, %v1659_v28, %v2948_v8 }
 0x404   :  { %vm3029_vm7 = vcmp.lt.f32.partialorder %v1677_v53, 8388608.0  ;;  %v1690_v50 = vand.u32 2147483648, %v2961_v54  ;;  %v1693_v41 = vand.u32 2147483647, %v2963_v18  ;;  %v1668_v24 = vsel %vm3006_vm5, %v1667_v40, %v2951_v43 }
 0x405   :  { %v1683_v35 = vor.u32 %v1682_v9, %v1681_v13  ;;  %v1698_v23 = vand.u32 2147483648, %v2963_v18  ;;  %v1701_v62 = vand.u32 2147483647, %v2965_v49  ;;  %v1676_v8 = vsel %vm3015_vm6, %v1675_v34, %v2954_v51 }
 0x406   :  { %vm3043_vm8 = vcmp.lt.f32.partialorder %v1685_v57, 8388608.0  ;;  %v1691_v36 = vor.u32 %v1690_v50, %v1689_v33  ;;  %v1704_v6 = vcvt.s32.f32 %v1703_v21  ;;  %v1709_v32 = vand.u32 2147483647, %v2968_v7 }
 0x407   :  { %v1699_v61 = vor.u32 %v1698_v23, %v1697_v30  ;;  %v1712_v39 = vcvt.s32.f32 %v1711_v12  ;;  %v1719_v43 = vcvt.f32.s32 %v2970_v58  ;;  %vm3049_vm9 = vcmp.lt.f32.partialorder %v1693_v41, 8388608.0 }
 0x408   :  { %v1706_v47 = vand.u32 2147483648, %v2965_v49  ;;  %v3055_v51 = vmul.f32 %v2925_v3, %v1644_v44  ;;  %v3058_v5 = vmul.f32 %v2925_v3, %v1652_v48  ;;  %v1684_v11 = vsel %vm3029_vm7, %v1683_v35, %v2958_v31 }
 0x409   :  { %vm3063_vm10 = vcmp.lt.f32.partialorder %v1701_v62, 8388608.0  ;;  %v1714_v60 = vand.u32 2147483648, %v2968_v7  ;;  %v1727_v42 = vcvt.f32.s32 %v2972_v10  ;;  %v1692_v0 = vsel %vm3043_vm8, %v1691_v36, %v2961_v54 }
 0x40a   :  { %v1705_v17 = vand.u32 2147483647, %v1704_v6  ;;  %v1717_v29 = vand.u32 2147483647, %v2970_v58  ;;  %v3074_v14 = vmul.f32 %v2925_v3, %v1660_v26  ;;  %v1700_v31 = vsel %vm3049_vm9, %v1699_v61, %v2963_v18 }
 0x40b   :  { %vm3079_vm11 = vcmp.lt.f32.partialorder %v1709_v32, 8388608.0  ;;  %v1713_v46 = vand.u32 2147483647, %v1712_v39  ;;  %v1720_v45 = vcvt.s32.f32 %v1719_v43  ;;  %v1735_v15 = vcvt.f32.s32 %v2974_v16 }
 0x40c   :  { %v1725_v54 = vand.u32 2147483647, %v2972_v10  ;;  %v3086_v59 = vmul.f32 %v2925_v3, %v1668_v24  ;;  %v1142_v22 = vsel %vm1003_vm1, %v3055_v51, 0.0  ;;  %v1143_v63 = vsel %vm1003_vm1, %v3058_v5, 0.0 }
 0x40d   :  { %v1722_v18 = vand.u32 2147483648, %v2970_v58  ;;  %v1728_v28 = vcvt.s32.f32 %v1727_v42  ;;  %v1743_v55 = vcvt.f32.s32 %v2976_v2  ;;  %v1144_v1 = vadd.f32 %v1143_v63, %v1142_v22 }
 0x40e   :  { %v1707_v53 = vor.u32 %v1706_v47, %v1705_v17  ;;  %vm3094_vm12 = vcmp.lt.f32.partialorder %v1717_v29, 8388608.0  ;;  %v3099_v40 = vmul.f32 %v2925_v3, %v1676_v8  ;;  %v1145_v4 = vsel %vm1003_vm1, %v3074_v14, 0.0 }
 0x40f   :  { %v1721_v13 = vand.u32 2147483647, %v1720_v45  ;;  %v1736_v34 = vcvt.s32.f32 %v1735_v15  ;;  %v1751_v57 = vcvt.f32.s32 %v2979_v37  ;;  %v1146_v33 = vadd.f32 %v1145_v4, %v1144_v1 }
 0x410   :  { %v1715_v21 = vor.u32 %v1714_v60, %v1713_v46  ;;  %vm3104_vm13 = vcmp.lt.f32.partialorder %v1725_v54, 8388608.0  ;;  %v3109_v9 = vmul.f32 %v2925_v3, %v1684_v11  ;;  %v1147_v30 = vsel %vm1003_vm1, %v3086_v59, 0.0 }
 0x411   :  { %v1729_v12 = vand.u32 2147483647, %v1728_v28  ;;  %v1744_v26 = vcvt.s32.f32 %v1743_v55  ;;  %v1759_v38 = vcvt.f32.s32 %v2982_v20  ;;  %v1148_v50 = vadd.f32 %v1147_v30, %v1146_v33 }
 0x412   :  { %v1708_v41 = vsel %vm3063_vm10, %v1707_v53, %v2965_v49  ;;  %v1730_v24 = vand.u32 2147483648, %v2972_v10  ;;  %v3119_v35 = vmul.f32 %v2925_v3, %v1692_v0  ;;  %v1149_v23 = vsel %vm1003_vm1, %v3099_v40, 0.0 }
 0x413   :  { %v1723_v62 = vor.u32 %v1722_v18, %v1721_v13  ;;  %v1737_v8 = vand.u32 2147483647, %v1736_v34  ;;  %v1752_v52 = vcvt.s32.f32 %v1751_v57  ;;  %v1150_v36 = vadd.f32 %v1149_v23, %v1148_v50 }
 0x414   :  { %v1716_v6 = vsel %vm3079_vm11, %v1715_v21, %v2968_v7  ;;  %v1738_v61 = vand.u32 2147483648, %v2974_v16  ;;  %v3128_v49 = vmul.f32 %v2925_v3, %v1700_v31  ;;  %v1151_v32 = vsel %vm1003_vm1, %v3109_v9, 0.0 }
 0x415   :  { %v1731_v39 = vor.u32 %v1730_v24, %v1729_v12  ;;  %v1745_v43 = vand.u32 2147483647, %v1744_v26  ;;  %v1760_v25 = vcvt.s32.f32 %v1759_v38  ;;  %v1152_v47 = vadd.f32 %v1151_v32, %v1150_v36 }
 0x416   :  { %v1733_v11 = vand.u32 2147483647, %v2974_v16  ;;  %v1746_v56 = vand.u32 2147483648, %v2976_v2  ;;  %v3135_v60 = vmul.f32 %v2925_v3, %v1708_v41  ;;  %v1153_v7 = vsel %vm1003_vm1, %v3119_v35, 0.0 }
 0x417   :  { %v1724_v42 = vsel %vm3094_vm12, %v1723_v62, %v2970_v58  ;;  %v1739_v0 = vor.u32 %v1738_v61, %v1737_v8  ;;  %v1753_v17 = vand.u32 2147483647, %v1752_v52  ;;  %v1154_v29 = vadd.f32 %v1153_v7, %v1152_v47 }
 0x418   :  { %v1741_v31 = vand.u32 2147483647, %v2976_v2  ;;  %v1754_v19 = vand.u32 2147483648, %v2979_v37  ;;  %v3145_v46 = vmul.f32 %v2925_v3, %v1716_v6  ;;  %v1155_v45 = vsel %vm1003_vm1, %v3128_v49, 0.0 }
 0x419   :  { %v1732_v15 = vsel %vm3104_vm13, %v1731_v39, %v2972_v10  ;;  %v1747_v54 = vor.u32 %v1746_v56, %v1745_v43  ;;  %v1761_v22 = vand.u32 2147483647, %v1760_v25  ;;  %v1156_v58 = vadd.f32 %v1155_v45, %v1154_v29 }
 0x41a   :  { %vm3152_vm14 = vcmp.lt.f32.partialorder %v1733_v11, 8388608.0  ;;  %v1749_v18 = vand.u32 2147483647, %v2979_v37  ;;  %v3158_v28 = vmul.f32 %v2925_v3, %v1724_v42  ;;  %v1157_v55 = vsel %vm1003_vm1, %v3135_v60, 0.0 }
 0x41b   :  { %v1740_v1 = vsel %vm3152_vm14, %v1739_v0, %v2974_v16  ;;  %v1755_v10 = vor.u32 %v1754_v19, %v1753_v17  ;;  %v1762_v53 = vand.u32 2147483648, %v2982_v20  ;;  %v1158_v44 = vadd.f32 %v1157_v55, %v1156_v58 }
 0x41c   :  { %vm1742_vm15 = vcmp.lt.f32.partialorder %v1741_v31, 8388608.0  ;;  %v1757_v4 = vand.u32 2147483647, %v2982_v20  ;;  %v3168_v13 = vmul.f32 %v2925_v3, %v1732_v15  ;;  %v1159_v34 = vsel %vm1003_vm1, %v3145_v46, 0.0 }
 0x41d   :  { %v1748_v57 = vsel %vm1742_vm15, %v1747_v54, %v2976_v2  ;;  %v1763_v33 = vor.u32 %v1762_v53, %v1761_v22  ;;  %v1160_v21 = vadd.f32 %v1159_v34, %v1158_v44  ;;  %vm1750_vm0 = vcmp.lt.f32.partialorder %v1749_v18, 8388608.0 }
 0x41e   :  { %v3174_v16 = vmul.f32 %v2925_v3, %v1740_v1  ;;  %v1161_v48 = vsel %vm1003_vm1, %v3158_v28, 0.0  ;;  %v1756_v30 = vsel %vm1750_vm0, %v1755_v10, %v2979_v37  ;;  %vm1758_vm2 = vcmp.lt.f32.partialorder %v1757_v4, 8388608.0 }
 0x41f   :  { %v1162_v12 = vadd.f32 %v1161_v48, %v1160_v21  ;;  %v1137_v26 = vmul.f32 %v2925_v3, %v1748_v57  ;;  %v1163_v38 = vsel %vm1003_vm1, %v3168_v13, 0.0  ;;  %v1764_v2 = vsel %vm1758_vm2, %v1763_v33, %v2982_v20 }
 0x420   :  { %v1138_v41 = vmul.f32 %v2925_v3, %v1756_v30  ;;  %v1165_v24 = vsel %vm1003_vm1, %v3174_v16, 0.0  ;;  %v3187_v62 = vmul.f32 %v2925_v3, %v1764_v2 }
 0x421   :  { %v1164_v50 = vadd.f32 %v1163_v38, %v1162_v12  ;;  %v1167_v37 = vsel %vm1003_vm1, %v1137_v26, 0.0 }
 0x422   :  { %v1169_v52 = vsel %vm1003_vm1, %v1138_v41, 0.0  ;;  %v1171_v6 = vsel %vm1003_vm1, %v3187_v62, 0.0 }
 0x423   :  { %v1166_v23 = vadd.f32 %v1165_v24, %v1164_v50 }
 0x425   :  { %v1168_v8 = vadd.f32 %v1167_v37, %v1166_v23 }
 0x427   :  { %v1170_v36 = vadd.f32 %v1169_v52, %v1168_v8 }
 0x429   :  { %v1172_v20 = vadd.f32 %v1171_v6, %v1170_v36 }
 0x42b   :  { %v1173_v61 = vrot.slane %v1172_v20, 4 }
 0x42d   :  { %v1174_v32 = vadd.f32 %v1173_v61, %v1172_v20 }
 0x42f   :  { %v1175_v39 = vrot.slane %v1174_v32, 2 }
 0x431   :  { %v1176_v43 = vadd.f32 %v1175_v39, %v1174_v32 }
 0x433   :  { %v1177_v25 = vrot.slane %v1176_v43, 1 }
 0x435   :  { %v1178_v47 = vadd.f32 %v1177_v25, %v1176_v43 }
 0x437   :  { %v1179_v11 = vmul.f32 0.0078125, %v1178_v47 }
 0x439   :  { %v3194_v3 = vsub.f32 %v3055_v51, %v1179_v11  ;;  %v3197_v56 = vsub.f32 %v3058_v5, %v1179_v11  ;;  %v3200_v7 = vsub.f32 %v3074_v14, %v1179_v11  ;;  %v3203_v42 = vsub.f32 %v3086_v59, %v1179_v11 }
 0x43a   :  { %v3210_v29 = vsub.f32 %v3099_v40, %v1179_v11  ;;  %v3215_v5 = vsub.f32 %v3109_v9, %v1179_v11  ;;  %v3222_v45 = vsub.f32 %v3119_v35, %v1179_v11  ;;  %v3228_v9 = vsub.f32 %v3128_v49, %v1179_v11 }
 0x43b   :  { %v1196_v0 = vmul.f32 %v3194_v3, %v3194_v3  ;;  %v1197_v17 = vmul.f32 %v3197_v56, %v3197_v56  ;;  %v1198_v51 = vmul.f32 %v3200_v7, %v3200_v7  ;;  %v1199_v14 = vmul.f32 %v3203_v42, %v3203_v42 }
 0x43c   :  { %v1200_v40 = vmul.f32 %v3210_v29, %v3210_v29  ;;  %v1201_v22 = vmul.f32 %v3215_v5, %v3215_v5  ;;  %v3234_v18 = vsub.f32 %v3135_v60, %v1179_v11  ;;  %v1202_v35 = vmul.f32 %v3222_v45, %v3222_v45 }
 0x43d   :  { %v1212_v59 = vsel %vm1003_vm1, %v1196_v0, 0.0  ;;  %v1213_v31 = vsel %vm1003_vm1, %v1197_v17, 0.0  ;;  %v1215_v15 = vsel %vm1003_vm1, %v1198_v51, 0.0  ;;  %v1217_v58 = vsel %vm1003_vm1, %v1199_v14, 0.0 }
 0x43e   :  { %v1214_v19 = vadd.f32 %v1213_v31, %v1212_v59  ;;  %v1219_v55 = vsel %vm1003_vm1, %v1200_v40, 0.0  ;;  %v3240_v10 = vsub.f32 %v3145_v46, %v1179_v11  ;;  %v1203_v49 = vmul.f32 %v3228_v9, %v3228_v9 }
 0x43f   :  { %v1221_v53 = vsel %vm1003_vm1, %v1201_v22, 0.0  ;;  %v1190_v4 = vsub.f32 %v3158_v28, %v1179_v11  ;;  %v1204_v60 = vmul.f32 %v3234_v18, %v3234_v18  ;;  %v1223_v34 = vsel %vm1003_vm1, %v1202_v35, 0.0 }
 0x440   :  { %v1216_v54 = vadd.f32 %v1215_v15, %v1214_v19  ;;  %v1191_v33 = vsub.f32 %v3168_v13, %v1179_v11  ;;  %v1205_v46 = vmul.f32 %v3240_v10, %v3240_v10  ;;  %v1225_v21 = vsel %vm1003_vm1, %v1203_v49, 0.0  ;;  %v1140_v15 = vld [vmem:[%s3688_s2] sm:$0x1] }
 0x441   :  { %v1192_v30 = vsub.f32 %v3174_v16, %v1179_v11  ;;  %v1206_v12 = vmul.f32 %v1190_v4, %v1190_v4  ;;  %v1227_v38 = vsel %vm1003_vm1, %v1204_v60, 0.0  ;;  %v1193_v2 = vsub.f32 %v1137_v26, %v1179_v11 }
 0x442   :  { %v1218_v63 = vadd.f32 %v1217_v58, %v1216_v54  ;;  %v1207_v50 = vmul.f32 %v1191_v33, %v1191_v33  ;;  %v1229_v24 = vsel %vm1003_vm1, %v1205_v46, 0.0  ;;  %v1194_v37 = vsub.f32 %v1138_v41, %v1179_v11 }
 0x443   :  { %v1208_v8 = vmul.f32 %v1192_v30, %v1192_v30  ;;  %v1231_v13 = vsel %vm1003_vm1, %v1206_v12, 0.0  ;;  %v1195_v36 = vsub.f32 %v3187_v62, %v1179_v11  ;;  %v1209_v6 = vmul.f32 %v1193_v2, %v1193_v2 }
 0x444   :  { %v1220_v1 = vadd.f32 %v1219_v55, %v1218_v63  ;;  %v1233_v20 = vsel %vm1003_vm1, %v1207_v50, 0.0  ;;  %v1210_v61 = vmul.f32 %v1194_v37, %v1194_v37  ;;  %v3746_v58 = vsub.s32 0, %v2425_v27 }
 0x445   :  { %v1235_v32 = vsel %vm1003_vm1, %v1208_v8, 0.0  ;;  %v1211_v26 = vmul.f32 %v1195_v36, %v1195_v36  ;;  %v1237_v43 = vsel %vm1003_vm1, %v1209_v6, 0.0 }
 0x446   :  { %v1222_v44 = vadd.f32 %v1221_v53, %v1220_v1  ;;  %v1239_v41 = vsel %vm1003_vm1, %v1210_v61, 0.0  ;;  %v1503_v53 = vld [vmem:[%s3689_s3] ss:$0 sm:$0xff] }
 0x447   :  { %v1241_v0 = vsel %vm1003_vm1, %v1211_v26, 0.0 }
 0x448   :  { %v1224_v57 = vadd.f32 %v1223_v34, %v1222_v44 }
 0x44a   :  { %v1226_v48 = vadd.f32 %v1225_v21, %v1224_v57 }
 0x44c   :  { %v1228_v28 = vadd.f32 %v1227_v38, %v1226_v48 }
 0x44e   :  { %v1230_v23 = vadd.f32 %v1229_v24, %v1228_v28 }
 0x450   :  { %v1232_v52 = vadd.f32 %v1231_v13, %v1230_v23 }
 0x452   :  { %v1234_v16 = vadd.f32 %v1233_v20, %v1232_v52 }
 0x454   :  { %v1236_v39 = vadd.f32 %v1235_v32, %v1234_v16 }
 0x456   :  { %v1238_v25 = vadd.f32 %v1237_v43, %v1236_v39 }
 0x458   :  { %v1240_v47 = vadd.f32 %v1239_v41, %v1238_v25 }
 0x45a   :  { %v1242_v17 = vadd.f32 %v1241_v0, %v1240_v47 }
 0x45c   :  { %v1243_v51 = vrot.slane %v1242_v17, 4 }
 0x45e   :  { %v1244_v62 = vadd.f32 %v1243_v51, %v1242_v17 }
 0x460   :  { %v1245_v11 = vrot.slane %v1244_v62, 2 }
 0x462   :  { %v1246_v14 = vadd.f32 %v1245_v11, %v1244_v62 }
 0x464   :  { %v1247_v59 = vrot.slane %v1246_v14, 1 }
 0x466   :  { %v1248_v31 = vadd.f32 %v1247_v59, %v1246_v14 }
 0x468   :  { %v1249_v19 = vmul.f32 0.0078125, %v1248_v31 }
 0x46a   :  { %v1250_v40 = vadd.f32 1e-05, %v1249_v19 }
 0x46c   :  { %1960 = vrsqrt.f32 %v1250_v40 }
 0x479   :  { %v1961_v54 = vpop.eup %1960 }
 0x47a   :  { %v1252_v22 = vmul.f32 %v1961_v54, %v1140_v15 }
 0x47c   :  { %v1257_v63 = vrot.slane %v1252_v22, %v3746_v58 }
 0x47e   :  { %v1259_v35 = vmul.f32 %v1257_v63, %v3194_v3  ;;  %v1260_v55 = vmul.f32 %v1257_v63, %v3197_v56  ;;  %v1261_v1 = vmul.f32 %v1257_v63, %v3200_v7  ;;  %v1262_v49 = vmul.f32 %v1257_v63, %v3203_v42 }
 0x47f   :  { %v1263_v44 = vmul.f32 %v1257_v63, %v3210_v29  ;;  %v1264_v60 = vmul.f32 %v1257_v63, %v3215_v5  ;;  %v1265_v34 = vmul.f32 %v1257_v63, %v3222_v45  ;;  %v1266_v27 = vmul.f32 %v1257_v63, %v3228_v9 }
 0x480   :  { %v1267_v3 = vmul.f32 %v1257_v63, %v3234_v18  ;;  %v1268_v56 = vmul.f32 %v1257_v63, %v3240_v10  ;;  %v1269_v57 = vmul.f32 %v1257_v63, %v1190_v4  ;;  %v1270_v7 = vmul.f32 %v1257_v63, %v1191_v33 }
 0x481   :  { %v1271_v46 = vmul.f32 %v1257_v63, %v1192_v30  ;;  %v1272_v42 = vmul.f32 %v1257_v63, %v1193_v2  ;;  %v1273_v21 = vmul.f32 %v1257_v63, %v1194_v37  ;;  %v1274_v48 = vmul.f32 %v1257_v63, %v1195_v36 }
 0x482   :  { %v1281_v12 = vadd.f32 %v1503_v53, %v1259_v35  ;;  %v1282_v38 = vadd.f32 %v1503_v53, %v1260_v55  ;;  %v1283_v28 = vadd.f32 %v1503_v53, %v1261_v1  ;;  %v1284_v29 = vadd.f32 %v1503_v53, %v1262_v49 }
 0x483   :  { %v1285_v50 = vadd.f32 %v1503_v53, %v1263_v44  ;;  %v1286_v5 = vadd.f32 %v1503_v53, %v1264_v60  ;;  %v1287_v24 = vadd.f32 %v1503_v53, %v1265_v34  ;;  %v1288_v45 = vadd.f32 %v1503_v53, %v1266_v27 }
 0x484   :  { %v1289_v23 = vadd.f32 %v1503_v53, %v1267_v3  ;;  %v1290_v9 = vadd.f32 %v1503_v53, %v1268_v56  ;;  %v1291_v8 = vadd.f32 %v1503_v53, %v1269_v57  ;;  %v1292_v18 = vadd.f32 %v1503_v53, %v1270_v7 }
 0x485   :  { %v1293_v13 = vadd.f32 %v1503_v53, %v1271_v46  ;;  %v1294_v10 = vadd.f32 %v1503_v53, %v1272_v42  ;;  %v1295_v4 = vadd.f32 %v1503_v53, %v1273_v21  ;;  %v1296_v33 = vadd.f32 %v1503_v53, %v1274_v48 }
 0x486   :  { %v1297_v30 = vmax.f32 %v1281_v12, 0.0  ;;  %v1298_v2 = vmax.f32 %v1282_v38, 0.0  ;;  %v1299_v37 = vmax.f32 %v1283_v28, 0.0  ;;  %v1300_v52 = vmax.f32 %v1284_v29, 0.0 }
 0x487   :  { %v1301_v36 = vmax.f32 %v1285_v50, 0.0  ;;  %v1302_v6 = vmax.f32 %v1286_v5, 0.0  ;;  %v1303_v20 = vmax.f32 %v1287_v24, 0.0  ;;  %v1304_v16 = vmax.f32 %v1288_v45, 0.0 }
 0x488   :  { %v1305_v61 = vmax.f32 %v1289_v23, 0.0  ;;  %v1306_v32 = vmax.f32 %v1290_v9, 0.0  ;;  %v1307_v39 = vmax.f32 %v1291_v8, 0.0  ;;  %v1308_v26 = vmax.f32 %v1292_v18, 0.0 }
 0x489   :  { %v1309_v43 = vmax.f32 %v1293_v13, 0.0  ;;  %v1310_v25 = vmax.f32 %v1294_v10, 0.0  ;;  %v1311_v41 = vmax.f32 %v1295_v4, 0.0  ;;  %v1312_v47 = vmax.f32 %v1296_v33, 0.0 }
 0x48a   :  { %v3281_v0 = vmin.f32 %v1297_v30, 6.0  ;;  %v3283_v17 = vmin.f32 %v1298_v2, 6.0  ;;  %v3285_v51 = vmin.f32 %v1299_v37, 6.0  ;;  %v3287_v62 = vmin.f32 %v1300_v52, 6.0 }
 0x48b   :  { %v3289_v11 = vmin.f32 %v1301_v36, 6.0  ;;  %v3291_v14 = vmin.f32 %v1302_v6, 6.0  ;;  %v3293_v59 = vmin.f32 %v1303_v20, 6.0  ;;  %v3295_v31 = vmin.f32 %v1304_v16, 6.0 }
 0x48c   :  { %v3297_v19 = vmin.f32 %v1305_v61, 6.0  ;;  %v3299_v40 = vmin.f32 %v1306_v32, 6.0  ;;  %v3301_v15 = vmin.f32 %v1307_v39, 6.0  ;;  %v3303_v54 = vmin.f32 %v1308_v26, 6.0 }
 0x48d   :  { %v3305_v22 = vmin.f32 %v1309_v43, 6.0  ;;  %v3307_v58 = vmin.f32 %v1310_v25, 6.0  ;;  %v3309_v63 = vmin.f32 %v1311_v41, 6.0  ;;  %v3311_v35 = vmin.f32 %v1312_v47, 6.0 }
 0x48e   :  { %v1329_v55 = vand.u32 2147483647, %v3281_v0  ;;  %v1330_v1 = vand.u32 2147483647, %v3283_v17  ;;  %v1331_v49 = vand.u32 2147483647, %v3285_v51 }
 0x48f   :  { %v1332_v53 = vand.u32 2147483647, %v3287_v62  ;;  %v1333_v44 = vand.u32 2147483647, %v3289_v11  ;;  %v1334_v60 = vand.u32 2147483647, %v3291_v14 }
 0x490   :  { %v1335_v34 = vand.u32 2147483647, %v3293_v59  ;;  %v1336_v27 = vand.u32 2147483647, %v3295_v31  ;;  %v1337_v3 = vand.u32 2147483647, %v3297_v19 }
 0x491   :  { %v1338_v56 = vand.u32 2147483647, %v3299_v40  ;;  %v1339_v57 = vand.u32 2147483647, %v3301_v15  ;;  %v1340_v7 = vand.u32 2147483647, %v3303_v54 }
 0x492   :  { %v1341_v46 = vand.u32 2147483647, %v3305_v22  ;;  %v1342_v42 = vand.u32 2147483647, %v3307_v58  ;;  %v1343_v21 = vand.u32 2147483647, %v3309_v63 }
 0x493   :  { %v1344_v48 = vand.u32 2147483647, %v3311_v35  ;;  %v1345_v12 = vsel %vm1003_vm1, %v1329_v55, -inf  ;;  %v1346_v38 = vsel %vm1003_vm1, %v1330_v1, -inf  ;;  %v1347_v28 = vsel %vm1003_vm1, %v1331_v49, -inf }
 0x494   :  { %v1348_v29 = vsel %vm1003_vm1, %v1332_v53, -inf  ;;  %v1349_v50 = vsel %vm1003_vm1, %v1333_v44, -inf  ;;  %v1351_v5 = vsel %vm1003_vm1, %v1334_v60, -inf  ;;  %v1353_v24 = vsel %vm1003_vm1, %v1335_v34, -inf }
 0x495   :  { %v1350_v45 = vmax.f32 %v1345_v12, %v1349_v50  ;;  %v1352_v23 = vmax.f32 %v1346_v38, %v1351_v5  ;;  %v1354_v9 = vmax.f32 %v1347_v28, %v1353_v24  ;;  %v1355_v8 = vsel %vm1003_vm1, %v1336_v27, -inf }
 0x496   :  { %v1356_v18 = vmax.f32 %v1348_v29, %v1355_v8  ;;  %v1357_v13 = vsel %vm1003_vm1, %v1337_v3, -inf  ;;  %v1359_v10 = vsel %vm1003_vm1, %v1338_v56, -inf  ;;  %v1361_v4 = vsel %vm1003_vm1, %v1339_v57, -inf }
 0x497   :  { %v1358_v33 = vmax.f32 %v1350_v45, %v1357_v13  ;;  %v1360_v30 = vmax.f32 %v1352_v23, %v1359_v10  ;;  %v1362_v2 = vmax.f32 %v1354_v9, %v1361_v4  ;;  %v1363_v37 = vsel %vm1003_vm1, %v1340_v7, -inf }
 0x498   :  { %v1364_v52 = vmax.f32 %v1356_v18, %v1363_v37  ;;  %v1365_v36 = vsel %vm1003_vm1, %v1341_v46, -inf  ;;  %v1367_v6 = vsel %vm1003_vm1, %v1342_v42, -inf  ;;  %v1369_v20 = vsel %vm1003_vm1, %v1343_v21, -inf }
 0x499   :  { %v1366_v16 = vmax.f32 %v1358_v33, %v1365_v36  ;;  %v1368_v61 = vmax.f32 %v1360_v30, %v1367_v6  ;;  %v1370_v32 = vmax.f32 %v1362_v2, %v1369_v20  ;;  %v1371_v39 = vsel %vm1003_vm1, %v1344_v48, -inf }
 0x49a   :  { %v1372_v26 = vmax.f32 %v1364_v52, %v1371_v39 }
 0x49b   :  { %v1373_v43 = vmax.f32 %v1366_v16, %v1368_v61 }
 0x49c   :  { %v1374_v25 = vmax.f32 %v1370_v32, %v1372_v26 }
 0x49e   :  { %v1375_v41 = vmax.f32 %v1373_v43, %v1374_v25 }
 0x4a0   :  { %1376 = vmax.xlane.f32.xlu0 %v1375_v41 }
 0x529   :  { %v1377_v47 = vpop.xlane.xlu0 %1376 }
 0x52a   :  { %v1378_v55 = vrot.slane %v1377_v47, 4 }
 0x52c   :  { %v1379_v1 = vmax.f32 %v1377_v47, %v1378_v55 }
 0x52e   :  { %v1380_v49 = vrot.slane %v1379_v1, 2 }
 0x530   :  { %v1381_v53 = vmax.f32 %v1379_v1, %v1380_v49 }
 0x532   :  { %v1382_v44 = vrot.slane %v1381_v53, 1 }
 0x534   :  { %v1383_v60 = vmax.f32 %v1381_v53, %v1382_v44 }
 0x536   :  { %1765 = vpush %v1383_v60 }
 0x567   :  { %s1766_s2 = spop %1765 }
 0x568   :  { %s1385_s3 = smax.f32 %s1969_s21, %s1766_s2 }
 0x569   :  { %v1386_v34 = vstv %s1385_s3 }
 0x56a   :  { %1962 = vlog2.f32 %v1386_v34 }
 0x577   :  { %v1963_v27 = vpop.eup %1962 }
 0x578   :  { %v1388_v3 = vmul.f32 0.6931472, %v1963_v27 }
 0x57a   :  { %v1389_v56 = vmul.f32 1.442695, %v1388_v3 }
 0x57c   :  { %v1390_v57 = vceil.f32 %v1389_v56 }
 0x57e   :  { %v1504_v7 = vadd.f32 -7.0, %v1390_v57  ;;  %v1395_v21 = vsub.f32 7.0, %v1390_v57 }
 0x580   :  { %v1392_v46 = vmul.f32 0.6931472, %v1504_v7  ;;  %v1396_v48 = vmul.f32 0.6931472, %v1395_v21 }
 0x582   :  { %v1393_v42 = vmul.f32 1.442695, %v1392_v46  ;;  %v1397_v12 = vmul.f32 1.442695, %v1396_v48 }
 0x584   :  { %1964 = vpow2.f32 %v1393_v42 }
 0x585   :  { %1966 = vpow2.f32 %v1397_v12 }
 0x591   :  { %v3346_v38 = vpop.eup %1964 }
 0x592   :  { %v1399_v28 = vmul.f32 -128.0, %v3346_v38  ;;  %v1400_v29 = vmul.f32 127.0, %v3346_v38 }
 0x594   :  { %v1401_v50 = vmax.f32 %v1399_v28, %v3281_v0  ;;  %v1402_v5 = vmax.f32 %v1399_v28, %v3283_v17  ;;  %v1403_v24 = vmax.f32 %v1399_v28, %v3285_v51  ;;  %v1404_v45 = vmax.f32 %v1399_v28, %v3287_v62 }
 0x595   :  { %v1405_v23 = vmax.f32 %v1399_v28, %v3289_v11  ;;  %v1406_v9 = vmax.f32 %v1399_v28, %v3291_v14  ;;  %v1407_v8 = vmax.f32 %v1399_v28, %v3293_v59  ;;  %v1408_v18 = vmax.f32 %v1399_v28, %v3295_v31 }
 0x596   :  { %v1409_v13 = vmax.f32 %v1399_v28, %v3297_v19  ;;  %v1410_v10 = vmax.f32 %v1399_v28, %v3299_v40  ;;  %v1411_v0 = vmax.f32 %v1399_v28, %v3301_v15  ;;  %v1412_v17 = vmax.f32 %v1399_v28, %v3303_v54  ;;  %v1967_v54 = vpop.eup %1966 }
 0x597   :  { %v1413_v51 = vmax.f32 %v1399_v28, %v3305_v22  ;;  %v1414_v62 = vmax.f32 %v1399_v28, %v3307_v58  ;;  %v1415_v11 = vmax.f32 %v1399_v28, %v3309_v63  ;;  %v1416_v14 = vmax.f32 %v1399_v28, %v3311_v35 }
 0x598   :  { %v1417_v4 = vmin.f32 %v1400_v29, %v1401_v50  ;;  %v1418_v59 = vmin.f32 %v1400_v29, %v1402_v5  ;;  %v1419_v33 = vmin.f32 %v1400_v29, %v1403_v24  ;;  %v1420_v31 = vmin.f32 %v1400_v29, %v1404_v45 }
 0x599   :  { %v1421_v30 = vmin.f32 %v1400_v29, %v1405_v23  ;;  %v1422_v19 = vmin.f32 %v1400_v29, %v1406_v9  ;;  %v1423_v2 = vmin.f32 %v1400_v29, %v1407_v8  ;;  %v1424_v40 = vmin.f32 %v1400_v29, %v1408_v18 }
 0x59a   :  { %v1425_v37 = vmin.f32 %v1400_v29, %v1409_v13  ;;  %v1426_v15 = vmin.f32 %v1400_v29, %v1410_v10  ;;  %v1427_v52 = vmin.f32 %v1400_v29, %v1411_v0  ;;  %v1428_v36 = vmin.f32 %v1400_v29, %v1412_v17 }
 0x59b   :  { %v1429_v22 = vmin.f32 %v1400_v29, %v1413_v51  ;;  %v1430_v6 = vmin.f32 %v1400_v29, %v1414_v62  ;;  %v1431_v58 = vmin.f32 %v1400_v29, %v1415_v11  ;;  %v1432_v20 = vmin.f32 %v1400_v29, %v1416_v14 }
 0x59c   :  { %v3366_v63 = vmul.f32 %v1967_v54, %v1417_v4  ;;  %v3368_v35 = vmul.f32 %v1967_v54, %v1418_v59  ;;  %v3370_v16 = vmul.f32 %v1967_v54, %v1419_v33  ;;  %v3372_v61 = vmul.f32 %v1967_v54, %v1420_v31 }
 0x59d   :  { %v3374_v32 = vmul.f32 %v1967_v54, %v1421_v30  ;;  %v3376_v39 = vmul.f32 %v1967_v54, %v1422_v19  ;;  %v3378_v26 = vmul.f32 %v1967_v54, %v1423_v2  ;;  %v3380_v43 = vmul.f32 %v1967_v54, %v1424_v40 }
 0x59e   :  { %v3382_v25 = vmul.f32 %v1967_v54, %v1425_v37  ;;  %v3384_v41 = vmul.f32 %v1967_v54, %v1426_v15  ;;  %v3386_v47 = vmul.f32 %v1967_v54, %v1427_v52  ;;  %v3388_v55 = vmul.f32 %v1967_v54, %v1428_v36 }
 0x59f   :  { %v3390_v1 = vmul.f32 %v1967_v54, %v1429_v22  ;;  %v3392_v49 = vmul.f32 %v1967_v54, %v1430_v6  ;;  %v3394_v53 = vmul.f32 %v1967_v54, %v1431_v58  ;;  %v3396_v44 = vmul.f32 %v1967_v54, %v1432_v20 }
 0x5a0   :  { %v1767_v60 = vand.u32 2147483647, %v3366_v63  ;;  %v1769_v34 = vcvt.f32.s32 %v3366_v63  ;;  %v1775_v27 = vand.u32 2147483647, %v3368_v35  ;;  %v1772_v3 = vand.u32 2147483648, %v3366_v63 }
 0x5a1   :  { %v1777_v56 = vcvt.f32.s32 %v3368_v35  ;;  %v1783_v57 = vand.u32 2147483647, %v3370_v16  ;;  %v1785_v7 = vcvt.f32.s32 %v3370_v16  ;;  %v1780_v48 = vand.u32 2147483648, %v3368_v35 }
 0x5a2   :  { %vm3405_vm3 = vcmp.lt.f32.partialorder %v1767_v60, 8388608.0  ;;  %v1770_v42 = vcvt.s32.f32 %v1769_v34  ;;  %vm3409_vm4 = vcmp.lt.f32.partialorder %v1775_v27, 8388608.0  ;;  %v1788_v29 = vand.u32 2147483648, %v3370_v16 }
 0x5a3   :  { %v1778_v12 = vcvt.s32.f32 %v1777_v56  ;;  %v1786_v28 = vcvt.s32.f32 %v1785_v7  ;;  %v1791_v50 = vand.u32 2147483647, %v3372_v61  ;;  %vm3416_vm5 = vcmp.lt.f32.partialorder %v1783_v57, 8388608.0 }
 0x5a4   :  { %v1771_v5 = vand.u32 2147483647, %v1770_v42  ;;  %v1793_v45 = vcvt.f32.s32 %v3372_v61  ;;  %v1799_v23 = vand.u32 2147483647, %v3374_v32  ;;  %v1796_v18 = vand.u32 2147483648, %v3372_v61 }
 0x5a5   :  { %v1779_v9 = vand.u32 2147483647, %v1778_v12  ;;  %v1787_v8 = vand.u32 2147483647, %v1786_v28  ;;  %v1801_v13 = vcvt.f32.s32 %v3374_v32  ;;  %vm3426_vm6 = vcmp.lt.f32.partialorder %v1791_v50, 8388608.0 }
 0x5a6   :  { %v3424_v10 = vor.u32 %v1772_v3, %v1771_v5  ;;  %v1794_v17 = vcvt.s32.f32 %v1793_v45  ;;  %vm3430_vm7 = vcmp.lt.f32.partialorder %v1799_v23, 8388608.0  ;;  %v1807_v4 = vand.u32 2147483647, %v3376_v39 }
 0x5a7   :  { %v3434_v62 = vor.u32 %v1780_v48, %v1779_v9  ;;  %v3436_v11 = vor.u32 %v1788_v29, %v1787_v8  ;;  %v1802_v14 = vcvt.s32.f32 %v1801_v13  ;;  %v1804_v31 = vand.u32 2147483648, %v3374_v32 }
 0x5a8   :  { %v1774_v59 = vsel %vm3405_vm3, %v3424_v10, %v3366_v63  ;;  %v1795_v33 = vand.u32 2147483647, %v1794_v17  ;;  %v1809_v30 = vcvt.f32.s32 %v3376_v39  ;;  %v1812_v37 = vand.u32 2147483648, %v3376_v39 }
 0x5a9   :  { %v1782_v19 = vsel %vm3409_vm4, %v3434_v62, %v3368_v35  ;;  %v1790_v2 = vsel %vm3416_vm5, %v3436_v11, %v3370_v16  ;;  %v1803_v40 = vand.u32 2147483647, %v1802_v14  ;;  %v1815_v54 = vand.u32 2147483647, %v3378_v26 }
 0x5aa   :  { %v3454_v15 = vor.u32 %v1796_v18, %v1795_v33  ;;  %v1810_v52 = vcvt.s32.f32 %v1809_v30  ;;  %v1817_v36 = vcvt.f32.s32 %v3378_v26  ;;  %vm3460_vm8 = vcmp.lt.f32.partialorder %v1807_v4, 8388608.0 }
 0x5ab   :  { %v3458_v22 = vor.u32 %v1804_v31, %v1803_v40  ;;  %v1823_v58 = vand.u32 2147483647, %v3380_v43  ;;  %v1825_v20 = vcvt.f32.s32 %v3380_v43  ;;  %v1820_v3 = vand.u32 2147483648, %v3378_v26 }
 0x5ac   :  { %v1798_v60 = vsel %vm3426_vm6, %v3454_v15, %v3372_v61  ;;  %v1811_v34 = vand.u32 2147483647, %v1810_v52  ;;  %v1818_v27 = vcvt.s32.f32 %v1817_v36  ;;  %vm3475_vm9 = vcmp.lt.f32.partialorder %v1815_v54, 8388608.0 }
 0x5ad   :  { %v1806_v56 = vsel %vm3430_vm7, %v3458_v22, %v3374_v32  ;;  %vm3479_vm10 = vcmp.lt.f32.partialorder %v1823_v58, 8388608.0  ;;  %v1826_v42 = vcvt.s32.f32 %v1825_v20  ;;  %v1831_v28 = vand.u32 2147483647, %v3382_v25 }
 0x5ae   :  { %v3483_v48 = vor.u32 %v1812_v37, %v1811_v34  ;;  %v1819_v12 = vand.u32 2147483647, %v1818_v27  ;;  %v1833_v29 = vcvt.f32.s32 %v3382_v25  ;;  %v1828_v5 = vand.u32 2147483648, %v3380_v43 }
 0x5af   :  { %v1827_v50 = vand.u32 2147483647, %v1826_v42  ;;  %v1839_v45 = vand.u32 2147483647, %v3384_v41  ;;  %v1841_v23 = vcvt.f32.s32 %v3384_v41  ;;  %v1836_v13 = vand.u32 2147483648, %v3382_v25 }
 0x5b0   :  { %v1814_v9 = vsel %vm3460_vm8, %v3483_v48, %v3376_v39  ;;  %v3494_v8 = vor.u32 %v1820_v3, %v1819_v12  ;;  %v1834_v18 = vcvt.s32.f32 %v1833_v29  ;;  %vm3499_vm11 = vcmp.lt.f32.partialorder %v1831_v28, 8388608.0 }
 0x5b1   :  { %v3497_v17 = vor.u32 %v1828_v5, %v1827_v50  ;;  %vm3503_vm12 = vcmp.lt.f32.partialorder %v1839_v45, 8388608.0  ;;  %v1842_v33 = vcvt.s32.f32 %v1841_v23  ;;  %v1844_v30 = vand.u32 2147483648, %v3384_v41 }
 0x5b2   :  { %v1835_v31 = vand.u32 2147483647, %v1834_v18  ;;  %v1847_v40 = vand.u32 2147483647, %v3386_v47  ;;  %v1849_v37 = vcvt.f32.s32 %v3386_v47  ;;  %v1822_v52 = vsel %vm3475_vm9, %v3494_v8, %v3378_v26 }
 0x5b3   :  { %v1830_v54 = vsel %vm3479_vm10, %v3497_v17, %v3380_v43  ;;  %v1843_v36 = vand.u32 2147483647, %v1842_v33  ;;  %v1855_v58 = vand.u32 2147483647, %v3388_v55  ;;  %v1852_v27 = vand.u32 2147483648, %v3386_v47 }
 0x5b4   :  { %v1837_v20 = vor.u32 %v1836_v13, %v1835_v31  ;;  %v1850_v34 = vcvt.s32.f32 %v1849_v37  ;;  %v1857_v3 = vcvt.f32.s32 %v3388_v55  ;;  %vm3521_vm13 = vcmp.lt.f32.partialorder %v1847_v40, 8388608.0 }
 0x5b5   :  { %v1845_v42 = vor.u32 %v1844_v30, %v1843_v36  ;;  %vm3525_vm14 = vcmp.lt.f32.partialorder %v1855_v58, 8388608.0  ;;  %v1863_v43 = vand.u32 2147483647, %v3390_v1  ;;  %v1860_v28 = vand.u32 2147483648, %v3388_v55 }
 0x5b6   :  { %v1851_v57 = vand.u32 2147483647, %v1850_v34  ;;  %v1858_v7 = vcvt.s32.f32 %v1857_v3  ;;  %v1865_v29 = vcvt.f32.s32 %v3390_v1  ;;  %v1838_v50 = vsel %vm3499_vm11, %v1837_v20, %v3382_v25 }
 0x5b7   :  { %v1846_v5 = vsel %vm3503_vm12, %v1845_v42, %v3384_v41  ;;  %vm3538_vm15 = vcmp.lt.f32.partialorder %v1863_v43, 8388608.0  ;;  %v1871_v23 = vand.u32 2147483647, %v3392_v49  ;;  %v1873_v17 = vcvt.f32.s32 %v3392_v49 }
 0x5b8   :  { %v1853_v8 = vor.u32 %v1852_v27, %v1851_v57  ;;  %v1859_v18 = vand.u32 2147483647, %v1858_v7  ;;  %v1866_v13 = vcvt.s32.f32 %v1865_v29  ;;  %v1868_v33 = vand.u32 2147483648, %v3390_v1 }
 0x5b9   :  { %vm3545_vm0 = vcmp.lt.f32.partialorder %v1871_v23, 8388608.0  ;;  %v1879_v25 = vand.u32 2147483647, %v3394_v53  ;;  %v1881_v41 = vcvt.f32.s32 %v3394_v53  ;;  %v1874_v30 = vcvt.s32.f32 %v1873_v17 }
 0x5ba   :  { %v1861_v4 = vor.u32 %v1860_v28, %v1859_v18  ;;  %v1867_v31 = vand.u32 2147483647, %v1866_v13  ;;  %v1876_v40 = vand.u32 2147483648, %v3392_v49  ;;  %v1854_v37 = vsel %vm3521_vm13, %v1853_v8, %v3386_v47 }
 0x5bb   :  { %vm3555_vm2 = vcmp.lt.f32.partialorder %v1879_v25, 8388608.0  ;;  %v1882_v58 = vcvt.s32.f32 %v1881_v41  ;;  %v1884_v20 = vand.u32 2147483648, %v3394_v53  ;;  %v1875_v27 = vand.u32 2147483647, %v1874_v30 }
 0x5bc   :  { %v1869_v34 = vor.u32 %v1868_v33, %v1867_v31  ;;  %v1887_v3 = vand.u32 2147483647, %v3396_v44  ;;  %v1889_v42 = vcvt.f32.s32 %v3396_v44  ;;  %v1862_v43 = vsel %vm3525_vm14, %v1861_v4, %v3388_v55 }
 0x5bd   :  { %v1883_v57 = vand.u32 2147483647, %v1882_v58  ;;  %v1892_v47 = vand.u32 2147483648, %v3396_v44  ;;  %v1465_v12 = vmul.f32 %v3346_v38, %v1774_v59  ;;  %v1877_v28 = vor.u32 %v1876_v40, %v1875_v27 }
 0x5be   :  { %v1870_v7 = vsel %vm3538_vm15, %v1869_v34, %v3390_v1  ;;  %v1890_v29 = vcvt.s32.f32 %v1889_v42  ;;  %v1466_v55 = vmul.f32 %v3346_v38, %v1782_v19  ;;  %v1467_v63 = vmul.f32 %v3346_v38, %v1790_v2 }
 0x5bf   :  { %v1885_v26 = vor.u32 %v1884_v20, %v1883_v57  ;;  %v1468_v1 = vmul.f32 %v3346_v38, %v1798_v60  ;;  %v1469_v35 = vmul.f32 %v3346_v38, %v1806_v56  ;;  %1481 = vst.msk [vmem:[%s3690_s4] sm:$0xff] %vm1003_vm1, %v1465_v12  ;;  %v1878_v16 = vsel %vm3545_vm0, %v1877_v28, %v3392_v49 }
 0x5c0   :  { %v1891_v46 = vand.u32 2147483647, %v1890_v29  ;;  %v1470_v61 = vmul.f32 %v3346_v38, %v1814_v9  ;;  %v1471_v32 = vmul.f32 %v3346_v38, %v1822_v52  ;;  %1482 = vst.msk [vmem:[%s3690_s4 + $0x8] sm:$0xff] %vm1003_vm1, %v1466_v55  ;;  %v1472_v49 = vmul.f32 %v3346_v38, %v1830_v54  ;;  %1483 = vst.msk [vmem:[%s3690_s4 + $0x10] sm:$0xff] %vm1003_vm1, %v1467_v63 }
 0x5c1   :  { %v1886_v21 = vsel %vm3555_vm2, %v1885_v26, %v3394_v53  ;;  %v1473_v24 = vmul.f32 %v3346_v38, %v1838_v50  ;;  %v1474_v10 = vmul.f32 %v3346_v38, %v1846_v5  ;;  %1484 = vst.msk [vmem:[%s3690_s4 + $0x18] sm:$0xff] %vm1003_vm1, %v1468_v1  ;;  %1485 = vst.msk [vmem:[%s3690_s4 + $0x20] sm:$0xff] %vm1003_vm1, %v1469_v35  ;;  %vm1888_vm3 = vcmp.lt.f32.partialorder %v1887_v3, 8388608.0 }
 0x5c2   :  { %v1893_v39 = vor.u32 %v1892_v47, %v1891_v46  ;;  %v1475_v53 = vmul.f32 %v3346_v38, %v1854_v37  ;;  %v1476_v0 = vmul.f32 %v3346_v38, %v1862_v43  ;;  %v1477_v51 = vmul.f32 %v3346_v38, %v1870_v7  ;;  %1486 = vst.msk [vmem:[%s3690_s4 + $0x28] sm:$0xff] %vm1003_vm1, %v1470_v61 }
 0x5c3   :  { %1487 = vst.msk [vmem:[%s3690_s4 + $0x30] sm:$0xff] %vm1003_vm1, %v1471_v32  ;;  %v1478_v62 = vmul.f32 %v3346_v38, %v1878_v16  ;;  %v1479_v11 = vmul.f32 %v3346_v38, %v1886_v21  ;;  %1488 = vst.msk [vmem:[%s3690_s4 + $0x38] sm:$0xff] %vm1003_vm1, %v1472_v49 }
 0x5c4   :  { %1489 = vst.msk [vmem:[%s3690_s4 + $0x40] sm:$0xff] %vm1003_vm1, %v1473_v24  ;;  %1490 = vst.msk [vmem:[%s3690_s4 + $0x48] sm:$0xff] %vm1003_vm1, %v1474_v10  ;;  %v1894_v59 = vsel %vm1888_vm3, %v1893_v39, %v3396_v44 }
 0x5c5   :  { %1491 = vst.msk [vmem:[%s3690_s4 + $0x50] sm:$0xff] %vm1003_vm1, %v1475_v53  ;;  %1492 = vst.msk [vmem:[%s3690_s4 + $0x58] sm:$0xff] %vm1003_vm1, %v1476_v0  ;;  %v1480_v19 = vmul.f32 %v3346_v38, %v1894_v59 }
 0x5c6   :  { %1493 = vst.msk [vmem:[%s3690_s4 + $0x60] sm:$0xff] %vm1003_vm1, %v1477_v51  ;;  %1494 = vst.msk [vmem:[%s3690_s4 + $0x68] sm:$0xff] %vm1003_vm1, %v1478_v62 }
 0x5c7   :  { %1495 = vst.msk [vmem:[%s3690_s4 + $0x70] sm:$0xff] %vm1003_vm1, %v1479_v11  ;;  %1496 = vst.msk [vmem:[%s3690_s4 + $0x78] sm:$0xff] %vm1003_vm1, %v1480_v19 }

// kernel: inverted_residual_forward.5
= control target key start
LH: loop header
LB: loop body
LE: loop exit
PB: predicated region body
PF: predicated region fallthrough
CT: control target
= control target key end

     0   :  { %vm45_vm0 = vcmask 261120   ;;  %s1205_s20 = smov 1e-30   ;;  %s2166_s0 = inlined_call_operand.vmem [shape: f32[128,32], index: 0, kind: input, shape index: {}]   ;;  %s2167_s1 = inlined_call_operand.vmem [shape: f32[1,32], index: 1, kind: input, shape index: {}]   ;;  %s2168_s2 = inlined_call_operand.vmem [shape: f32[1,32], index: 2, kind: input, shape index: {}]   ;;  %s2169_s3 = inlined_call_operand.vmem [shape: f32[32,8], index: 3, kind: input, shape index: {}]   ;;  %s2170_s4 = inlined_call_operand.vmem [shape: f32[1,8], index: 4, kind: input, shape index: {}]   ;;  %s2171_s5 = inlined_call_operand.vmem [shape: f32[1,8], index: 5, kind: input, shape index: {}]   ;;  %s2172_s6 = inlined_call_operand.vmem [shape: f32[128,8], index: 6, kind: input, shape index: {}]   ;;  %s2173_s7 = inlined_call_operand.vmem [shape: f32[128,8], index: 7, kind: output, shape index: {}]  }
   0x1   :  { %v27_v0 = vld [vmem:[%s2166_s0] sm:$0xff]  ;;  %v28_v1 = vld [vmem:[%s2166_s0 + $0x8] sm:$0xff]  ;;  %v29_v2 = vld [vmem:[%s2166_s0 + $0x10] sm:$0xff] }
   0x2   :  { %v30_v3 = vld [vmem:[%s2166_s0 + $0x18] sm:$0xff]  ;;  %v46_v4 = vsel %vm45_vm0, %v27_v0, 0.0  ;;  %v47_v5 = vsel %vm45_vm0, %v28_v1, 0.0  ;;  %v49_v6 = vsel %vm45_vm0, %v29_v2, 0.0  ;;  %v31_v7 = vld [vmem:[%s2166_s0 + $0x20] sm:$0xff]  ;;  %v32_v10 = vld [vmem:[%s2166_s0 + $0x28] sm:$0xff] }
   0x3   :  { %v48_v8 = vadd.f32 %v47_v5, %v46_v4  ;;  %v51_v9 = vsel %vm45_vm0, %v30_v3, 0.0  ;;  %v53_v12 = vsel %vm45_vm0, %v31_v7, 0.0  ;;  %v33_v13 = vld [vmem:[%s2166_s0 + $0x30] sm:$0xff]  ;;  %v55_v15 = vsel %vm45_vm0, %v32_v10, 0.0  ;;  %v34_v16 = vld [vmem:[%s2166_s0 + $0x38] sm:$0xff]  ;;  %v35_v19 = vld [vmem:[%s2166_s0 + $0x40] sm:$0xff] }
   0x4   :  { %v57_v18 = vsel %vm45_vm0, %v33_v13, 0.0  ;;  %v59_v21 = vsel %vm45_vm0, %v34_v16, 0.0  ;;  %v36_v22 = vld [vmem:[%s2166_s0 + $0x48] sm:$0xff]  ;;  %v61_v24 = vsel %vm45_vm0, %v35_v19, 0.0  ;;  %v37_v25 = vld [vmem:[%s2166_s0 + $0x50] sm:$0xff]  ;;  %v38_v28 = vld [vmem:[%s2166_s0 + $0x58] sm:$0xff] }
   0x5   :  { %v50_v11 = vadd.f32 %v49_v6, %v48_v8  ;;  %v63_v27 = vsel %vm45_vm0, %v36_v22, 0.0  ;;  %v65_v30 = vsel %vm45_vm0, %v37_v25, 0.0  ;;  %v39_v31 = vld [vmem:[%s2166_s0 + $0x60] sm:$0xff]  ;;  %v67_v33 = vsel %vm45_vm0, %v38_v28, 0.0  ;;  %v40_v34 = vld [vmem:[%s2166_s0 + $0x68] sm:$0xff]  ;;  %v41_v37 = vld [vmem:[%s2166_s0 + $0x70] sm:$0xff] }
   0x6   :  { %v69_v36 = vsel %vm45_vm0, %v39_v31, 0.0  ;;  %v71_v39 = vsel %vm45_vm0, %v40_v34, 0.0  ;;  %v42_v40 = vld [vmem:[%s2166_s0 + $0x78] sm:$0xff]  ;;  %v73_v42 = vsel %vm45_vm0, %v41_v37, 0.0 }
   0x7   :  { %v52_v14 = vadd.f32 %v51_v9, %v50_v11  ;;  %v75_v44 = vsel %vm45_vm0, %v42_v40, 0.0 }
   0x9   :  { %v54_v17 = vadd.f32 %v53_v12, %v52_v14 }
   0xb   :  { %v56_v20 = vadd.f32 %v55_v15, %v54_v17 }
   0xd   :  { %v58_v23 = vadd.f32 %v57_v18, %v56_v20 }
   0xf   :  { %v60_v26 = vadd.f32 %v59_v21, %v58_v23 }
  0x11   :  { %v62_v29 = vadd.f32 %v61_v24, %v60_v26 }
  0x13   :  { %v64_v32 = vadd.f32 %v63_v27, %v62_v29 }
  0x15   :  { %v66_v35 = vadd.f32 %v65_v30, %v64_v32 }
  0x17   :  { %v68_v38 = vadd.f32 %v67_v33, %v66_v35 }
  0x19   :  { %v70_v41 = vadd.f32 %v69_v36, %v68_v38 }
  0x1b   :  { %v72_v43 = vadd.f32 %v71_v39, %v70_v41 }
  0x1d   :  { %v74_v45 = vadd.f32 %v73_v42, %v72_v43 }
  0x1f   :  { %v76_v46 = vadd.f32 %v75_v44, %v74_v45 }
  0x21   :  { %v77_v47 = vrot.slane %v76_v46, 4 }
  0x23   :  { %v78_v48 = vadd.f32 %v77_v47, %v76_v46 }
  0x25   :  { %v79_v49 = vrot.slane %v78_v48, 2 }
  0x27   :  { %v80_v50 = vadd.f32 %v79_v49, %v78_v48 }
  0x29   :  { %v81_v51 = vrot.slane %v80_v50, 1 }
  0x2b   :  { %v82_v52 = vadd.f32 %v81_v51, %v80_v50 }
  0x2d   :  { %v83_v53 = vmul.f32 0.0078125, %v82_v52 }
  0x2f   :  { %v1310_v54 = vsub.f32 %v27_v0, %v83_v53  ;;  %v1312_v55 = vsub.f32 %v28_v1, %v83_v53  ;;  %v1314_v56 = vsub.f32 %v29_v2, %v83_v53  ;;  %v1316_v57 = vsub.f32 %v30_v3, %v83_v53 }
  0x30   :  { %v1318_v58 = vsub.f32 %v31_v7, %v83_v53  ;;  %v1326_v62 = vsub.f32 %v32_v10, %v83_v53  ;;  %v1330_v0 = vsub.f32 %v33_v13, %v83_v53  ;;  %v1337_v6 = vsub.f32 %v34_v16, %v83_v53 }
  0x31   :  { %v100_v59 = vmul.f32 %v1310_v54, %v1310_v54  ;;  %v101_v60 = vmul.f32 %v1312_v55, %v1312_v55  ;;  %v102_v61 = vmul.f32 %v1314_v56, %v1314_v56  ;;  %v103_v63 = vmul.f32 %v1316_v57, %v1316_v57 }
  0x32   :  { %v104_v1 = vmul.f32 %v1318_v58, %v1318_v58  ;;  %v105_v7 = vmul.f32 %v1326_v62, %v1326_v62  ;;  %v1342_v10 = vsub.f32 %v35_v19, %v83_v53  ;;  %v106_v11 = vmul.f32 %v1330_v0, %v1330_v0 }
  0x33   :  { %v116_v2 = vsel %vm45_vm0, %v100_v59, 0.0  ;;  %v117_v3 = vsel %vm45_vm0, %v101_v60, 0.0  ;;  %v119_v4 = vsel %vm45_vm0, %v102_v61, 0.0  ;;  %v121_v8 = vsel %vm45_vm0, %v103_v63, 0.0 }
  0x34   :  { %v118_v5 = vadd.f32 %v117_v3, %v116_v2  ;;  %v123_v12 = vsel %vm45_vm0, %v104_v1, 0.0  ;;  %v1347_v14 = vsub.f32 %v36_v22, %v83_v53  ;;  %v107_v15 = vmul.f32 %v1337_v6, %v1337_v6 }
  0x35   :  { %v125_v16 = vsel %vm45_vm0, %v105_v7, 0.0  ;;  %v1352_v18 = vsub.f32 %v37_v25, %v83_v53  ;;  %v108_v19 = vmul.f32 %v1342_v10, %v1342_v10  ;;  %v127_v20 = vsel %vm45_vm0, %v106_v11, 0.0  ;;  %v43_v7 = vld [vmem:[%s2167_s1] sm:$0x1] }
  0x36   :  { %v120_v9 = vadd.f32 %v119_v4, %v118_v5  ;;  %v95_v23 = vsub.f32 %v38_v28, %v83_v53  ;;  %v109_v24 = vmul.f32 %v1347_v14, %v1347_v14  ;;  %v129_v22 = vsel %vm45_vm0, %v107_v15, 0.0 }
  0x37   :  { %v96_v27 = vsub.f32 %v39_v31, %v83_v53  ;;  %v110_v29 = vmul.f32 %v1352_v18, %v1352_v18  ;;  %v131_v25 = vsel %vm45_vm0, %v108_v19, 0.0  ;;  %v97_v32 = vsub.f32 %v40_v34, %v83_v53  ;;  %v882_v19 = vld [vmem:[%s2168_s2] ss:$0 sm:$0xff] }
  0x38   :  { %v122_v13 = vadd.f32 %v121_v8, %v120_v9  ;;  %v111_v33 = vmul.f32 %v95_v23, %v95_v23  ;;  %v133_v35 = vsel %vm45_vm0, %v109_v24, 0.0  ;;  %v98_v38 = vsub.f32 %v41_v37, %v83_v53 }
  0x39   :  { %v112_v28 = vmul.f32 %v96_v27, %v96_v27  ;;  %v135_v39 = vsel %vm45_vm0, %v110_v29, 0.0  ;;  %v99_v42 = vsub.f32 %v42_v40, %v83_v53  ;;  %v113_v43 = vmul.f32 %v97_v32, %v97_v32 }
  0x3a   :  { %v124_v17 = vadd.f32 %v123_v12, %v122_v13  ;;  %v137_v31 = vsel %vm45_vm0, %v111_v33, 0.0  ;;  %v114_v45 = vmul.f32 %v98_v38, %v98_v38  ;;  %v158_v4 = vlaneseq }
  0x3b   :  { %v139_v46 = vsel %vm45_vm0, %v112_v28, 0.0  ;;  %v115_v48 = vmul.f32 %v99_v42, %v99_v42  ;;  %v141_v34 = vsel %vm45_vm0, %v113_v43, 0.0 }
  0x3c   :  { %v126_v21 = vadd.f32 %v125_v16, %v124_v17  ;;  %v143_v50 = vsel %vm45_vm0, %v114_v45, 0.0  ;;  %v1370_v5 = vshrl.u32 %v158_v4, 7 }
  0x3d   :  { %v145_v51 = vsel %vm45_vm0, %v115_v48, 0.0 }
  0x3e   :  { %v128_v26 = vadd.f32 %v127_v20, %v126_v21  ;;  %v160_v8 = vsub.s32 0, %v1370_v5 }
  0x40   :  { %v130_v30 = vadd.f32 %v129_v22, %v128_v26 }
  0x42   :  { %v132_v36 = vadd.f32 %v131_v25, %v130_v30 }
  0x44   :  { %v134_v41 = vadd.f32 %v133_v35, %v132_v36 }
  0x46   :  { %v136_v44 = vadd.f32 %v135_v39, %v134_v41 }
  0x48   :  { %v138_v47 = vadd.f32 %v137_v31, %v136_v44 }
  0x4a   :  { %v140_v49 = vadd.f32 %v139_v46, %v138_v47 }
  0x4c   :  { %v142_v37 = vadd.f32 %v141_v34, %v140_v49 }
  0x4e   :  { %v144_v52 = vadd.f32 %v143_v50, %v142_v37 }
  0x50   :  { %v146_v59 = vadd.f32 %v145_v51, %v144_v52 }
  0x52   :  { %v147_v40 = vrot.slane %v146_v59, 4 }
  0x54   :  { %v148_v53 = vadd.f32 %v147_v40, %v146_v59 }
  0x56   :  { %v149_v60 = vrot.slane %v148_v53, 2 }
  0x58   :  { %v150_v61 = vadd.f32 %v149_v60, %v148_v53 }
  0x5a   :  { %v151_v63 = vrot.slane %v150_v61, 1 }
  0x5c   :  { %v152_v1 = vadd.f32 %v151_v63, %v150_v61 }
  0x5e   :  { %v153_v2 = vmul.f32 0.0078125, %v152_v1 }
  0x60   :  { %v154_v3 = vadd.f32 1e-05, %v153_v2 }
  0x62   :  { %1189 = vrsqrt.f32 %v154_v3 }
  0x6f   :  { %v1190_v9 = vpop.eup %1189 }
  0x70   :  { %v156_v11 = vmul.f32 %v1190_v9, %v43_v7 }
  0x72   :  { %v161_v12 = vrot.slane %v156_v11, %v160_v8 }
  0x74   :  { %v163_v13 = vmul.f32 %v161_v12, %v1310_v54  ;;  %v164_v15 = vmul.f32 %v161_v12, %v1312_v55  ;;  %v165_v16 = vmul.f32 %v161_v12, %v1314_v56  ;;  %v166_v17 = vmul.f32 %v161_v12, %v1316_v57 }
  0x75   :  { %v167_v20 = vmul.f32 %v161_v12, %v1318_v58  ;;  %v168_v21 = vmul.f32 %v161_v12, %v1326_v62  ;;  %v169_v24 = vmul.f32 %v161_v12, %v1330_v0  ;;  %v170_v22 = vmul.f32 %v161_v12, %v1337_v6 }
  0x76   :  { %v171_v54 = vmul.f32 %v161_v12, %v1342_v10  ;;  %v172_v55 = vmul.f32 %v161_v12, %v1347_v14  ;;  %v173_v56 = vmul.f32 %v161_v12, %v1352_v18  ;;  %v174_v26 = vmul.f32 %v161_v12, %v95_v23 }
  0x77   :  { %v175_v57 = vmul.f32 %v161_v12, %v96_v27  ;;  %v176_v29 = vmul.f32 %v161_v12, %v97_v32  ;;  %v177_v25 = vmul.f32 %v161_v12, %v98_v38  ;;  %v178_v30 = vmul.f32 %v161_v12, %v99_v42 }
  0x78   :  { %v185_v33 = vadd.f32 %v882_v19, %v163_v13  ;;  %v186_v35 = vadd.f32 %v882_v19, %v164_v15  ;;  %v187_v58 = vadd.f32 %v882_v19, %v165_v16  ;;  %v188_v36 = vadd.f32 %v882_v19, %v166_v17 }
  0x79   :  { %v189_v62 = vadd.f32 %v882_v19, %v167_v20  ;;  %v190_v28 = vadd.f32 %v882_v19, %v168_v21  ;;  %v191_v0 = vadd.f32 %v882_v19, %v169_v24  ;;  %v192_v39 = vadd.f32 %v882_v19, %v170_v22 }
  0x7a   :  { %v193_v6 = vadd.f32 %v882_v19, %v171_v54  ;;  %v194_v41 = vadd.f32 %v882_v19, %v172_v55  ;;  %v195_v10 = vadd.f32 %v882_v19, %v173_v56  ;;  %v196_v43 = vadd.f32 %v882_v19, %v174_v26 }
  0x7b   :  { %v197_v14 = vadd.f32 %v882_v19, %v175_v57  ;;  %v198_v31 = vadd.f32 %v882_v19, %v176_v29  ;;  %v199_v18 = vadd.f32 %v882_v19, %v177_v25  ;;  %v200_v23 = vadd.f32 %v882_v19, %v178_v30 }
  0x7c   :  { %v201_v27 = vmax.f32 %v185_v33, 0.0  ;;  %v202_v32 = vmax.f32 %v186_v35, 0.0  ;;  %v203_v38 = vmax.f32 %v187_v58, 0.0  ;;  %v204_v42 = vmax.f32 %v188_v36, 0.0 }
  0x7d   :  { %v205_v44 = vmax.f32 %v189_v62, 0.0  ;;  %v206_v45 = vmax.f32 %v190_v28, 0.0  ;;  %v207_v46 = vmax.f32 %v191_v0, 0.0  ;;  %v208_v47 = vmax.f32 %v192_v39, 0.0 }
  0x7e   :  { %v209_v48 = vmax.f32 %v193_v6, 0.0  ;;  %v210_v34 = vmax.f32 %v194_v41, 0.0  ;;  %v211_v49 = vmax.f32 %v195_v10, 0.0  ;;  %v212_v50 = vmax.f32 %v196_v43, 0.0 }
  0x7f   :  { %v213_v37 = vmax.f32 %v197_v14, 0.0  ;;  %v214_v51 = vmax.f32 %v198_v31, 0.0  ;;  %v215_v52 = vmax.f32 %v199_v18, 0.0  ;;  %v216_v59 = vmax.f32 %v200_v23, 0.0 }
  0x80   :  { %v1392_v40 = vmin.f32 %v201_v27, 6.0  ;;  %v1394_v53 = vmin.f32 %v202_v32, 6.0  ;;  %v1396_v60 = vmin.f32 %v203_v38, 6.0  ;;  %v1398_v61 = vmin.f32 %v204_v42, 6.0 }
  0x81   :  { %v1400_v63 = vmin.f32 %v205_v44, 6.0  ;;  %v1402_v1 = vmin.f32 %v206_v45, 6.0  ;;  %v1404_v2 = vmin.f32 %v207_v46, 6.0  ;;  %v1406_v3 = vmin.f32 %v208_v47, 6.0 }
  0x82   :  { %v1408_v4 = vmin.f32 %v209_v48, 6.0  ;;  %v1410_v7 = vmin.f32 %v210_v34, 6.0  ;;  %v1412_v9 = vmin.f32 %v211_v49, 6.0  ;;  %v1414_v11 = vmin.f32 %v212_v50, 6.0 }
  0x83   :  { %v1416_v12 = vmin.f32 %v213_v37, 6.0  ;;  %v1418_v13 = vmin.f32 %v214_v51, 6.0  ;;  %v1420_v15 = vmin.f32 %v215_v52, 6.0  ;;  %v1422_v16 = vmin.f32 %v216_v59, 6.0 }
  0x84   :  { %v233_v17 = vand.u32 2147483647, %v1392_v40  ;;  %v234_v19 = vand.u32 2147483647, %v1394_v53  ;;  %v235_v20 = vand.u32 2147483647, %v1396_v60 }
  0x85   :  { %v236_v21 = vand.u32 2147483647, %v1398_v61  ;;  %v237_v24 = vand.u32 2147483647, %v1400_v63  ;;  %v238_v22 = vand.u32 2147483647, %v1402_v1 }
  0x86   :  { %v239_v54 = vand.u32 2147483647, %v1404_v2  ;;  %v240_v55 = vand.u32 2147483647, %v1406_v3  ;;  %v241_v56 = vand.u32 2147483647, %v1408_v4 }
  0x87   :  { %v242_v26 = vand.u32 2147483647, %v1410_v7  ;;  %v243_v57 = vand.u32 2147483647, %v1412_v9  ;;  %v244_v29 = vand.u32 2147483647, %v1414_v11 }
  0x88   :  { %v245_v25 = vand.u32 2147483647, %v1416_v12  ;;  %v246_v30 = vand.u32 2147483647, %v1418_v13  ;;  %v247_v33 = vand.u32 2147483647, %v1420_v15 }
  0x89   :  { %v248_v35 = vand.u32 2147483647, %v1422_v16  ;;  %v249_v58 = vsel %vm45_vm0, %v233_v17, -inf  ;;  %v250_v36 = vsel %vm45_vm0, %v234_v19, -inf  ;;  %v251_v62 = vsel %vm45_vm0, %v235_v20, -inf  ;;  %v387_v19 = vld [vmem:[%s2169_s3 + $0x10] sm:$0xff] }
  0x8a   :  { %v252_v28 = vsel %vm45_vm0, %v236_v21, -inf  ;;  %v253_v0 = vsel %vm45_vm0, %v237_v24, -inf  ;;  %v255_v39 = vsel %vm45_vm0, %v238_v22, -inf  ;;  %v257_v6 = vsel %vm45_vm0, %v239_v54, -inf  ;;  %v388_v20 = vld [vmem:[%s2169_s3 + $0x18] sm:$0xff]  ;;  %v385_v21 = vld [vmem:[%s2169_s3] sm:$0xff] }
  0x8b   :  { %v254_v41 = vmax.f32 %v249_v58, %v253_v0  ;;  %v256_v10 = vmax.f32 %v250_v36, %v255_v39  ;;  %v258_v43 = vmax.f32 %v251_v62, %v257_v6  ;;  %v259_v14 = vsel %vm45_vm0, %v240_v55, -inf  ;;  %v386_v22 = vld [vmem:[%s2169_s3 + $0x8] sm:$0xff] }
  0x8c   :  { %v260_v31 = vmax.f32 %v252_v28, %v259_v14  ;;  %v261_v18 = vsel %vm45_vm0, %v241_v56, -inf  ;;  %v263_v23 = vsel %vm45_vm0, %v242_v26, -inf  ;;  %v265_v27 = vsel %vm45_vm0, %v243_v57, -inf }
  0x8d   :  { %v262_v32 = vmax.f32 %v254_v41, %v261_v18  ;;  %v264_v38 = vmax.f32 %v256_v10, %v263_v23  ;;  %v266_v42 = vmax.f32 %v258_v43, %v265_v27  ;;  %v267_v44 = vsel %vm45_vm0, %v244_v29, -inf }
  0x8e   :  { %v268_v45 = vmax.f32 %v260_v31, %v267_v44  ;;  %v269_v46 = vsel %vm45_vm0, %v245_v25, -inf  ;;  %v271_v47 = vsel %vm45_vm0, %v246_v30, -inf  ;;  %v273_v48 = vsel %vm45_vm0, %v247_v33, -inf }
  0x8f   :  { %v270_v34 = vmax.f32 %v262_v32, %v269_v46  ;;  %v272_v49 = vmax.f32 %v264_v38, %v271_v47  ;;  %v274_v50 = vmax.f32 %v266_v42, %v273_v48  ;;  %v275_v37 = vsel %vm45_vm0, %v248_v35, -inf }
  0x90   :  { %v276_v51 = vmax.f32 %v268_v45, %v275_v37  ;;  %v398_v24 = vpack.c.bf16 %v388_v20, %v387_v19  ;;  %v397_v54 = vpack.c.bf16 %v386_v22, %v385_v21 }
  0x91   :  { %v277_v52 = vmax.f32 %v270_v34, %v272_v49 }
  0x92   :  { %v278_v59 = vmax.f32 %v274_v50, %v276_v51  ;;  %904 = vmatprep.subr.bf16.mxu0 %v398_v24  ;;  %924 = vmatprep.subr.bf16.mxu1 %v398_v24 }
  0x93   :  { %905 = vmatpush3.bf16.msra.mxu0 %v398_v24  ;;  %926 = vmatpush3.bf16.msra.mxu1 %v398_v24 }
  0x94   :  { %v279_v17 = vmax.f32 %v277_v52, %v278_v59  ;;  %906 = vmatprep.subr.bf16.mxu0 %v397_v54  ;;  %925 = vmatprep.subr.bf16.mxu1 %v397_v54 }
  0x96   :  { %280 = vmax.xlane.f32.xlu0 %v279_v17 }
  0x97   :  { %907 = vmatpush3.bf16.msra.mxu0 %v397_v54  ;;  %927 = vmatpush3.bf16.msra.mxu1 %v397_v54 }
 0x11f   :  { %v281_v55 = vpop.xlane.xlu0 %280 }
 0x120   :  { %v282_v56 = vrot.slane %v281_v55, 4 }
 0x122   :  { %v283_v26 = vmax.f32 %v281_v55, %v282_v56 }
 0x124   :  { %v284_v57 = vrot.slane %v283_v26, 2 }
 0x126   :  { %v285_v29 = vmax.f32 %v283_v26, %v284_v57 }
 0x128   :  { %v286_v25 = vrot.slane %v285_v29, 1 }
 0x12a   :  { %v287_v30 = vmax.f32 %v285_v29, %v286_v25 }
 0x12c   :  { %928 = vpush %v287_v30 }
 0x15d   :  { %s929_s19 = spop %928 }
 0x15e   :  { %s289_s3 = smax.f32 %s1205_s20, %s929_s19 }
 0x15f   :  { %v290_v33 = vstv %s289_s3 }
 0x160   :  { %1191 = vlog2.f32 %v290_v33 }
 0x16d   :  { %v1192_v35 = vpop.eup %1191 }
 0x16e   :  { %v292_v58 = vmul.f32 0.6931472, %v1192_v35 }
 0x170   :  { %v293_v36 = vmul.f32 1.442695, %v292_v58 }
 0x172   :  { %v294_v62 = vceil.f32 %v293_v36 }
 0x174   :  { %v883_v28 = vadd.f32 -7.0, %v294_v62  ;;  %v299_v0 = vsub.f32 7.0, %v294_v62 }
 0x176   :  { %v296_v39 = vmul.f32 0.6931472, %v883_v28  ;;  %v300_v41 = vmul.f32 0.6931472, %v299_v0 }
 0x178   :  { %v297_v6 = vmul.f32 1.442695, %v296_v39  ;;  %v301_v10 = vmul.f32 1.442695, %v300_v41 }
 0x17a   :  { %1193 = vpow2.f32 %v297_v6 }
 0x17b   :  { %1195 = vpow2.f32 %v301_v10 }
 0x187   :  { %v1469_v43 = vpop.eup %1193 }
 0x188   :  { %v1472_v14 = vmul.f32 -128.0, %v1469_v43  ;;  %v1475_v31 = vmul.f32 127.0, %v1469_v43  ;;  %v1497_v46 = vpop.eup %1195 }
 0x18a   :  { %v305_v18 = vmax.f32 %v1472_v14, %v1392_v40  ;;  %v306_v23 = vmax.f32 %v1472_v14, %v1394_v53  ;;  %v313_v27 = vmax.f32 %v1472_v14, %v1408_v4  ;;  %v314_v32 = vmax.f32 %v1472_v14, %v1410_v7 }
 0x18b   :  { %v307_v38 = vmax.f32 %v1472_v14, %v1396_v60  ;;  %v308_v42 = vmax.f32 %v1472_v14, %v1398_v61  ;;  %v315_v44 = vmax.f32 %v1472_v14, %v1412_v9  ;;  %v316_v40 = vmax.f32 %v1472_v14, %v1414_v11 }
 0x18c   :  { %v321_v53 = vmin.f32 %v1475_v31, %v305_v18  ;;  %v322_v45 = vmin.f32 %v1475_v31, %v306_v23  ;;  %v329_v4 = vmin.f32 %v1475_v31, %v313_v27  ;;  %v330_v7 = vmin.f32 %v1475_v31, %v314_v32 }
 0x18d   :  { %v323_v60 = vmin.f32 %v1475_v31, %v307_v38  ;;  %v324_v61 = vmin.f32 %v1475_v31, %v308_v42  ;;  %v331_v47 = vmin.f32 %v1475_v31, %v315_v44  ;;  %v332_v34 = vmin.f32 %v1475_v31, %v316_v40 }
 0x18e   :  { %v337_v9 = vmul.f32 %v1497_v46, %v321_v53  ;;  %v338_v11 = vmul.f32 %v1497_v46, %v322_v45  ;;  %v345_v48 = vmul.f32 %v1497_v46, %v329_v4  ;;  %v346_v49 = vmul.f32 %v1497_v46, %v330_v7 }
 0x18f   :  { %v1508_v50 = vmul.f32 %v1497_v46, %v323_v60  ;;  %v1511_v59 = vmul.f32 %v1497_v46, %v324_v61  ;;  %v1514_v21 = vmul.f32 %v1497_v46, %v331_v47  ;;  %v1517_v55 = vmul.f32 %v1497_v46, %v332_v34 }
 0x190   :  { %v930_v37 = vand.u32 2147483647, %v337_v9  ;;  %v932_v51 = vcvt.f32.s32 %v337_v9  ;;  %v938_v52 = vand.u32 2147483647, %v338_v11  ;;  %v940_v17 = vcvt.f32.s32 %v338_v11 }
 0x191   :  { %v994_v19 = vand.u32 2147483647, %v345_v48  ;;  %v996_v20 = vcvt.f32.s32 %v345_v48  ;;  %v935_v22 = vand.u32 2147483648, %v337_v9  ;;  %v943_v54 = vand.u32 2147483648, %v338_v11 }
 0x192   :  { %v933_v24 = vcvt.s32.f32 %v932_v51  ;;  %vm1519_vm1 = vcmp.lt.f32.partialorder %v930_v37, 8388608.0  ;;  %vm1523_vm2 = vcmp.lt.f32.partialorder %v938_v52, 8388608.0  ;;  %v941_v57 = vcvt.s32.f32 %v940_v17 }
 0x193   :  { %v997_v29 = vcvt.s32.f32 %v996_v20  ;;  %vm1527_vm3 = vcmp.lt.f32.partialorder %v994_v19, 8388608.0  ;;  %v999_v33 = vand.u32 2147483648, %v345_v48  ;;  %v1004_v35 = vcvt.f32.s32 %v346_v49 }
 0x194   :  { %v934_v25 = vand.u32 2147483647, %v933_v24  ;;  %v942_v58 = vand.u32 2147483647, %v941_v57  ;;  %v1002_v62 = vand.u32 2147483647, %v346_v49  ;;  %v948_v28 = vcvt.f32.s32 %v1508_v50 }
 0x195   :  { %v998_v36 = vand.u32 2147483647, %v997_v29  ;;  %v1005_v39 = vcvt.s32.f32 %v1004_v35  ;;  %v1007_v6 = vand.u32 2147483648, %v346_v49  ;;  %v946_v41 = vand.u32 2147483647, %v1508_v50 }
 0x196   :  { %v936_v0 = vor.u32 %v935_v22, %v934_v25  ;;  %v944_v10 = vor.u32 %v943_v54, %v942_v58  ;;  %v949_v23 = vcvt.s32.f32 %v948_v28  ;;  %v951_v27 = vand.u32 2147483648, %v1508_v50 }
 0x197   :  { %v1000_v18 = vor.u32 %v999_v33, %v998_v36  ;;  %v1006_v38 = vand.u32 2147483647, %v1005_v39  ;;  %v954_v42 = vand.u32 2147483647, %v1511_v59  ;;  %v956_v44 = vcvt.f32.s32 %v1511_v59 }
 0x198   :  { %v937_v32 = vsel %vm1519_vm1, %v936_v0, %v337_v9  ;;  %v945_v40 = vsel %vm1523_vm2, %v944_v10, %v338_v11  ;;  %v950_v4 = vand.u32 2147483647, %v949_v23  ;;  %vm1003_vm4 = vcmp.lt.f32.partialorder %v1002_v62, 8388608.0 }
 0x199   :  { %v369_v53 = vmul.f32 %v1469_v43, %v937_v32  ;;  %v1001_v45 = vsel %vm1527_vm3, %v1000_v18, %v345_v48  ;;  %v370_v7 = vmul.f32 %v1469_v43, %v945_v40  ;;  %v1008_v60 = vor.u32 %v1007_v6, %v1006_v38 }
 0x19a   :  { %vm1544_vm5 = vcmp.lt.f32.partialorder %v946_v41, 8388608.0  ;;  %v377_v47 = vmul.f32 %v1469_v43, %v1001_v45  ;;  %v952_v9 = vor.u32 %v951_v27, %v950_v4  ;;  %v957_v34 = vcvt.s32.f32 %v956_v44 }
 0x19b   :  { %v1012_v11 = vcvt.f32.s32 %v1514_v21  ;;  %v389_v37 = vpack.c.bf16 %v370_v7, %v369_v53  ;;  %v1009_v51 = vsel %vm1003_vm4, %v1008_v60, %v346_v49  ;;  %vm1550_vm6 = vcmp.lt.f32.partialorder %v954_v42, 8388608.0 }
 0x19c   :  { %v959_v48 = vand.u32 2147483648, %v1511_v59  ;;  %v378_v17 = vmul.f32 %v1469_v43, %v1009_v51  ;;  %v953_v19 = vsel %vm1544_vm5, %v952_v9, %v1508_v50  ;;  %v958_v20 = vand.u32 2147483647, %v957_v34 }
 0x19d   :  { %v1010_v24 = vand.u32 2147483647, %v1514_v21  ;;  %908 = vmatprep.mubr.msk.bf16.mxu0 %vm45_vm0, %v389_v37  ;;  %v1013_v22 = vcvt.s32.f32 %v1012_v11  ;;  %v1015_v49 = vand.u32 2147483648, %v1514_v21  ;;  %v1018_v54 = vand.u32 2147483647, %v1517_v55 }
 0x19e   :  { %v1020_v56 = vcvt.f32.s32 %v1517_v55  ;;  %v393_v26 = vpack.c.bf16 %v378_v17, %v377_v47  ;;  %v960_v57 = vor.u32 %v959_v48, %v958_v20  ;;  %v371_v29 = vmul.f32 %v1469_v43, %v953_v19 }
 0x19f   :  { %v309_v25 = vmax.f32 %v1472_v14, %v1400_v63  ;;  %v1014_v50 = vand.u32 2147483647, %v1013_v22  ;;  %v310_v33 = vmax.f32 %v1472_v14, %v1402_v1  ;;  %v317_v35 = vmax.f32 %v1472_v14, %v1416_v12 }
 0x1a0   :  { %v1021_v30 = vcvt.s32.f32 %v1020_v56  ;;  %916 = vmatprep.mubr.msk.bf16.mxu1 %vm45_vm0, %v393_v26  ;;  %v961_v58 = vsel %vm1550_vm6, %v960_v57, %v1511_v59  ;;  %v1023_v36 = vand.u32 2147483648, %v1517_v55  ;;  %v318_v63 = vmax.f32 %v1472_v14, %v1418_v13 }
 0x1a1   :  { %v325_v62 = vmin.f32 %v1475_v31, %v309_v25  ;;  %v372_v28 = vmul.f32 %v1469_v43, %v961_v58  ;;  %v1016_v0 = vor.u32 %v1015_v49, %v1014_v50  ;;  %v326_v39 = vmin.f32 %v1475_v31, %v310_v33 }
 0x1a2   :  { %v1022_v1 = vand.u32 2147483647, %v1021_v30  ;;  %vm1011_vm7 = vcmp.lt.f32.partialorder %v1010_v24, 8388608.0  ;;  %v333_v6 = vmin.f32 %v1475_v31, %v317_v35  ;;  %v334_v59 = vmin.f32 %v1475_v31, %v318_v63 }
 0x1a3   :  { %v341_v12 = vmul.f32 %v1497_v46, %v325_v62  ;;  %v390_v41 = vpack.c.bf16 %v372_v28, %v371_v29  ;;  %v1017_v10 = vsel %vm1011_vm7, %v1016_v0, %v1514_v21  ;;  %v342_v23 = vmul.f32 %v1497_v46, %v326_v39 }
 0x1a4   :  { %v1024_v18 = vor.u32 %v1023_v36, %v1022_v1  ;;  %vm1019_vm8 = vcmp.lt.f32.partialorder %v1018_v54, 8388608.0  ;;  %v379_v13 = vmul.f32 %v1469_v43, %v1017_v10  ;;  %v311_v32 = vmax.f32 %v1472_v14, %v1404_v2 }
 0x1a5   :  { %v964_v27 = vcvt.f32.s32 %v341_v12  ;;  %909 = vmatmul.mubr.msk.bf16.vlgmr.msra.gmra.mxu0 %vm45_vm0, %v390_v41  ;;  %v962_v42 = vand.u32 2147483647, %v341_v12  ;;  %v970_v44 = vand.u32 2147483647, %v342_v23  ;;  %v972_v40 = vcvt.f32.s32 %v342_v23 }
 0x1a6   :  { %v1025_v38 = vsel %vm1019_vm8, %v1024_v18, %v1517_v55  ;;  %v349_v45 = vmul.f32 %v1497_v46, %v333_v6  ;;  %v312_v4 = vmax.f32 %v1472_v14, %v1406_v3  ;;  %v967_v7 = vand.u32 2147483648, %v341_v12 }
 0x1a7   :  { %v380_v53 = vmul.f32 %v1469_v43, %v1025_v38  ;;  %v965_v21 = vcvt.s32.f32 %v964_v27  ;;  %v973_v60 = vcvt.s32.f32 %v972_v40  ;;  %v975_v61 = vand.u32 2147483648, %v342_v23 }
 0x1a8   :  { %v350_v2 = vmul.f32 %v1497_v46, %v334_v59  ;;  %v1028_v34 = vcvt.f32.s32 %v349_v45  ;;  %v327_v55 = vmin.f32 %v1475_v31, %v311_v32  ;;  %vm1597_vm9 = vcmp.lt.f32.partialorder %v962_v42, 8388608.0 }
 0x1a9   :  { %v394_v47 = vpack.c.bf16 %v380_v53, %v379_v13  ;;  %v966_v9 = vand.u32 2147483647, %v965_v21  ;;  %vm1601_vm10 = vcmp.lt.f32.partialorder %v970_v44, 8388608.0  ;;  %v974_v51 = vand.u32 2147483647, %v973_v60 }
 0x1aa   :  { %v1036_v3 = vcvt.f32.s32 %v350_v2  ;;  %v1026_v48 = vand.u32 2147483647, %v349_v45  ;;  %v1029_v17 = vcvt.s32.f32 %v1028_v34  ;;  %v1031_v19 = vand.u32 2147483648, %v349_v45 }
 0x1ab   :  { %917 = vmatmul.mubr.msk.bf16.vlgmr.msra.gmra.mxu1 %vm45_vm0, %v394_v47  ;;  %v968_v52 = vor.u32 %v967_v7, %v966_v9  ;;  %v976_v20 = vor.u32 %v975_v61, %v974_v51  ;;  %v1034_v24 = vand.u32 2147483647, %v350_v2  ;;  %v328_v49 = vmin.f32 %v1475_v31, %v312_v4 }
 0x1ac   :  { %v1037_v22 = vcvt.s32.f32 %v1036_v3  ;;  %v1030_v56 = vand.u32 2147483647, %v1029_v17  ;;  %v1039_v26 = vand.u32 2147483648, %v350_v2  ;;  %v343_v57 = vmul.f32 %v1497_v46, %v327_v55 }
 0x1ad   :  { %v969_v54 = vsel %vm1597_vm9, %v968_v52, %v341_v12  ;;  %v977_v29 = vsel %vm1601_vm10, %v976_v20, %v342_v23  ;;  %v344_v30 = vmul.f32 %v1497_v46, %v328_v49  ;;  %vm1027_vm11 = vcmp.lt.f32.partialorder %v1026_v48, 8388608.0 }
 0x1ae   :  { %v373_v25 = vmul.f32 %v1469_v43, %v969_v54  ;;  %v1038_v50 = vand.u32 2147483647, %v1037_v22  ;;  %v374_v33 = vmul.f32 %v1469_v43, %v977_v29  ;;  %v1032_v35 = vor.u32 %v1031_v19, %v1030_v56 }
 0x1af   :  { %v980_v58 = vcvt.f32.s32 %v343_v57  ;;  %vm1035_vm12 = vcmp.lt.f32.partialorder %v1034_v24, 8388608.0  ;;  %v988_v62 = vcvt.f32.s32 %v344_v30  ;;  %v319_v63 = vmax.f32 %v1472_v14, %v1420_v15 }
 0x1b0   :  { %v1040_v36 = vor.u32 %v1039_v26, %v1038_v50  ;;  %v391_v28 = vpack.c.bf16 %v374_v33, %v373_v25  ;;  %v1033_v0 = vsel %vm1027_vm11, %v1032_v35, %v349_v45  ;;  %v978_v1 = vand.u32 2147483647, %v343_v57 }
 0x1b1   :  { %v981_v39 = vcvt.s32.f32 %v980_v58  ;;  %v381_v6 = vmul.f32 %v1469_v43, %v1033_v0  ;;  %v983_v59 = vand.u32 2147483648, %v343_v57  ;;  %v989_v41 = vcvt.s32.f32 %v988_v62 }
 0x1b2   :  { %v1041_v12 = vsel %vm1035_vm12, %v1040_v36, %v350_v2  ;;  %912 = vmatprep.mubr.msk.bf16.mxu0 %vm45_vm0, %v391_v28  ;;  %v986_v23 = vand.u32 2147483647, %v344_v30  ;;  %v320_v13 = vmax.f32 %v1472_v14, %v1422_v16  ;;  %v991_v15 = vand.u32 2147483648, %v344_v30 }
 0x1b3   :  { %v382_v10 = vmul.f32 %v1469_v43, %v1041_v12  ;;  %v982_v18 = vand.u32 2147483647, %v981_v39  ;;  %v990_v27 = vand.u32 2147483647, %v989_v41  ;;  %v335_v32 = vmin.f32 %v1475_v31, %v319_v63 }
 0x1b4   :  { %v336_v44 = vmin.f32 %v1475_v31, %v320_v13  ;;  %vm979_vm13 = vcmp.lt.f32.partialorder %v978_v1, 8388608.0  ;;  %vm987_vm14 = vcmp.lt.f32.partialorder %v986_v23, 8388608.0 }
 0x1b5   :  { %v395_v38 = vpack.c.bf16 %v382_v10, %v381_v6  ;;  %v984_v42 = vor.u32 %v983_v59, %v982_v18  ;;  %v992_v40 = vor.u32 %v991_v15, %v990_v27  ;;  %v351_v53 = vmul.f32 %v1497_v46, %v335_v32 }
 0x1b6   :  { %v352_v45 = vmul.f32 %v1497_v46, %v336_v44 }
 0x1b7   :  { %920 = vmatprep.mubr.msk.bf16.mxu1 %vm45_vm0, %v395_v38  ;;  %v985_v21 = vsel %vm979_vm13, %v984_v42, %v343_v57  ;;  %v993_v4 = vsel %vm987_vm14, %v992_v40, %v344_v30  ;;  %v1044_v14 = vcvt.f32.s32 %v351_v53  ;;  %v1042_v31 = vand.u32 2147483647, %v351_v53 }
 0x1b8   :  { %v375_v16 = vmul.f32 %v1469_v43, %v985_v21  ;;  %v376_v7 = vmul.f32 %v1469_v43, %v993_v4  ;;  %v1052_v60 = vcvt.f32.s32 %v352_v45  ;;  %v1047_v34 = vand.u32 2147483648, %v351_v53 }
 0x1b9   :  { %v1045_v61 = vcvt.s32.f32 %v1044_v14  ;;  %v1050_v55 = vand.u32 2147483647, %v352_v45  ;;  %v1055_v37 = vand.u32 2147483648, %v352_v45  ;;  %vm1043_vm15 = vcmp.lt.f32.partialorder %v1042_v31, 8388608.0 }
 0x1ba   :  { %v392_v2 = vpack.c.bf16 %v376_v7, %v375_v16  ;;  %v1053_v47 = vcvt.s32.f32 %v1052_v60 }
 0x1bb   :  { %v1046_v9 = vand.u32 2147483647, %v1045_v61  ;;  %vm1051_vm1 = vcmp.lt.f32.partialorder %v1050_v55, 8388608.0 }
 0x1bc   :  { %913 = vmatmul.mubr.msk.bf16.gmra.mxu0 %vm45_vm0, %v392_v2  ;;  %v1054_v11 = vand.u32 2147483647, %v1053_v47 }
 0x1bd   :  { %v1048_v51 = vor.u32 %v1047_v34, %v1046_v9 }
 0x1be   :  { %v1056_v46 = vor.u32 %v1055_v37, %v1054_v11 }
 0x1bf   :  { %v1049_v3 = vsel %vm1043_vm15, %v1048_v51, %v351_v53 }
 0x1c0   :  { %v1057_v52 = vsel %vm1051_vm1, %v1056_v46, %v352_v45  ;;  %v383_v48 = vmul.f32 %v1469_v43, %v1049_v3 }
 0x1c1   :  { %v384_v17 = vmul.f32 %v1469_v43, %v1057_v52 }
 0x1c3   :  { %v396_v19 = vpack.c.bf16 %v384_v17, %v383_v48 }
 0x1c5   :  { %921 = vmatmul.mubr.msk.bf16.gmra.mxu1 %vm45_vm0, %v396_v19  ;;  %vm536_vm0 = vcmask 64512  }
 0x265   :  { %v1633_v20 = vpop.f32.mrf.mxu0 }
 0x266   :  { %v522_v58 = vand.u32 2147483647, %v1633_v20 }
 0x267   :  { %v1635_v24 = vpop.f32.mrf.mxu0 }
 0x268   :  { %v520_v36 = vand.u32 2147483647, %v1635_v24  ;;  %v539_v27 = vsel %vm536_vm0, %v522_v58, -inf }
 0x269   :  { %v1637_v22 = vpop.f32.mrf.mxu0 }
 0x26a   :  { %v523_v29 = vand.u32 2147483647, %v1637_v22  ;;  %v537_v15 = vsel %vm536_vm0, %v520_v36, -inf }
 0x26b   :  { %v1639_v49 = vpop.f32.mrf.mxu1  ;;  %v1641_v54 = vpop.f32.mrf.mxu0 }
 0x26c   :  { %v521_v62 = vand.u32 2147483647, %v1641_v54  ;;  %v530_v28 = vand.u32 2147483647, %v1639_v49  ;;  %v540_v39 = vsel %vm536_vm0, %v523_v29, -inf }
 0x26d   :  { %v1643_v56 = vpop.f32.mrf.mxu1 }
 0x26e   :  { %v528_v41 = vand.u32 2147483647, %v1643_v56  ;;  %v538_v32 = vsel %vm536_vm0, %v521_v62, -inf  ;;  %v553_v21 = vsel %vm536_vm0, %v530_v28, -inf }
 0x26f   :  { %v1647_v57 = vpop.f32.mrf.mxu1 }
 0x270   :  { %v531_v12 = vand.u32 2147483647, %v1647_v57  ;;  %v549_v45 = vsel %vm536_vm0, %v528_v41, -inf }
 0x271   :  { %v1656_v33 = vpop.f32.mrf.mxu1 }
 0x272   :  { %v529_v10 = vand.u32 2147483647, %v1656_v33  ;;  %v555_v53 = vsel %vm536_vm0, %v531_v12, -inf }
 0x274   :  { %v551_v4 = vsel %vm536_vm0, %v529_v10, -inf }
 0x27c   :  { %v1645_v26 = vpop.f32.mrf.mxu0 }
 0x27d   :  { %v526_v25 = vand.u32 2147483647, %v1645_v26 }
 0x27e   :  { %v1649_v43 = vpop.f32.mrf.mxu0 }
 0x27f   :  { %v524_v50 = vand.u32 2147483647, %v1649_v43  ;;  %v545_v6 = vsel %vm536_vm0, %v526_v25, -inf }
 0x280   :  { %v1654_v30 = vpop.f32.mrf.mxu0  ;;  %v546_v38 = vmax.f32 %v539_v27, %v545_v6 }
 0x281   :  { %v527_v35 = vand.u32 2147483647, %v1654_v30  ;;  %v541_v59 = vsel %vm536_vm0, %v524_v50, -inf }
 0x282   :  { %v1662_v63 = vpop.f32.mrf.mxu0  ;;  %v542_v42 = vmax.f32 %v537_v15, %v541_v59  ;;  %v554_v2 = vmax.f32 %v546_v38, %v553_v21 }
 0x283   :  { %v547_v0 = vsel %vm536_vm0, %v527_v35, -inf  ;;  %v525_v1 = vand.u32 2147483647, %v1662_v63 }
 0x284   :  { %v548_v23 = vmax.f32 %v540_v39, %v547_v0  ;;  %v550_v31 = vmax.f32 %v542_v42, %v549_v45 }
 0x285   :  { %v1673_v18 = vpop.f32.mrf.mxu1  ;;  %v543_v13 = vsel %vm536_vm0, %v525_v1, -inf }
 0x286   :  { %v544_v40 = vmax.f32 %v538_v32, %v543_v13  ;;  %v556_v14 = vmax.f32 %v548_v23, %v555_v53  ;;  %v534_v7 = vand.u32 2147483647, %v1673_v18 }
 0x287   :  { %v1679_v44 = vpop.f32.mrf.mxu1 }
 0x288   :  { %v532_v60 = vand.u32 2147483647, %v1679_v44  ;;  %v552_v9 = vmax.f32 %v544_v40, %v551_v4  ;;  %v561_v37 = vsel %vm536_vm0, %v534_v7, -inf }
 0x289   :  { %v1685_v16 = vpop.f32.mrf.mxu1  ;;  %v562_v3 = vmax.f32 %v554_v2, %v561_v37 }
 0x28a   :  { %v535_v61 = vand.u32 2147483647, %v1685_v16  ;;  %v557_v51 = vsel %vm536_vm0, %v532_v60, -inf }
 0x28b   :  { %v1690_v47 = vpop.f32.mrf.mxu1  ;;  %v558_v52 = vmax.f32 %v550_v31, %v557_v51 }
 0x28c   :  { %v563_v34 = vsel %vm536_vm0, %v535_v61, -inf  ;;  %v533_v55 = vand.u32 2147483647, %v1690_v47 }
 0x28d   :  { %v564_v11 = vmax.f32 %v556_v14, %v563_v34 }
 0x28e   :  { %v559_v46 = vsel %vm536_vm0, %v533_v55, -inf }
 0x28f   :  { %v560_v48 = vmax.f32 %v552_v9, %v559_v46  ;;  %v566_v19 = vmax.f32 %v562_v3, %v564_v11 }
 0x291   :  { %v565_v17 = vmax.f32 %v558_v52, %v560_v48 }
 0x293   :  { %v567_v29 = vmax.f32 %v565_v17, %v566_v19 }
 0x295   :  { %568 = vmax.xlane.f32.xlu0 %v567_v29 }
 0x31e   :  { %v569_v25 = vpop.xlane.xlu0 %568 }
 0x31f   :  { %v570_v50 = vrot.slane %v569_v25, 4 }
 0x321   :  { %v571_v35 = vmax.f32 %v569_v25, %v570_v50 }
 0x323   :  { %v572_v58 = vrot.slane %v571_v35, 2 }
 0x325   :  { %v573_v36 = vmax.f32 %v571_v35, %v572_v58 }
 0x327   :  { %v574_v62 = vrot.slane %v573_v36, 1 }
 0x329   :  { %v575_v28 = vmax.f32 %v573_v36, %v574_v62 }
 0x32b   :  { %1058 = vpush %v575_v28 }
 0x35c   :  { %s1059_s21 = spop %1058 }
 0x35d   :  { %s577_s22 = smax.f32 %s1205_s20, %s1059_s21 }
 0x35e   :  { %v578_v0 = vstv %s577_s22 }
 0x35f   :  { %1197 = vlog2.f32 %v578_v0 }
 0x36c   :  { %v1198_v1 = vpop.eup %1197 }
 0x36d   :  { %v580_v39 = vmul.f32 0.6931472, %v1198_v1 }
 0x36f   :  { %v581_v12 = vmul.f32 1.442695, %v580_v39 }
 0x371   :  { %v582_v6 = vceil.f32 %v581_v12 }
 0x373   :  { %v892_v59 = vadd.f32 -7.0, %v582_v6  ;;  %v587_v23 = vsub.f32 7.0, %v582_v6 }
 0x375   :  { %v584_v41 = vmul.f32 0.6931472, %v892_v59  ;;  %v588_v13 = vmul.f32 0.6931472, %v587_v23 }
 0x377   :  { %v585_v10 = vmul.f32 1.442695, %v584_v41  ;;  %v589_v27 = vmul.f32 1.442695, %v588_v13 }
 0x379   :  { %1199 = vpow2.f32 %v585_v10 }
 0x37a   :  { %1201 = vpow2.f32 %v589_v27 }
 0x386   :  { %v1698_v15 = vpop.eup %1199 }
 0x387   :  { %v591_v32 = vmul.f32 -128.0, %v1698_v15  ;;  %v592_v42 = vmul.f32 127.0, %v1698_v15  ;;  %v1202_v7 = vpop.eup %1201 }
 0x389   :  { %v593_v38 = vmax.f32 %v591_v32, %v1635_v24  ;;  %v594_v40 = vmax.f32 %v591_v32, %v1641_v54  ;;  %v595_v53 = vmax.f32 %v591_v32, %v1633_v20  ;;  %v596_v21 = vmax.f32 %v591_v32, %v1637_v22 }
 0x38a   :  { %v597_v4 = vmax.f32 %v591_v32, %v1649_v43  ;;  %v598_v61 = vmax.f32 %v591_v32, %v1662_v63  ;;  %v599_v24 = vmax.f32 %v591_v32, %v1645_v26  ;;  %v600_v9 = vmax.f32 %v591_v32, %v1654_v30 }
 0x38b   :  { %v609_v45 = vmin.f32 %v592_v42, %v593_v38  ;;  %v610_v14 = vmin.f32 %v592_v42, %v594_v40  ;;  %v611_v60 = vmin.f32 %v592_v42, %v595_v53  ;;  %v612_v2 = vmin.f32 %v592_v42, %v596_v21 }
 0x38c   :  { %v601_v54 = vmax.f32 %v591_v32, %v1643_v56  ;;  %v613_v20 = vmin.f32 %v592_v42, %v597_v4  ;;  %v602_v22 = vmax.f32 %v591_v32, %v1656_v33  ;;  %v603_v34 = vmax.f32 %v591_v32, %v1639_v49 }
 0x38d   :  { %v1708_v31 = vmul.f32 %v1202_v7, %v609_v45  ;;  %v604_v43 = vmax.f32 %v591_v32, %v1647_v57  ;;  %v1716_v55 = vmul.f32 %v1202_v7, %v610_v14  ;;  %v605_v63 = vmax.f32 %v591_v32, %v1679_v44 }
 0x38e   :  { %v606_v11 = vmax.f32 %v591_v32, %v1690_v47  ;;  %v607_v37 = vmax.f32 %v591_v32, %v1673_v18  ;;  %v1721_v26 = vmul.f32 %v1202_v7, %v611_v60  ;;  %v608_v30 = vmax.f32 %v591_v32, %v1685_v16 }
 0x38f   :  { %v614_v56 = vmin.f32 %v592_v42, %v598_v61  ;;  %v1724_v51 = vmul.f32 %v1202_v7, %v612_v2  ;;  %v1062_v33 = vcvt.f32.s32 %v1708_v31  ;;  %v615_v49 = vmin.f32 %v592_v42, %v599_v24 }
 0x390   :  { %v616_v46 = vmin.f32 %v592_v42, %v600_v9  ;;  %v617_v57 = vmin.f32 %v592_v42, %v601_v54  ;;  %v1727_v3 = vmul.f32 %v1202_v7, %v613_v20  ;;  %v618_v52 = vmin.f32 %v592_v42, %v602_v22 }
 0x391   :  { %v619_v44 = vmin.f32 %v592_v42, %v603_v34  ;;  %v620_v48 = vmin.f32 %v592_v42, %v604_v43  ;;  %v1070_v47 = vcvt.f32.s32 %v1716_v55  ;;  %v621_v18 = vmin.f32 %v592_v42, %v605_v63 }
 0x392   :  { %v622_v17 = vmin.f32 %v592_v42, %v606_v11  ;;  %v623_v19 = vmin.f32 %v592_v42, %v607_v37  ;;  %v1078_v16 = vcvt.f32.s32 %v1721_v26  ;;  %v624_v29 = vmin.f32 %v592_v42, %v608_v30 }
 0x393   :  { %v1731_v25 = vmul.f32 %v1202_v7, %v614_v56  ;;  %v1063_v50 = vcvt.s32.f32 %v1062_v33  ;;  %v1086_v35 = vcvt.f32.s32 %v1724_v51  ;;  %v1734_v58 = vmul.f32 %v1202_v7, %v615_v49 }
 0x394   :  { %v1736_v36 = vmul.f32 %v1202_v7, %v616_v46  ;;  %v1738_v62 = vmul.f32 %v1202_v7, %v617_v57  ;;  %v1094_v28 = vcvt.f32.s32 %v1727_v3  ;;  %v1741_v0 = vmul.f32 %v1202_v7, %v618_v52 }
 0x395   :  { %v1743_v1 = vmul.f32 %v1202_v7, %v619_v44  ;;  %v1745_v39 = vmul.f32 %v1202_v7, %v620_v48  ;;  %v1071_v12 = vcvt.s32.f32 %v1070_v47  ;;  %v1747_v6 = vmul.f32 %v1202_v7, %v621_v18 }
 0x396   :  { %v1749_v59 = vmul.f32 %v1202_v7, %v622_v17  ;;  %v1060_v41 = vand.u32 2147483647, %v1708_v31  ;;  %v1079_v10 = vcvt.s32.f32 %v1078_v16  ;;  %v1752_v23 = vmul.f32 %v1202_v7, %v623_v19 }
 0x397   :  { %v1064_v13 = vand.u32 2147483647, %v1063_v50  ;;  %v1087_v27 = vcvt.s32.f32 %v1086_v35  ;;  %v1102_v32 = vcvt.f32.s32 %v1731_v25  ;;  %v1755_v38 = vmul.f32 %v1202_v7, %v624_v29 }
 0x398   :  { %v1068_v42 = vand.u32 2147483647, %v1716_v55  ;;  %v1095_v40 = vcvt.s32.f32 %v1094_v28  ;;  %v1110_v53 = vcvt.f32.s32 %v1734_v58  ;;  %v1065_v21 = vand.u32 2147483648, %v1708_v31 }
 0x399   :  { %v1072_v45 = vand.u32 2147483647, %v1071_v12  ;;  %v1076_v4 = vand.u32 2147483647, %v1721_v26  ;;  %v1118_v14 = vcvt.f32.s32 %v1736_v36  ;;  %vm1762_vm2 = vcmp.lt.f32.partialorder %v1060_v41, 8388608.0 }
 0x39a   :  { %v1073_v61 = vand.u32 2147483648, %v1716_v55  ;;  %v1080_v7 = vand.u32 2147483647, %v1079_v10  ;;  %v1084_v2 = vand.u32 2147483647, %v1724_v51  ;;  %v1066_v24 = vor.u32 %v1065_v21, %v1064_v13 }
 0x39b   :  { %v1088_v9 = vand.u32 2147483647, %v1087_v27  ;;  %v1092_v54 = vand.u32 2147483647, %v1727_v3  ;;  %v1103_v20 = vcvt.s32.f32 %v1102_v32  ;;  %vm1769_vm3 = vcmp.lt.f32.partialorder %v1068_v42, 8388608.0 }
 0x39c   :  { %v1081_v34 = vand.u32 2147483648, %v1721_v26  ;;  %v1096_v43 = vand.u32 2147483647, %v1095_v40  ;;  %v1111_v63 = vcvt.s32.f32 %v1110_v53  ;;  %v1074_v11 = vor.u32 %v1073_v61, %v1072_v45 }
 0x39d   :  { %vm1774_vm4 = vcmp.lt.f32.partialorder %v1076_v4, 8388608.0  ;;  %v1089_v30 = vand.u32 2147483648, %v1724_v51  ;;  %v1119_v56 = vcvt.s32.f32 %v1118_v14  ;;  %vm1779_vm5 = vcmp.lt.f32.partialorder %v1084_v2, 8388608.0 }
 0x39e   :  { %v1082_v33 = vor.u32 %v1081_v34, %v1080_v7  ;;  %v1097_v46 = vand.u32 2147483648, %v1727_v3  ;;  %v1100_v57 = vand.u32 2147483647, %v1731_v25  ;;  %v1067_v52 = vsel %vm1762_vm2, %v1066_v24, %v1708_v31 }
 0x39f   :  { %v1090_v44 = vor.u32 %v1089_v30, %v1088_v9  ;;  %vm1788_vm6 = vcmp.lt.f32.partialorder %v1092_v54, 8388608.0  ;;  %v1104_v47 = vand.u32 2147483647, %v1103_v20  ;;  %v1108_v17 = vand.u32 2147483647, %v1734_v58 }
 0x3a0   :  { %v1098_v18 = vor.u32 %v1097_v46, %v1096_v43  ;;  %v1112_v19 = vand.u32 2147483647, %v1111_v63  ;;  %v1126_v16 = vcvt.f32.s32 %v1738_v62  ;;  %v1075_v29 = vsel %vm1769_vm3, %v1074_v11, %v1716_v55 }
 0x3a1   :  { %v1105_v50 = vand.u32 2147483648, %v1731_v25  ;;  %v1120_v35 = vand.u32 2147483647, %v1119_v56  ;;  %v1134_v31 = vcvt.f32.s32 %v1741_v0  ;;  %v1083_v28 = vsel %vm1774_vm4, %v1082_v33, %v1721_v26 }
 0x3a2   :  { %vm1802_vm7 = vcmp.lt.f32.partialorder %v1100_v57, 8388608.0  ;;  %v1113_v41 = vand.u32 2147483648, %v1734_v58  ;;  %v1116_v10 = vand.u32 2147483647, %v1736_v36  ;;  %v1091_v55 = vsel %vm1779_vm5, %v1090_v44, %v1724_v51 }
 0x3a3   :  { %v1106_v13 = vor.u32 %v1105_v50, %v1104_v47  ;;  %v1121_v27 = vand.u32 2147483648, %v1736_v36  ;;  %v1124_v32 = vand.u32 2147483647, %v1738_v62  ;;  %v1099_v26 = vsel %vm1788_vm6, %v1098_v18, %v1727_v3 }
 0x3a4   :  { %vm1816_vm8 = vcmp.lt.f32.partialorder %v1108_v17, 8388608.0  ;;  %v1114_v40 = vor.u32 %v1113_v41, %v1112_v19  ;;  %v1127_v53 = vcvt.s32.f32 %v1126_v16  ;;  %v1132_v45 = vand.u32 2147483647, %v1741_v0 }
 0x3a5   :  { %v1122_v21 = vor.u32 %v1121_v27, %v1120_v35  ;;  %v1135_v4 = vcvt.s32.f32 %v1134_v31  ;;  %v1142_v51 = vcvt.f32.s32 %v1743_v1  ;;  %vm1822_vm9 = vcmp.lt.f32.partialorder %v1116_v10, 8388608.0 }
 0x3a6   :  { %v1129_v60 = vand.u32 2147483648, %v1738_v62  ;;  %v1828_v3 = vmul.f32 %v1698_v15, %v1067_v52  ;;  %v1831_v61 = vmul.f32 %v1698_v15, %v1075_v29  ;;  %v1107_v7 = vsel %vm1802_vm7, %v1106_v13, %v1731_v25 }
 0x3a7   :  { %vm1836_vm10 = vcmp.lt.f32.partialorder %v1124_v32, 8388608.0  ;;  %v1137_v24 = vand.u32 2147483648, %v1741_v0  ;;  %v1150_v9 = vcvt.f32.s32 %v1745_v39  ;;  %v1115_v54 = vsel %vm1816_vm8, %v1114_v40, %v1734_v58 }
 0x3a8   :  { %v1128_v20 = vand.u32 2147483647, %v1127_v53  ;;  %v1140_v22 = vand.u32 2147483647, %v1743_v1  ;;  %v1847_v34 = vmul.f32 %v1698_v15, %v1083_v28  ;;  %v1123_v25 = vsel %vm1822_vm9, %v1122_v21, %v1736_v36 }
 0x3a9   :  { %vm1852_vm11 = vcmp.lt.f32.partialorder %v1132_v45, 8388608.0  ;;  %v1136_v63 = vand.u32 2147483647, %v1135_v4  ;;  %v1143_v11 = vcvt.s32.f32 %v1142_v51  ;;  %v1158_v37 = vcvt.f32.s32 %v1747_v6 }
 0x3aa   :  { %v1148_v58 = vand.u32 2147483647, %v1745_v39  ;;  %v1859_v30 = vmul.f32 %v1698_v15, %v1091_v55  ;;  %v675_v56 = vsel %vm536_vm0, %v1828_v3, 0.0  ;;  %v676_v33 = vsel %vm536_vm0, %v1831_v61, 0.0 }
 0x3ab   :  { %v1145_v36 = vand.u32 2147483648, %v1743_v1  ;;  %v1151_v49 = vcvt.s32.f32 %v1150_v9  ;;  %v1166_v46 = vcvt.f32.s32 %v1749_v59  ;;  %v677_v57 = vadd.f32 %v676_v33, %v675_v56 }
 0x3ac   :  { %v1130_v52 = vor.u32 %v1129_v60, %v1128_v20  ;;  %vm1867_vm12 = vcmp.lt.f32.partialorder %v1140_v22, 8388608.0  ;;  %v1872_v48 = vmul.f32 %v1698_v15, %v1099_v26  ;;  %v678_v47 = vsel %vm536_vm0, %v1847_v34, 0.0 }
 0x3ad   :  { %v1144_v18 = vand.u32 2147483647, %v1143_v11  ;;  %v1159_v17 = vcvt.s32.f32 %v1158_v37  ;;  %v1174_v19 = vcvt.f32.s32 %v1752_v23  ;;  %v679_v16 = vadd.f32 %v678_v47, %v677_v57 }
 0x3ae   :  { %v1138_v29 = vor.u32 %v1137_v24, %v1136_v63  ;;  %vm1877_vm13 = vcmp.lt.f32.partialorder %v1148_v58, 8388608.0  ;;  %v1882_v35 = vmul.f32 %v1698_v15, %v1107_v7  ;;  %v680_v31 = vsel %vm536_vm0, %v1859_v30, 0.0 }
 0x3af   :  { %v1152_v28 = vand.u32 2147483647, %v1151_v49  ;;  %v1167_v12 = vcvt.s32.f32 %v1166_v46  ;;  %v1182_v41 = vcvt.f32.s32 %v1755_v38  ;;  %v681_v10 = vadd.f32 %v680_v31, %v679_v16 }
 0x3b0   :  { %v1131_v55 = vsel %vm1836_vm10, %v1130_v52, %v1738_v62  ;;  %v1153_v13 = vand.u32 2147483648, %v1745_v39  ;;  %v1892_v27 = vmul.f32 %v1698_v15, %v1115_v54  ;;  %v682_v32 = vsel %vm536_vm0, %v1872_v48, 0.0 }
 0x3b1   :  { %v1146_v26 = vor.u32 %v1145_v36, %v1144_v18  ;;  %v1160_v42 = vand.u32 2147483647, %v1159_v17  ;;  %v1175_v40 = vcvt.s32.f32 %v1174_v19  ;;  %v683_v53 = vadd.f32 %v682_v32, %v681_v10 }
 0x3b2   :  { %v1139_v21 = vsel %vm1852_vm11, %v1138_v29, %v1741_v0  ;;  %v1161_v45 = vand.u32 2147483648, %v1747_v6  ;;  %v1901_v62 = vmul.f32 %v1698_v15, %v1123_v25  ;;  %v684_v4 = vsel %vm536_vm0, %v1882_v35, 0.0 }
 0x3b3   :  { %v1154_v51 = vor.u32 %v1153_v13, %v1152_v28  ;;  %v1168_v14 = vand.u32 2147483647, %v1167_v12  ;;  %v1183_v60 = vcvt.s32.f32 %v1182_v41  ;;  %v685_v7 = vadd.f32 %v684_v4, %v683_v53 }
 0x3b4   :  { %v1156_v2 = vand.u32 2147483647, %v1747_v6  ;;  %v1169_v24 = vand.u32 2147483648, %v1749_v59  ;;  %v1908_v9 = vmul.f32 %v1698_v15, %v1131_v55  ;;  %v686_v0 = vsel %vm536_vm0, %v1892_v27, 0.0 }
 0x3b5   :  { %v1147_v54 = vsel %vm1867_vm12, %v1146_v26, %v1743_v1  ;;  %v1162_v20 = vor.u32 %v1161_v45, %v1160_v42  ;;  %v1176_v22 = vand.u32 2147483647, %v1175_v40  ;;  %v687_v25 = vadd.f32 %v686_v0, %v685_v7 }
 0x3b6   :  { %v1164_v43 = vand.u32 2147483647, %v1749_v59  ;;  %v1177_v63 = vand.u32 2147483648, %v1752_v23  ;;  %v1918_v11 = vmul.f32 %v1698_v15, %v1139_v21  ;;  %v688_v37 = vsel %vm536_vm0, %v1901_v62, 0.0 }
 0x3b7   :  { %v1155_v58 = vsel %vm1877_vm13, %v1154_v51, %v1745_v39  ;;  %v1170_v56 = vor.u32 %v1169_v24, %v1168_v14  ;;  %v1184_v33 = vand.u32 2147483647, %v1183_v60  ;;  %v689_v1 = vadd.f32 %v688_v37, %v687_v25 }
 0x3b8   :  { %vm1925_vm14 = vcmp.lt.f32.partialorder %v1156_v2, 8388608.0  ;;  %v1172_v49 = vand.u32 2147483647, %v1752_v23  ;;  %v1931_v46 = vmul.f32 %v1698_v15, %v1147_v54  ;;  %v690_v57 = vsel %vm536_vm0, %v1908_v9, 0.0 }
 0x3b9   :  { %v1163_v52 = vsel %vm1925_vm14, %v1162_v20, %v1747_v6  ;;  %v1178_v39 = vor.u32 %v1177_v63, %v1176_v22  ;;  %v1185_v44 = vand.u32 2147483648, %v1755_v38  ;;  %v691_v47 = vadd.f32 %v690_v57, %v689_v1 }
 0x3ba   :  { %vm1165_vm15 = vcmp.lt.f32.partialorder %v1164_v43, 8388608.0  ;;  %v1180_v18 = vand.u32 2147483647, %v1755_v38  ;;  %v1941_v17 = vmul.f32 %v1698_v15, %v1155_v58  ;;  %v692_v19 = vsel %vm536_vm0, %v1918_v11, 0.0 }
 0x3bb   :  { %v1171_v16 = vsel %vm1165_vm15, %v1170_v56, %v1749_v59  ;;  %v1186_v29 = vor.u32 %v1185_v44, %v1184_v33  ;;  %v693_v50 = vadd.f32 %v692_v19, %v691_v47  ;;  %vm1173_vm1 = vcmp.lt.f32.partialorder %v1172_v49, 8388608.0 }
 0x3bc   :  { %v1947_v6 = vmul.f32 %v1698_v15, %v1163_v52  ;;  %v694_v31 = vsel %vm536_vm0, %v1931_v46, 0.0  ;;  %v1179_v28 = vsel %vm1173_vm1, %v1178_v39, %v1752_v23  ;;  %vm1181_vm2 = vcmp.lt.f32.partialorder %v1180_v18, 8388608.0 }
 0x3bd   :  { %v695_v12 = vadd.f32 %v694_v31, %v693_v50  ;;  %v670_v41 = vmul.f32 %v1698_v15, %v1171_v16  ;;  %v696_v10 = vsel %vm536_vm0, %v1941_v17, 0.0  ;;  %v1187_v59 = vsel %vm1181_vm2, %v1186_v29, %v1755_v38 }
 0x3be   :  { %v671_v13 = vmul.f32 %v1698_v15, %v1179_v28  ;;  %v698_v32 = vsel %vm536_vm0, %v1947_v6, 0.0  ;;  %v1960_v42 = vmul.f32 %v1698_v15, %v1187_v59 }
 0x3bf   :  { %v697_v55 = vadd.f32 %v696_v10, %v695_v12  ;;  %v700_v23 = vsel %vm536_vm0, %v670_v41, 0.0 }
 0x3c0   :  { %v702_v53 = vsel %vm536_vm0, %v671_v13, 0.0  ;;  %v704_v45 = vsel %vm536_vm0, %v1960_v42, 0.0 }
 0x3c1   :  { %v699_v26 = vadd.f32 %v698_v32, %v697_v55 }
 0x3c3   :  { %v701_v40 = vadd.f32 %v700_v23, %v699_v26 }
 0x3c5   :  { %v703_v21 = vadd.f32 %v702_v53, %v701_v40 }
 0x3c7   :  { %v705_v38 = vadd.f32 %v704_v45, %v703_v21 }
 0x3c9   :  { %v706_v4 = vrot.slane %v705_v38, 4 }
 0x3cb   :  { %v707_v51 = vadd.f32 %v706_v4, %v705_v38 }
 0x3cd   :  { %v708_v14 = vrot.slane %v707_v51, 2 }
 0x3cf   :  { %v709_v60 = vadd.f32 %v708_v14, %v707_v51 }
 0x3d1   :  { %v710_v7 = vrot.slane %v709_v60, 1 }
 0x3d3   :  { %v711_v2 = vadd.f32 %v710_v7, %v709_v60 }
 0x3d5   :  { %v712_v24 = vmul.f32 0.0078125, %v711_v2 }
 0x3d7   :  { %v1967_v15 = vsub.f32 %v1828_v3, %v712_v24  ;;  %v1970_v0 = vsub.f32 %v1831_v61, %v712_v24  ;;  %v1973_v54 = vsub.f32 %v1847_v34, %v712_v24  ;;  %v1976_v20 = vsub.f32 %v1859_v30, %v712_v24 }
 0x3d8   :  { %v1983_v43 = vsub.f32 %v1872_v48, %v712_v24  ;;  %v1988_v61 = vsub.f32 %v1882_v35, %v712_v24  ;;  %v1995_v58 = vsub.f32 %v1892_v27, %v712_v24  ;;  %v2001_v35 = vsub.f32 %v1901_v62, %v712_v24 }
 0x3d9   :  { %v729_v22 = vmul.f32 %v1967_v15, %v1967_v15  ;;  %v730_v25 = vmul.f32 %v1970_v0, %v1970_v0  ;;  %v731_v3 = vmul.f32 %v1973_v54, %v1973_v54  ;;  %v732_v34 = vmul.f32 %v1976_v20, %v1976_v20 }
 0x3da   :  { %v733_v48 = vmul.f32 %v1983_v43, %v1983_v43  ;;  %v734_v1 = vmul.f32 %v1988_v61, %v1988_v61  ;;  %v2007_v57 = vsub.f32 %v1908_v9, %v712_v24  ;;  %v735_v27 = vmul.f32 %v1995_v58, %v1995_v58 }
 0x3db   :  { %v745_v30 = vsel %vm536_vm0, %v729_v22, 0.0  ;;  %v746_v63 = vsel %vm536_vm0, %v730_v25, 0.0  ;;  %v748_v56 = vsel %vm536_vm0, %v731_v3, 0.0  ;;  %v750_v36 = vsel %vm536_vm0, %v732_v34, 0.0 }
 0x3dc   :  { %v747_v37 = vadd.f32 %v746_v63, %v745_v30  ;;  %v752_v52 = vsel %vm536_vm0, %v733_v48, 0.0  ;;  %v2013_v44 = vsub.f32 %v1918_v11, %v712_v24  ;;  %v736_v62 = vmul.f32 %v2001_v35, %v2001_v35 }
 0x3dd   :  { %v754_v47 = vsel %vm536_vm0, %v734_v1, 0.0  ;;  %v723_v19 = vsub.f32 %v1931_v46, %v712_v24  ;;  %v737_v9 = vmul.f32 %v2007_v57, %v2007_v57  ;;  %v756_v16 = vsel %vm536_vm0, %v735_v27, 0.0 }
 0x3de   :  { %v749_v33 = vadd.f32 %v748_v56, %v747_v37  ;;  %v724_v50 = vsub.f32 %v1941_v17, %v712_v24  ;;  %v738_v11 = vmul.f32 %v2013_v44, %v2013_v44  ;;  %v758_v31 = vsel %vm536_vm0, %v736_v62, 0.0 }
 0x3df   :  { %v725_v12 = vsub.f32 %v1947_v6, %v712_v24  ;;  %v739_v10 = vmul.f32 %v723_v19, %v723_v19  ;;  %v760_v59 = vsel %vm536_vm0, %v737_v9, 0.0  ;;  %v726_v55 = vsub.f32 %v670_v41, %v712_v24 }
 0x3e0   :  { %v751_v49 = vadd.f32 %v750_v36, %v749_v33  ;;  %v740_v32 = vmul.f32 %v724_v50, %v724_v50  ;;  %v762_v26 = vsel %vm536_vm0, %v738_v11, 0.0  ;;  %v727_v40 = vsub.f32 %v671_v13, %v712_v24  ;;  %v673_v33 = vld [vmem:[%s2170_s4] sm:$0x1] }
 0x3e1   :  { %v741_v53 = vmul.f32 %v725_v12, %v725_v12  ;;  %v764_v17 = vsel %vm536_vm0, %v739_v10, 0.0  ;;  %v728_v45 = vsub.f32 %v1960_v42, %v712_v24  ;;  %v742_v38 = vmul.f32 %v726_v55, %v726_v55 }
 0x3e2   :  { %v753_v39 = vadd.f32 %v752_v52, %v751_v49  ;;  %v766_v4 = vsel %vm536_vm0, %v740_v32, 0.0  ;;  %v743_v51 = vmul.f32 %v727_v40, %v727_v40  ;;  %v836_v32 = vld [vmem:[%s2172_s6 + $0x30] sm:$0xff] }
 0x3e3   :  { %v768_v14 = vsel %vm536_vm0, %v741_v53, 0.0  ;;  %v744_v41 = vmul.f32 %v728_v45, %v728_v45  ;;  %v770_v7 = vsel %vm536_vm0, %v742_v38, 0.0 }
 0x3e4   :  { %v755_v18 = vadd.f32 %v754_v47, %v753_v39  ;;  %v772_v13 = vsel %vm536_vm0, %v743_v51, 0.0  ;;  %v893_v47 = vld [vmem:[%s2171_s5] ss:$0 sm:$0xff] }
 0x3e5   :  { %v774_v25 = vsel %vm536_vm0, %v744_v41, 0.0  ;;  %v842_v41 = vld [vmem:[%s2172_s6 + $0x60] sm:$0xff] }
 0x3e6   :  { %v757_v29 = vadd.f32 %v756_v16, %v755_v18 }
 0x3e8   :  { %v759_v28 = vadd.f32 %v758_v31, %v757_v29 }
 0x3ea   :  { %v761_v46 = vadd.f32 %v760_v59, %v759_v28 }
 0x3ec   :  { %v763_v23 = vadd.f32 %v762_v26, %v761_v46  ;;  %v834_v46 = vld [vmem:[%s2172_s6 + $0x20] sm:$0xff] }
 0x3ee   :  { %v765_v21 = vadd.f32 %v764_v17, %v763_v23  ;;  %v837_v17 = vld [vmem:[%s2172_s6 + $0x38] sm:$0xff] }
 0x3f0   :  { %v767_v6 = vadd.f32 %v766_v4, %v765_v21  ;;  %v838_v21 = vld [vmem:[%s2172_s6 + $0x40] sm:$0xff] }
 0x3f2   :  { %v769_v60 = vadd.f32 %v768_v14, %v767_v6  ;;  %v840_v14 = vld [vmem:[%s2172_s6 + $0x50] sm:$0xff] }
 0x3f4   :  { %v771_v2 = vadd.f32 %v770_v7, %v769_v60  ;;  %v841_v60 = vld [vmem:[%s2172_s6 + $0x58] sm:$0xff]  ;;  %v843_v7 = vld [vmem:[%s2172_s6 + $0x68] sm:$0xff] }
 0x3f6   :  { %v773_v22 = vadd.f32 %v772_v13, %v771_v2  ;;  %v844_v2 = vld [vmem:[%s2172_s6 + $0x70] sm:$0xff]  ;;  %v845_v13 = vld [vmem:[%s2172_s6 + $0x78] sm:$0xff] }
 0x3f8   :  { %v775_v3 = vadd.f32 %v774_v25, %v773_v22 }
 0x3fa   :  { %v776_v34 = vrot.slane %v775_v3, 4 }
 0x3fc   :  { %v777_v42 = vadd.f32 %v776_v34, %v775_v3 }
 0x3fe   :  { %v778_v24 = vrot.slane %v777_v42, 2 }
 0x400   :  { %v779_v30 = vadd.f32 %v778_v24, %v777_v42 }
 0x402   :  { %v780_v63 = vrot.slane %v779_v30, 1 }
 0x404   :  { %v781_v37 = vadd.f32 %v780_v63, %v779_v30 }
 0x406   :  { %v782_v48 = vmul.f32 0.0078125, %v781_v37 }
 0x408   :  { %v783_v56 = vadd.f32 1e-05, %v782_v48 }
 0x40a   :  { %1203 = vrsqrt.f32 %v783_v56 }
 0x417   :  { %v1204_v1 = vpop.eup %1203 }
 0x418   :  { %v785_v36 = vmul.f32 %v1204_v1, %v673_v33 }
 0x41a   :  { %v790_v49 = vrot.slane %v785_v36, %v160_v8 }
 0x41c   :  { %v792_v27 = vmul.f32 %v790_v49, %v1967_v15  ;;  %v793_v52 = vmul.f32 %v790_v49, %v1970_v0  ;;  %v794_v39 = vmul.f32 %v790_v49, %v1973_v54  ;;  %v795_v62 = vmul.f32 %v790_v49, %v1976_v20 }
 0x41d   :  { %v796_v18 = vmul.f32 %v790_v49, %v1983_v43  ;;  %v797_v9 = vmul.f32 %v790_v49, %v1988_v61  ;;  %v798_v16 = vmul.f32 %v790_v49, %v1995_v58  ;;  %v799_v5 = vmul.f32 %v790_v49, %v2001_v35  ;;  %v830_v43 = vld [vmem:[%s2172_s6] sm:$0xff]  ;;  %v831_v35 = vld [vmem:[%s2172_s6 + $0x8] sm:$0xff] }
 0x41e   :  { %v800_v8 = vmul.f32 %v790_v49, %v2007_v57  ;;  %v801_v15 = vmul.f32 %v790_v49, %v2013_v44  ;;  %v802_v0 = vmul.f32 %v790_v49, %v723_v19  ;;  %v803_v54 = vmul.f32 %v790_v49, %v724_v50  ;;  %v832_v57 = vld [vmem:[%s2172_s6 + $0x10] sm:$0xff]  ;;  %v833_v44 = vld [vmem:[%s2172_s6 + $0x18] sm:$0xff] }
 0x41f   :  { %v804_v29 = vmul.f32 %v790_v49, %v725_v12  ;;  %v805_v20 = vmul.f32 %v790_v49, %v726_v55  ;;  %v806_v11 = vmul.f32 %v790_v49, %v727_v40  ;;  %v807_v31 = vmul.f32 %v790_v49, %v728_v45  ;;  %v835_v55 = vld [vmem:[%s2172_s6 + $0x28] sm:$0xff] }
 0x420   :  { %v814_v28 = vadd.f32 %v893_v47, %v792_v27  ;;  %v815_v61 = vadd.f32 %v893_v47, %v793_v52  ;;  %v816_v10 = vadd.f32 %v893_v47, %v794_v39  ;;  %v817_v58 = vadd.f32 %v893_v47, %v795_v62  ;;  %v839_v45 = vld [vmem:[%s2172_s6 + $0x48] sm:$0xff] }
 0x421   :  { %v818_v19 = vadd.f32 %v893_v47, %v796_v18  ;;  %v819_v50 = vadd.f32 %v893_v47, %v797_v9  ;;  %v820_v12 = vadd.f32 %v893_v47, %v798_v16  ;;  %v821_v59 = vadd.f32 %v893_v47, %v799_v5 }
 0x422   :  { %v822_v26 = vadd.f32 %v893_v47, %v800_v8  ;;  %v823_v23 = vadd.f32 %v893_v47, %v801_v15  ;;  %v824_v40 = vadd.f32 %v893_v47, %v802_v0  ;;  %v825_v53 = vadd.f32 %v893_v47, %v803_v54 }
 0x423   :  { %v826_v38 = vadd.f32 %v893_v47, %v804_v29  ;;  %v827_v4 = vadd.f32 %v893_v47, %v805_v20  ;;  %v828_v6 = vadd.f32 %v893_v47, %v806_v11  ;;  %v829_v51 = vadd.f32 %v893_v47, %v807_v31 }
 0x424   :  { %v846_v22 = vadd.f32 %v830_v43, %v814_v28  ;;  %v847_v25 = vadd.f32 %v831_v35, %v815_v61  ;;  %v848_v3 = vadd.f32 %v832_v57, %v816_v10  ;;  %v849_v34 = vadd.f32 %v833_v44, %v817_v58 }
 0x425   :  { %v850_v42 = vadd.f32 %v834_v46, %v818_v19  ;;  %v851_v24 = vadd.f32 %v835_v55, %v819_v50  ;;  %v852_v30 = vadd.f32 %v836_v32, %v820_v12  ;;  %v853_v63 = vadd.f32 %v837_v17, %v821_v59 }
 0x426   :  { %v854_v37 = vadd.f32 %v838_v21, %v822_v26  ;;  %v855_v48 = vadd.f32 %v839_v45, %v823_v23  ;;  %v856_v56 = vadd.f32 %v840_v14, %v824_v40  ;;  %v857_v33 = vadd.f32 %v841_v60, %v825_v53  ;;  %862 = vst.msk [vmem:[%s2173_s7] sm:$0xff] %vm536_vm0, %v846_v22 }
 0x427   :  { %863 = vst.msk [vmem:[%s2173_s7 + $0x8] sm:$0xff] %vm536_vm0, %v847_v25  ;;  %864 = vst.msk [vmem:[%s2173_s7 + $0x10] sm:$0xff] %vm536_vm0, %v848_v3  ;;  %v858_v1 = vadd.f32 %v842_v41, %v826_v38  ;;  %v859_v36 = vadd.f32 %v843_v7, %v827_v4  ;;  %v860_v49 = vadd.f32 %v844_v2, %v828_v6 }
 0x428   :  { %865 = vst.msk [vmem:[%s2173_s7 + $0x18] sm:$0xff] %vm536_vm0, %v849_v34  ;;  %v861_v27 = vadd.f32 %v845_v13, %v829_v51  ;;  %866 = vst.msk [vmem:[%s2173_s7 + $0x20] sm:$0xff] %vm536_vm0, %v850_v42 }
 0x429   :  { %867 = vst.msk [vmem:[%s2173_s7 + $0x28] sm:$0xff] %vm536_vm0, %v851_v24  ;;  %868 = vst.msk [vmem:[%s2173_s7 + $0x30] sm:$0xff] %vm536_vm0, %v852_v30 }
 0x42a   :  { %869 = vst.msk [vmem:[%s2173_s7 + $0x38] sm:$0xff] %vm536_vm0, %v853_v63  ;;  %870 = vst.msk [vmem:[%s2173_s7 + $0x40] sm:$0xff] %vm536_vm0, %v854_v37 }
 0x42b   :  { %871 = vst.msk [vmem:[%s2173_s7 + $0x48] sm:$0xff] %vm536_vm0, %v855_v48  ;;  %872 = vst.msk [vmem:[%s2173_s7 + $0x50] sm:$0xff] %vm536_vm0, %v856_v56 }
 0x42c   :  { %873 = vst.msk [vmem:[%s2173_s7 + $0x58] sm:$0xff] %vm536_vm0, %v857_v33  ;;  %874 = vst.msk [vmem:[%s2173_s7 + $0x60] sm:$0xff] %vm536_vm0, %v858_v1 }
 0x42d   :  { %875 = vst.msk [vmem:[%s2173_s7 + $0x68] sm:$0xff] %vm536_vm0, %v859_v36  ;;  %876 = vst.msk [vmem:[%s2173_s7 + $0x70] sm:$0xff] %vm536_vm0, %v860_v49 }
 0x42e   :  { %877 = vst.msk [vmem:[%s2173_s7 + $0x78] sm:$0xff] %vm536_vm0, %v861_v27 }

// kernel: inverted_residual_forward.4
= control target key start
LH: loop header
LB: loop body
LE: loop exit
PB: predicated region body
PF: predicated region fallthrough
CT: control target
= control target key end

     0   :  { %vm27_vm0 = vcmask 261120   ;;  %vm30_vm1 = vcmask 253952   ;;  %v110_v0 = vlaneseq  ;;  %v874_v4 = vmov 0.0   ;;  %s1804_s0 = inlined_call_operand.vmem [shape: f32[2,8,8,32], index: 0, kind: input, shape index: {}]   ;;  %s1805_s1 = inlined_call_operand.vmem [shape: f32[3,3,32], index: 1, kind: input, shape index: {}]   ;;  %s1806_s2 = inlined_call_operand.vmem [shape: f32[2,8,8,32], index: 2, kind: output, shape index: {}]  }
   0x1   :  { %v11_v1 = vld [vmem:[%s1804_s0] sm:$0xff]  ;;  %v12_v2 = vld [vmem:[%s1804_s0 + $0x8] sm:$0xff]  ;;  %v13_v3 = vld [vmem:[%s1804_s0 + $0x10] sm:$0xff]  ;;  %28 = vst.msk [vmem:[#allocation2] sm:$0xff] %vm27_vm0, %v874_v4 }
   0x2   :  { %29 = vst.msk [vmem:[#allocation2 + $0x8] sm:$0xff] %vm27_vm0, %v874_v4  ;;  %32 = vst.msk [vmem:[#allocation2 + $0xf0] sm:$0xff] %vm27_vm0, %v874_v4  ;;  %v14_v5 = vld [vmem:[%s1804_s0 + $0x18] sm:$0xff]  ;;  %v15_v6 = vld [vmem:[%s1804_s0 + $0x20] sm:$0xff]  ;;  %v111_v8 = vshrl.u32 %v110_v0, 7 }
   0x3   :  { %31 = vst.msk [vmem:[#allocation2 + $0x10] sm:$0x1] %vm30_vm1, %v874_v4  ;;  %34 = vst.msk [vmem:[#allocation2 + $0x100] sm:$0x1] %vm30_vm1, %v874_v4  ;;  %v16_v7 = vld [vmem:[%s1804_s0 + $0x28] sm:$0xff]  ;;  %v17_v9 = vld [vmem:[%s1804_s0 + $0x30] sm:$0xff] }
   0x4   :  { %33 = vst.msk [vmem:[#allocation2 + $0xf8] sm:$0xff] %vm27_vm0, %v874_v4  ;;  %36 = vst.msk [vmem:[#allocation2 + $0xd8] sm:$0xff] %vm27_vm0, %v874_v4  ;;  %v18_v10 = vld [vmem:[%s1804_s0 + $0x38] sm:$0xff]  ;;  %v19_v11 = vld [vmem:[%s1804_s0 + $0x40] sm:$0xff]  ;;  %v112_v15 = vsub.s32 0, %v111_v8  ;;  %v164_v16 = vsub.s32 1, %v111_v8 }
   0x5   :  { %37 = vst.msk [vmem:[#allocation2 + $0xe0] sm:$0xff] %vm27_vm0, %v874_v4  ;;  %39 = vst.msk [vmem:[#allocation2 + $0x1c8] sm:$0xff] %vm27_vm0, %v874_v4  ;;  %v20_v12 = vld [vmem:[%s1804_s0 + $0x48] sm:$0xff]  ;;  %v21_v13 = vld [vmem:[%s1804_s0 + $0x50] sm:$0xff]  ;;  %v216_v17 = vsub.s32 2, %v111_v8 }
   0x6   :  { %38 = vst.msk [vmem:[#allocation2 + $0xe8] sm:$0x1] %vm30_vm1, %v874_v4  ;;  %41 = vst.msk [vmem:[#allocation2 + $0x1d8] sm:$0x1] %vm30_vm1, %v874_v4  ;;  %v22_v14 = vld [vmem:[%s1804_s0 + $0x58] sm:$0xff]  ;;  %v23_v18 = vld [vmem:[%s1804_s0 + $0x60] sm:$0xff] }
   0x7   :  { %40 = vst.msk [vmem:[#allocation2 + $0x1d0] sm:$0xff] %vm27_vm0, %v874_v4  ;;  %75 = vst.msk [vmem:[#allocation2 + $0x20] sm:$0xff] %vm27_vm0, %v11_v1  ;;  %v24_v19 = vld [vmem:[%s1804_s0 + $0x68] sm:$0xff]  ;;  %v25_v20 = vld [vmem:[%s1804_s0 + $0x70] sm:$0xff] }
   0x8   :  { %43 = vst.msk [vmem:[#allocation2 + $0x1f] sm:$0x1] %vm30_vm1, %v874_v4  ;;  %44 = vst.msk [vmem:[#allocation2 + $0x37] sm:$0x1] %vm30_vm1, %v874_v4  ;;  %v26_v21 = vld [vmem:[%s1804_s0 + $0x78] sm:$0xff] }
   0x9   :  { %45 = vst.msk [vmem:[#allocation2 + $0x4f] sm:$0x1] %vm30_vm1, %v874_v4  ;;  %46 = vst.msk [vmem:[#allocation2 + $0x67] sm:$0x1] %vm30_vm1, %v874_v4  ;;  %v91_v22 = vld [vmem:[%s1805_s1] sm:$0x7] }
   0xa   :  { %47 = vst.msk [vmem:[#allocation2 + $0x7f] sm:$0x1] %vm30_vm1, %v874_v4  ;;  %48 = vst.msk [vmem:[#allocation2 + $0x97] sm:$0x1] %vm30_vm1, %v874_v4  ;;  %v92_v23 = vld [vmem:[%s1805_s1 + $0x4] sm:$0x7]  ;;  %v113_v25 = vrot.slane %v91_v22, %v112_v15  ;;  %v1008_v26 = vrot.slane %v91_v22, %v164_v16  ;;  %v1012_v31 = vrot.slane %v91_v22, %v216_v17 }
   0xb   :  { %49 = vst.msk [vmem:[#allocation2 + $0xaf] sm:$0x1] %vm30_vm1, %v874_v4  ;;  %50 = vst.msk [vmem:[#allocation2 + $0xc7] sm:$0x1] %vm30_vm1, %v874_v4  ;;  %v93_v24 = vld [vmem:[%s1805_s1 + $0x8] sm:$0x7]  ;;  %v1010_v27 = vrot.slane %v92_v23, %v112_v15  ;;  %v1014_v32 = vrot.slane %v92_v23, %v164_v16  ;;  %v1016_v33 = vrot.slane %v92_v23, %v216_v17 }
   0xc   :  { %51 = vst.msk [vmem:[#allocation2 + $0x10f] sm:$0x1] %vm30_vm1, %v874_v4  ;;  %52 = vst.msk [vmem:[#allocation2 + $0x127] sm:$0x1] %vm30_vm1, %v874_v4  ;;  %v94_v28 = vld [vmem:[#allocation2 + $0x7] sm:$0xff]  ;;  %v102_v29 = vld [vmem:[#allocation2 + $0xf7] sm:$0xff]  ;;  %v1018_v34 = vrot.slane %v93_v24, %v112_v15  ;;  %v1027_v41 = vrot.slane %v93_v24, %v164_v16  ;;  %v1037_v48 = vrot.slane %v93_v24, %v216_v17 }
   0xd   :  { %53 = vst.msk [vmem:[#allocation2 + $0x13f] sm:$0x1] %vm30_vm1, %v874_v4  ;;  %54 = vst.msk [vmem:[#allocation2 + $0x157] sm:$0x1] %vm30_vm1, %v874_v4  ;;  %v146_v30 = vld [vmem:[#allocation2 + $0x8] sm:$0xff]  ;;  %v114_v38 = vmul.f32 %v113_v25, %v94_v28  ;;  %v1024_v39 = vmul.f32 %v113_v25, %v102_v29 }
   0xe   :  { %55 = vst.msk [vmem:[#allocation2 + $0x16f] sm:$0x1] %vm30_vm1, %v874_v4  ;;  %56 = vst.msk [vmem:[#allocation2 + $0x187] sm:$0x1] %vm30_vm1, %v874_v4  ;;  %v166_v40 = vmul.f32 %v1008_v26, %v146_v30  ;;  %v1046_v54 = vld [vmem:[#allocation2 + $0x20] sm:$0xff] }
   0xf   :  { %57 = vst.msk [vmem:[#allocation2 + $0x19f] sm:$0x1] %vm30_vm1, %v874_v4  ;;  %58 = vst.msk [vmem:[#allocation2 + $0x1b7] sm:$0x1] %vm30_vm1, %v874_v4  ;;  %v95_v35 = vld [vmem:[#allocation2 + $0x1f] sm:$0xff]  ;;  %v167_v61 = vmul.f32 %v1008_v26, %v1046_v54 }
  0x10   :  { %59 = vst.msk [vmem:[#allocation2 + $0x28] sm:$0x1] %vm30_vm1, %v874_v4  ;;  %60 = vst.msk [vmem:[#allocation2 + $0x40] sm:$0x1] %vm30_vm1, %v874_v4  ;;  %v115_v45 = vmul.f32 %v113_v25, %v95_v35  ;;  %v1049_v55 = vmul.f32 %v1010_v27, %v95_v35  ;;  %v1061_v62 = vadd.f32 %v166_v40, %v114_v38  ;;  %s875_s1 = smov 1e-30  }
  0x11   :  { %61 = vst.msk [vmem:[#allocation2 + $0x58] sm:$0x1] %vm30_vm1, %v874_v4  ;;  %62 = vst.msk [vmem:[#allocation2 + $0x70] sm:$0x1] %vm30_vm1, %v874_v4 }
  0x12   :  { %63 = vst.msk [vmem:[#allocation2 + $0x88] sm:$0x1] %vm30_vm1, %v874_v4  ;;  %64 = vst.msk [vmem:[#allocation2 + $0xa0] sm:$0x1] %vm30_vm1, %v874_v4 }
  0x13   :  { %65 = vst.msk [vmem:[#allocation2 + $0xb8] sm:$0x1] %vm30_vm1, %v874_v4  ;;  %66 = vst.msk [vmem:[#allocation2 + $0xd0] sm:$0x1] %vm30_vm1, %v874_v4 }
  0x14   :  { %67 = vst.msk [vmem:[#allocation2 + $0x118] sm:$0x1] %vm30_vm1, %v874_v4  ;;  %68 = vst.msk [vmem:[#allocation2 + $0x130] sm:$0x1] %vm30_vm1, %v874_v4 }
  0x15   :  { %69 = vst.msk [vmem:[#allocation2 + $0x148] sm:$0x1] %vm30_vm1, %v874_v4  ;;  %70 = vst.msk [vmem:[#allocation2 + $0x160] sm:$0x1] %vm30_vm1, %v874_v4 }
  0x16   :  { %71 = vst.msk [vmem:[#allocation2 + $0x178] sm:$0x1] %vm30_vm1, %v874_v4  ;;  %72 = vst.msk [vmem:[#allocation2 + $0x190] sm:$0x1] %vm30_vm1, %v874_v4 }
  0x17   :  { %73 = vst.msk [vmem:[#allocation2 + $0x1a8] sm:$0x1] %vm30_vm1, %v874_v4  ;;  %74 = vst.msk [vmem:[#allocation2 + $0x1c0] sm:$0x1] %vm30_vm1, %v874_v4 }
  0x18   :  { %76 = vst.msk [vmem:[#allocation2 + $0x38] sm:$0xff] %vm27_vm0, %v12_v2  ;;  %77 = vst.msk [vmem:[#allocation2 + $0x50] sm:$0xff] %vm27_vm0, %v13_v3 }
  0x19   :  { %78 = vst.msk [vmem:[#allocation2 + $0x68] sm:$0xff] %vm27_vm0, %v14_v5  ;;  %79 = vst.msk [vmem:[#allocation2 + $0x80] sm:$0xff] %vm27_vm0, %v15_v6 }
  0x1a   :  { %80 = vst.msk [vmem:[#allocation2 + $0x98] sm:$0xff] %vm27_vm0, %v16_v7  ;;  %81 = vst.msk [vmem:[#allocation2 + $0xb0] sm:$0xff] %vm27_vm0, %v17_v9 }
  0x1b   :  { %82 = vst.msk [vmem:[#allocation2 + $0xc8] sm:$0xff] %vm27_vm0, %v18_v10  ;;  %83 = vst.msk [vmem:[#allocation2 + $0x110] sm:$0xff] %vm27_vm0, %v19_v11 }
  0x1c   :  { %84 = vst.msk [vmem:[#allocation2 + $0x128] sm:$0xff] %vm27_vm0, %v20_v12  ;;  %85 = vst.msk [vmem:[#allocation2 + $0x140] sm:$0xff] %vm27_vm0, %v21_v13 }
  0x1d   :  { %86 = vst.msk [vmem:[#allocation2 + $0x158] sm:$0xff] %vm27_vm0, %v22_v14  ;;  %87 = vst.msk [vmem:[#allocation2 + $0x170] sm:$0xff] %vm27_vm0, %v23_v18 }
  0x1e   :  { %88 = vst.msk [vmem:[#allocation2 + $0x188] sm:$0xff] %vm27_vm0, %v24_v19  ;;  %89 = vst.msk [vmem:[#allocation2 + $0x1a0] sm:$0xff] %vm27_vm0, %v25_v20  ;;  %v1101_v19 = vadd.f32 %v167_v61, %v115_v45  ;;  %v154_v20 = vld [vmem:[#allocation2 + $0xf8] sm:$0xff] }
  0x1f   :  { %90 = vst.msk [vmem:[#allocation2 + $0x1b8] sm:$0xff] %vm27_vm0, %v26_v21  ;;  %1871 = vst [vmem:[#allocation3_spill] sm:$0xff] %v1014_v32  ;;  %v1020_v36 = vld [vmem:[#allocation2 + $0x37] sm:$0xff]  ;;  %v1022_v37 = vld [vmem:[#allocation2 + $0x4f] sm:$0xff]  ;;  %v174_v38 = vmul.f32 %v1008_v26, %v154_v20 }
  0x20   :  { %1872 = vst [vmem:[#allocation4_spill] sm:$0xff] %v1016_v33  ;;  %1873 = vst [vmem:[#allocation5_spill] sm:$0xff] %v1018_v34  ;;  %v1029_v42 = vld [vmem:[#allocation2 + $0x67] sm:$0xff]  ;;  %v1031_v43 = vld [vmem:[#allocation2 + $0x7f] sm:$0xff]  ;;  %v116_v46 = vmul.f32 %v113_v25, %v1020_v36  ;;  %v117_v47 = vmul.f32 %v113_v25, %v1022_v37  ;;  %v1074_v5 = vmul.f32 %v1010_v27, %v1020_v36 }
  0x21   :  { %1874 = vst [vmem:[#allocation6_spill] sm:$0xff] %v1020_v36  ;;  %1875 = vst [vmem:[#allocation7_spill] sm:$0xff] %v1022_v37  ;;  %v1033_v44 = vld [vmem:[#allocation2 + $0x97] sm:$0xff]  ;;  %v1039_v49 = vld [vmem:[#allocation2 + $0xaf] sm:$0xff]  ;;  %v118_v51 = vmul.f32 %v113_v25, %v1029_v42  ;;  %v119_v52 = vmul.f32 %v113_v25, %v1031_v43  ;;  %v1087_v12 = vmul.f32 %v1010_v27, %v1022_v37 }
  0x22   :  { %1876 = vst [vmem:[#allocation8_spill] sm:$0xff] %v1027_v41  ;;  %1877 = vst [vmem:[#allocation9_spill] sm:$0xff] %v1029_v42  ;;  %v1041_v50 = vld [vmem:[#allocation2 + $0x10f] sm:$0xff]  ;;  %v120_v53 = vmul.f32 %v113_v25, %v1033_v44  ;;  %v121_v59 = vmul.f32 %v113_v25, %v1039_v49  ;;  %v1079_v9 = vld [vmem:[#allocation2 + $0x38] sm:$0xff]  ;;  %v1115_v28 = vmul.f32 %v1010_v27, %v1029_v42 }
  0x23   :  { %1878 = vst [vmem:[#allocation10_spill] sm:$0xff] %v1031_v43  ;;  %1879 = vst [vmem:[#allocation11_spill] sm:$0xff] %v1037_v48  ;;  %v1051_v56 = vld [vmem:[#allocation2 + $0x127] sm:$0xff]  ;;  %v1053_v57 = vld [vmem:[#allocation2 + $0x13f] sm:$0xff]  ;;  %v123_v60 = vmul.f32 %v113_v25, %v1041_v50  ;;  %v168_v16 = vmul.f32 %v1008_v26, %v1079_v9  ;;  %v1130_v61 = vmul.f32 %v1010_v27, %v1031_v43 }
  0x24   :  { %1880 = vst [vmem:[#allocation12_spill] sm:$0xff] %v1046_v54  ;;  %v1055_v58 = vld [vmem:[#allocation2 + $0x157] sm:$0xff]  ;;  %v1063_v63 = vld [vmem:[#allocation2 + $0x16f] sm:$0xff]  ;;  %v124_v2 = vmul.f32 %v113_v25, %v1051_v56  ;;  %v125_v3 = vmul.f32 %v113_v25, %v1053_v57  ;;  %1881 = vst [vmem:[#allocation13_spill] sm:$0xff] %v1079_v9 }
  0x25   :  { %v1065_v0 = vld [vmem:[#allocation2 + $0x187] sm:$0xff]  ;;  %v1067_v1 = vld [vmem:[#allocation2 + $0x19f] sm:$0xff]  ;;  %v126_v4 = vmul.f32 %v113_v25, %v1055_v58  ;;  %v127_v6 = vmul.f32 %v113_v25, %v1063_v63  ;;  %v1081_v10 = vld [vmem:[#allocation2 + $0x50] sm:$0xff]  ;;  %1892 = vst [vmem:[#allocation24_spill] sm:$0xff] %v1130_v61  ;;  %v184_v34 = vadd.f32 %v168_v16, %v116_v46  ;;  %v190_v46 = vadd.f32 %v174_v38, %v1024_v39 }
  0x26   :  { %v128_v7 = vmul.f32 %v113_v25, %v1065_v0  ;;  %v129_v8 = vmul.f32 %v113_v25, %v1067_v1  ;;  %1882 = vst [vmem:[#allocation14_spill] sm:$0xff] %v1081_v10  ;;  %v1083_v11 = vld [vmem:[#allocation2 + $0x68] sm:$0xff]  ;;  %v1089_v13 = vld [vmem:[#allocation2 + $0x80] sm:$0xff]  ;;  %v1091_v14 = vld [vmem:[#allocation2 + $0x98] sm:$0xff]  ;;  %v169_v17 = vmul.f32 %v1008_v26, %v1081_v10 }
  0x27   :  { %1883 = vst [vmem:[#allocation15_spill] sm:$0xff] %v1083_v11  ;;  %1884 = vst [vmem:[#allocation16_spill] sm:$0xff] %v1089_v13  ;;  %v1093_v15 = vld [vmem:[#allocation2 + $0xb0] sm:$0xff]  ;;  %v170_v18 = vmul.f32 %v1008_v26, %v1083_v11  ;;  %v1105_v22 = vld [vmem:[#allocation2 + $0x128] sm:$0xff]  ;;  %v171_v23 = vmul.f32 %v1008_v26, %v1089_v13  ;;  %v172_v24 = vmul.f32 %v1008_v26, %v1091_v14 }
  0x28   :  { %1885 = vst [vmem:[#allocation17_spill] sm:$0xff] %v1091_v14  ;;  %1886 = vst [vmem:[#allocation18_spill] sm:$0xff] %v1093_v15  ;;  %v1103_v21 = vld [vmem:[#allocation2 + $0x110] sm:$0xff]  ;;  %v173_v25 = vmul.f32 %v1008_v26, %v1093_v15  ;;  %v1117_v29 = vld [vmem:[#allocation2 + $0x140] sm:$0xff]  ;;  %v176_v45 = vmul.f32 %v1008_v26, %v1105_v22 }
  0x29   :  { %1887 = vst [vmem:[#allocation19_spill] sm:$0xff] %v1103_v21  ;;  %1888 = vst [vmem:[#allocation20_spill] sm:$0xff] %v1105_v22  ;;  %v1119_v30 = vld [vmem:[#allocation2 + $0x158] sm:$0xff]  ;;  %v1121_v35 = vld [vmem:[#allocation2 + $0x170] sm:$0xff]  ;;  %v175_v40 = vmul.f32 %v1008_v26, %v1103_v21  ;;  %v177_v42 = vmul.f32 %v1008_v26, %v1117_v29  ;;  %v185_v22 = vadd.f32 %v169_v17, %v117_v47 }
  0x2a   :  { %1889 = vst [vmem:[#allocation21_spill] sm:$0xff] %v1117_v29  ;;  %1890 = vst [vmem:[#allocation22_spill] sm:$0xff] %v1119_v30  ;;  %v1132_v48 = vld [vmem:[#allocation2 + $0x188] sm:$0xff]  ;;  %v1134_v41 = vld [vmem:[#allocation2 + $0x1a0] sm:$0xff]  ;;  %v178_v20 = vmul.f32 %v1008_v26, %v1119_v30  ;;  %v179_v37 = vmul.f32 %v1008_v26, %v1121_v35  ;;  %v186_v21 = vadd.f32 %v170_v18, %v118_v51 }
  0x2b   :  { %1891 = vst [vmem:[#allocation23_spill] sm:$0xff] %v1121_v35  ;;  %1893 = vst [vmem:[#allocation25_spill] sm:$0xff] %v1132_v48  ;;  %v198_v36 = vld [vmem:[#allocation2 + $0x9] sm:$0xff]  ;;  %v180_v33 = vmul.f32 %v1008_v26, %v1132_v48  ;;  %v181_v43 = vmul.f32 %v1008_v26, %v1134_v41  ;;  %v1146_v15 = vld [vmem:[#allocation2 + $0x21] sm:$0xff]  ;;  %v187_v30 = vadd.f32 %v171_v23, %v119_v52 }
  0x2c   :  { %1894 = vst [vmem:[#allocation26_spill] sm:$0xff] %v1134_v41  ;;  %1895 = vst [vmem:[#allocation27_spill] sm:$0xff] %v1146_v15  ;;  %v1148_v14 = vld [vmem:[#allocation2 + $0x39] sm:$0xff]  ;;  %v1150_v29 = vld [vmem:[#allocation2 + $0x51] sm:$0xff]  ;;  %v188_v13 = vadd.f32 %v172_v24, %v120_v53  ;;  %v189_v11 = vadd.f32 %v173_v25, %v121_v59  ;;  %v191_v26 = vadd.f32 %v175_v40, %v123_v60 }
  0x2d   :  { %1896 = vst [vmem:[#allocation28_spill] sm:$0xff] %v1148_v14  ;;  %1897 = vst [vmem:[#allocation29_spill] sm:$0xff] %v1150_v29  ;;  %v1153_v16 = vld [vmem:[#allocation2 + $0x69] sm:$0xff]  ;;  %v1155_v35 = vld [vmem:[#allocation2 + $0x81] sm:$0xff]  ;;  %v192_v47 = vadd.f32 %v176_v45, %v124_v2  ;;  %v193_v51 = vadd.f32 %v177_v42, %v125_v3  ;;  %v194_v17 = vadd.f32 %v178_v20, %v126_v4 }
  0x2e   :  { %1898 = vst [vmem:[#allocation30_spill] sm:$0xff] %v1153_v16  ;;  %1899 = vst [vmem:[#allocation31_spill] sm:$0xff] %v1155_v35  ;;  %v1157_v48 = vld [vmem:[#allocation2 + $0x99] sm:$0xff]  ;;  %v1159_v18 = vld [vmem:[#allocation2 + $0xb1] sm:$0xff]  ;;  %v195_v52 = vadd.f32 %v179_v37, %v127_v6  ;;  %v196_v53 = vadd.f32 %v180_v33, %v128_v7  ;;  %v197_v59 = vadd.f32 %v181_v43, %v129_v8 }
  0x2f   :  { %1900 = vst [vmem:[#allocation32_spill] sm:$0xff] %v1157_v48  ;;  %1901 = vst [vmem:[#allocation33_spill] sm:$0xff] %v1159_v18  ;;  %v206_v41 = vld [vmem:[#allocation2 + $0xf9] sm:$0xff]  ;;  %v1161_v10 = vld [vmem:[#allocation2 + $0x111] sm:$0xff]  ;;  %v218_v25 = vmul.f32 %v1012_v31, %v198_v36  ;;  %v219_v3 = vmul.f32 %v1012_v31, %v1146_v15  ;;  %v220_v33 = vmul.f32 %v1012_v31, %v1148_v14 }
  0x30   :  { %1902 = vst [vmem:[#allocation34_spill] sm:$0xff] %v1161_v10  ;;  %v1163_v23 = vld [vmem:[#allocation2 + $0x129] sm:$0xff]  ;;  %v1165_v39 = vld [vmem:[#allocation2 + $0x141] sm:$0xff]  ;;  %v1167_v24 = vld [vmem:[#allocation2 + $0x159] sm:$0xff]  ;;  %v221_v37 = vmul.f32 %v1012_v31, %v1150_v29  ;;  %v222_v43 = vmul.f32 %v1012_v31, %v1153_v16  ;;  %v223_v36 = vmul.f32 %v1012_v31, %v1155_v35  ;;  %v224_v4 = vmul.f32 %v1012_v31, %v1157_v48 }
  0x31   :  { %1903 = vst [vmem:[#allocation35_spill] sm:$0xff] %v1163_v23  ;;  %1904 = vst [vmem:[#allocation36_spill] sm:$0xff] %v1165_v39  ;;  %v1170_v60 = vld [vmem:[#allocation2 + $0x171] sm:$0xff]  ;;  %v1172_v42 = vld [vmem:[#allocation2 + $0x189] sm:$0xff]  ;;  %v225_v6 = vmul.f32 %v1012_v31, %v1159_v18  ;;  %v226_v7 = vmul.f32 %v1012_v31, %v206_v41  ;;  %v227_v8 = vmul.f32 %v1012_v31, %v1161_v10 }
  0x32   :  { %1905 = vst [vmem:[#allocation37_spill] sm:$0xff] %v1167_v24  ;;  %1906 = vst [vmem:[#allocation38_spill] sm:$0xff] %v1170_v60  ;;  %v1174_v2 = vld [vmem:[#allocation2 + $0x1a1] sm:$0xff]  ;;  %v228_v38 = vmul.f32 %v1012_v31, %v1163_v23  ;;  %v229_v40 = vmul.f32 %v1012_v31, %v1165_v39  ;;  %v230_v45 = vmul.f32 %v1012_v31, %v1167_v24 }
  0x33   :  { %1907 = vst [vmem:[#allocation39_spill] sm:$0xff] %v1172_v42  ;;  %1908 = vst [vmem:[#allocation40_spill] sm:$0xff] %v1174_v2  ;;  %v231_v20 = vmul.f32 %v1012_v31, %v1170_v60  ;;  %v232_v18 = vmul.f32 %v1012_v31, %v1172_v42  ;;  %v233_v41 = vmul.f32 %v1012_v31, %v1174_v2  ;;  %v1207_v15 = vld [vmem:[#allocation2 + $0xc7] sm:$0xff]  ;;  %v1209_v2 = vld [vmem:[#allocation2 + $0x1b7] sm:$0xff] }
  0x34   :  { %v234_v10 = vadd.f32 %v218_v25, %v1061_v62  ;;  %v235_v48 = vadd.f32 %v219_v3, %v1101_v19  ;;  %v236_v23 = vadd.f32 %v220_v33, %v184_v34  ;;  %v237_v35 = vadd.f32 %v221_v37, %v185_v22 }
  0x35   :  { %v238_v16 = vadd.f32 %v222_v43, %v186_v21  ;;  %v239_v39 = vadd.f32 %v223_v36, %v187_v30  ;;  %v240_v29 = vadd.f32 %v224_v4, %v188_v13  ;;  %v241_v14 = vadd.f32 %v225_v6, %v189_v11 }
  0x36   :  { %v242_v24 = vadd.f32 %v226_v7, %v190_v46  ;;  %v243_v60 = vadd.f32 %v227_v8, %v191_v26  ;;  %v244_v9 = vadd.f32 %v228_v38, %v192_v47  ;;  %v245_v32 = vadd.f32 %v229_v40, %v193_v51  ;;  %v1920_v7 = vld [vmem:[#allocation19_spill] sm:$0xff]  ;;  %v1921_v38 = vld [vmem:[#allocation20_spill] sm:$0xff] }
  0x37   :  { %v246_v42 = vadd.f32 %v230_v45, %v194_v17  ;;  %v247_v54 = vadd.f32 %v231_v20, %v195_v52  ;;  %v248_v61 = vadd.f32 %v232_v18, %v196_v53  ;;  %v249_v31 = vadd.f32 %v233_v41, %v197_v59  ;;  %v1909_v52 = vld [vmem:[#allocation24_spill] sm:$0xff]  ;;  %v1922_v45 = vld [vmem:[#allocation21_spill] sm:$0xff]  ;;  %v1923_v41 = vld [vmem:[#allocation22_spill] sm:$0xff] }
  0x38   :  { %v275_v34 = vmul.f32 %v1010_v27, %v1033_v44  ;;  %v276_v62 = vmul.f32 %v1010_v27, %v1039_v49  ;;  %v277_v11 = vmul.f32 %v1010_v27, %v1207_v15  ;;  %v278_v13 = vmul.f32 %v1010_v27, %v1041_v50 }
  0x39   :  { %v279_v19 = vmul.f32 %v1010_v27, %v1051_v56  ;;  %v280_v21 = vmul.f32 %v1010_v27, %v1053_v57  ;;  %v281_v22 = vmul.f32 %v1010_v27, %v1055_v58  ;;  %v282_v30 = vmul.f32 %v1010_v27, %v1063_v63 }
  0x3a   :  { %v283_v46 = vmul.f32 %v1010_v27, %v1065_v0  ;;  %v284_v26 = vmul.f32 %v1010_v27, %v1067_v1  ;;  %v285_v50 = vmul.f32 %v1010_v27, %v1209_v2  ;;  %v286_v47 = vadd.f32 %v1049_v55, %v234_v10  ;;  %v1238_v27 = vld [vmem:[#allocation2 + $0xc8] sm:$0xff] }
  0x3b   :  { %v287_v51 = vadd.f32 %v1074_v5, %v235_v48  ;;  %v288_v17 = vadd.f32 %v1087_v12, %v236_v23  ;;  %v289_v18 = vadd.f32 %v1115_v28, %v237_v35  ;;  %v290_v53 = vadd.f32 %v1909_v52, %v238_v16  ;;  %1910 = vst [vmem:[#allocation24_spill] sm:$0xff] %v1238_v27  ;;  %v1911_v48 = vld [vmem:[#allocation12_spill] sm:$0xff]  ;;  %v1912_v5 = vld [vmem:[#allocation3_spill] sm:$0xff]  ;;  %v1913_v23 = vld [vmem:[#allocation13_spill] sm:$0xff] }
  0x3c   :  { %v291_v59 = vadd.f32 %v275_v34, %v239_v39  ;;  %v292_v25 = vadd.f32 %v276_v62, %v240_v29  ;;  %v293_v3 = vadd.f32 %v277_v11, %v241_v14  ;;  %v294_v33 = vadd.f32 %v278_v13, %v242_v24  ;;  %v1244_v35 = vld [vmem:[#allocation2 + $0x1b8] sm:$0xff]  ;;  %v1916_v16 = vld [vmem:[#allocation15_spill] sm:$0xff]  ;;  %v1918_v39 = vld [vmem:[#allocation17_spill] sm:$0xff] }
  0x3d   :  { %v295_v37 = vadd.f32 %v279_v19, %v243_v60  ;;  %v296_v43 = vadd.f32 %v280_v21, %v244_v9  ;;  %v297_v36 = vadd.f32 %v281_v22, %v245_v32  ;;  %v298_v4 = vadd.f32 %v282_v30, %v246_v42  ;;  %1914 = vst [vmem:[#allocation12_spill] sm:$0xff] %v1244_v35  ;;  %v1915_v29 = vld [vmem:[#allocation14_spill] sm:$0xff]  ;;  %v1917_v9 = vld [vmem:[#allocation16_spill] sm:$0xff]  ;;  %v1924_v34 = vld [vmem:[#allocation23_spill] sm:$0xff] }
  0x3e   :  { %v299_v6 = vadd.f32 %v283_v46, %v247_v54  ;;  %v300_v55 = vadd.f32 %v284_v26, %v248_v61  ;;  %v301_v10 = vadd.f32 %v285_v50, %v249_v31  ;;  %v322_v12 = vmul.f32 %v1912_v5, %v1911_v48  ;;  %v1919_v24 = vld [vmem:[#allocation18_spill] sm:$0xff]  ;;  %v1925_v11 = vld [vmem:[#allocation25_spill] sm:$0xff] }
  0x3f   :  { %v323_v28 = vmul.f32 %v1912_v5, %v1913_v23  ;;  %v324_v14 = vmul.f32 %v1912_v5, %v1915_v29  ;;  %v325_v32 = vmul.f32 %v1912_v5, %v1916_v16  ;;  %v326_v54 = vmul.f32 %v1912_v5, %v1917_v9  ;;  %v1926_v19 = vld [vmem:[#allocation26_spill] sm:$0xff]  ;;  %v1928_v16 = vld [vmem:[#allocation27_spill] sm:$0xff]  ;;  %v1944_v29 = vld [vmem:[#allocation5_spill] sm:$0xff] }
  0x40   :  { %v327_v61 = vmul.f32 %v1912_v5, %v1918_v39  ;;  %v328_v60 = vmul.f32 %v1912_v5, %v1919_v24  ;;  %v329_v42 = vmul.f32 %v1912_v5, %v1238_v27  ;;  %v330_v8 = vmul.f32 %v1912_v5, %v1920_v7  ;;  %v1274_v39 = vld [vmem:[#allocation2 + $0xc9] sm:$0xff] }
  0x41   :  { %v331_v40 = vmul.f32 %v1912_v5, %v1921_v38  ;;  %v332_v20 = vmul.f32 %v1912_v5, %v1922_v45  ;;  %v333_v31 = vmul.f32 %v1912_v5, %v1923_v41  ;;  %v334_v62 = vmul.f32 %v1912_v5, %v1924_v34  ;;  %1927 = vst [vmem:[#allocation3_spill] sm:$0xff] %v1274_v39 }
  0x42   :  { %v335_v13 = vmul.f32 %v1912_v5, %v1925_v11  ;;  %v336_v21 = vmul.f32 %v1912_v5, %v1926_v19  ;;  %v337_v22 = vmul.f32 %v1912_v5, %v1244_v35  ;;  %v338_v30 = vadd.f32 %v322_v12, %v286_v47  ;;  %v1929_v5 = vld [vmem:[#allocation4_spill] sm:$0xff]  ;;  %v1943_v35 = vld [vmem:[#allocation6_spill] sm:$0xff] }
  0x43   :  { %v339_v46 = vadd.f32 %v323_v28, %v287_v51  ;;  %v340_v26 = vadd.f32 %v324_v14, %v288_v17  ;;  %v341_v50 = vadd.f32 %v325_v32, %v289_v18  ;;  %v342_v52 = vadd.f32 %v326_v54, %v290_v53  ;;  %v1930_v51 = vld [vmem:[#allocation28_spill] sm:$0xff]  ;;  %v1280_v18 = vld [vmem:[#allocation2 + $0x1b9] sm:$0xff]  ;;  %v1931_v53 = vld [vmem:[#allocation29_spill] sm:$0xff] }
  0x44   :  { %v343_v48 = vadd.f32 %v327_v61, %v291_v59  ;;  %v344_v7 = vadd.f32 %v328_v60, %v292_v25  ;;  %v345_v41 = vadd.f32 %v329_v42, %v293_v3  ;;  %v346_v45 = vadd.f32 %v330_v8, %v294_v33  ;;  %v1932_v25 = vld [vmem:[#allocation30_spill] sm:$0xff]  ;;  %v1933_v33 = vld [vmem:[#allocation31_spill] sm:$0xff]  ;;  %v1939_v54 = vld [vmem:[#allocation37_spill] sm:$0xff] }
  0x45   :  { %v347_v38 = vadd.f32 %v331_v40, %v295_v37  ;;  %v348_v34 = vadd.f32 %v332_v20, %v296_v43  ;;  %v349_v27 = vadd.f32 %v333_v31, %v297_v36  ;;  %v350_v24 = vadd.f32 %v334_v62, %v298_v4  ;;  %v1934_v43 = vld [vmem:[#allocation32_spill] sm:$0xff]  ;;  %v1935_v4 = vld [vmem:[#allocation33_spill] sm:$0xff]  ;;  %v1937_v28 = vld [vmem:[#allocation35_spill] sm:$0xff] }
  0x46   :  { %v351_v11 = vadd.f32 %v335_v13, %v299_v6  ;;  %v352_v19 = vadd.f32 %v336_v21, %v300_v55  ;;  %v353_v9 = vadd.f32 %v337_v22, %v301_v10  ;;  %v374_v47 = vmul.f32 %v1929_v5, %v1928_v16  ;;  %v1936_v10 = vld [vmem:[#allocation34_spill] sm:$0xff]  ;;  %v1938_v16 = vld [vmem:[#allocation36_spill] sm:$0xff]  ;;  %v1941_v8 = vld [vmem:[#allocation39_spill] sm:$0xff] }
  0x47   :  { %v375_v17 = vmul.f32 %v1929_v5, %v1930_v51  ;;  %v376_v59 = vmul.f32 %v1929_v5, %v1931_v53  ;;  %v377_v3 = vmul.f32 %v1929_v5, %v1932_v25  ;;  %v378_v37 = vmul.f32 %v1929_v5, %v1933_v33  ;;  %v1940_v60 = vld [vmem:[#allocation38_spill] sm:$0xff]  ;;  %v1942_v20 = vld [vmem:[#allocation40_spill] sm:$0xff] }
  0x48   :  { %v379_v36 = vmul.f32 %v1929_v5, %v1934_v43  ;;  %v380_v6 = vmul.f32 %v1929_v5, %v1935_v4  ;;  %v381_v55 = vmul.f32 %v1929_v5, %v1274_v39  ;;  %v382_v12 = vmul.f32 %v1929_v5, %v1936_v10  ;;  %v414_v53 = vld [vmem:[#allocation2 + $0xdf] sm:$0xff] }
  0x49   :  { %v383_v14 = vmul.f32 %v1929_v5, %v1937_v28  ;;  %v384_v32 = vmul.f32 %v1929_v5, %v1938_v16  ;;  %v385_v61 = vmul.f32 %v1929_v5, %v1939_v54  ;;  %v386_v42 = vmul.f32 %v1929_v5, %v1940_v60 }
  0x4a   :  { %v387_v40 = vmul.f32 %v1929_v5, %v1941_v8  ;;  %v388_v31 = vmul.f32 %v1929_v5, %v1942_v20  ;;  %v389_v62 = vmul.f32 %v1929_v5, %v1280_v18  ;;  %v390_v13 = vadd.f32 %v374_v47, %v338_v30  ;;  %v1945_v30 = vld [vmem:[#allocation7_spill] sm:$0xff] }
  0x4b   :  { %v391_v21 = vadd.f32 %v375_v17, %v339_v46  ;;  %v392_v22 = vadd.f32 %v376_v59, %v340_v26  ;;  %v393_v10 = vadd.f32 %v377_v3, %v341_v50  ;;  %v394_v16 = vadd.f32 %v378_v37, %v342_v52  ;;  %v422_v26 = vld [vmem:[#allocation2 + $0x1cf] sm:$0xff] }
  0x4c   :  { %v395_v28 = vadd.f32 %v379_v36, %v343_v48  ;;  %v396_v39 = vadd.f32 %v380_v6, %v344_v7  ;;  %v397_v54 = vadd.f32 %v381_v55, %v345_v41  ;;  %v398_v4 = vadd.f32 %v382_v12, %v346_v45  ;;  %v1946_v50 = vld [vmem:[#allocation9_spill] sm:$0xff]  ;;  %v1947_v41 = vld [vmem:[#allocation10_spill] sm:$0xff] }
  0x4d   :  { %v399_v43 = vadd.f32 %v383_v14, %v347_v38  ;;  %v400_v60 = vadd.f32 %v384_v32, %v348_v34  ;;  %v401_v33 = vadd.f32 %v385_v61, %v349_v27  ;;  %v402_v25 = vadd.f32 %v386_v42, %v350_v24  ;;  %v1949_v14 = vld [vmem:[#allocation14_spill] sm:$0xff]  ;;  %v474_v61 = vld [vmem:[#allocation2 + $0x1d0] sm:$0xff]  ;;  %v1955_v42 = vld [vmem:[#allocation20_spill] sm:$0xff] }
  0x4e   :  { %v403_v8 = vadd.f32 %v387_v40, %v351_v11  ;;  %v404_v51 = vadd.f32 %v388_v31, %v352_v19  ;;  %v405_v20 = vadd.f32 %v389_v62, %v353_v9  ;;  %v427_v5 = vmul.f32 %v1944_v29, %v1943_v35  ;;  %v1956_v40 = vld [vmem:[#allocation21_spill] sm:$0xff]  ;;  %v1957_v31 = vld [vmem:[#allocation22_spill] sm:$0xff] }
  0x4f   :  { %v428_v46 = vmul.f32 %v1944_v29, %v1945_v30  ;;  %v429_v52 = vmul.f32 %v1944_v29, %v1946_v50  ;;  %v430_v38 = vmul.f32 %v1944_v29, %v1947_v41  ;;  %v431_v27 = vmul.f32 %v1944_v29, %v1033_v44 }
  0x50   :  { %v432_v24 = vmul.f32 %v1944_v29, %v1039_v49  ;;  %v433_v9 = vmul.f32 %v1944_v29, %v1207_v15  ;;  %v434_v35 = vmul.f32 %v1944_v29, %v414_v53  ;;  %v435_v45 = vmul.f32 %v1944_v29, %v1051_v56 }
  0x51   :  { %v436_v34 = vmul.f32 %v1944_v29, %v1053_v57  ;;  %v437_v11 = vmul.f32 %v1944_v29, %v1055_v58  ;;  %v438_v44 = vmul.f32 %v1944_v29, %v1063_v63  ;;  %v439_v49 = vmul.f32 %v1944_v29, %v1065_v0 }
  0x52   :  { %v440_v15 = vmul.f32 %v1944_v29, %v1067_v1  ;;  %v441_v19 = vmul.f32 %v1944_v29, %v1209_v2  ;;  %v442_v56 = vmul.f32 %v1944_v29, %v422_v26  ;;  %v443_v48 = vadd.f32 %v427_v5, %v390_v13  ;;  %v466_v1 = vld [vmem:[#allocation2 + $0xe0] sm:$0xff]  ;;  %v1948_v2 = vld [vmem:[#allocation8_spill] sm:$0xff]  ;;  %v1960_v5 = vld [vmem:[#allocation26_spill] sm:$0xff] }
  0x53   :  { %v444_v7 = vadd.f32 %v428_v46, %v391_v21  ;;  %v445_v57 = vadd.f32 %v429_v52, %v392_v22  ;;  %v446_v47 = vadd.f32 %v430_v38, %v393_v10  ;;  %v447_v17 = vadd.f32 %v431_v27, %v394_v16  ;;  %v1950_v16 = vld [vmem:[#allocation15_spill] sm:$0xff]  ;;  %v1959_v22 = vld [vmem:[#allocation25_spill] sm:$0xff]  ;;  %v1961_v46 = vld [vmem:[#allocation12_spill] sm:$0xff] }
  0x54   :  { %v448_v58 = vadd.f32 %v432_v24, %v395_v28  ;;  %v449_v53 = vadd.f32 %v433_v9, %v396_v39  ;;  %v450_v59 = vadd.f32 %v434_v35, %v397_v54  ;;  %v451_v63 = vadd.f32 %v435_v45, %v398_v4  ;;  %v1951_v28 = vld [vmem:[#allocation16_spill] sm:$0xff]  ;;  %v1952_v4 = vld [vmem:[#allocation17_spill] sm:$0xff]  ;;  %v1958_v13 = vld [vmem:[#allocation23_spill] sm:$0xff] }
  0x55   :  { %v452_v3 = vadd.f32 %v436_v34, %v399_v43  ;;  %v453_v37 = vadd.f32 %v437_v11, %v400_v60  ;;  %v454_v0 = vadd.f32 %v438_v44, %v401_v33  ;;  %v455_v36 = vadd.f32 %v439_v49, %v402_v25  ;;  %v1953_v33 = vld [vmem:[#allocation18_spill] sm:$0xff]  ;;  %v1954_v54 = vld [vmem:[#allocation24_spill] sm:$0xff] }
  0x56   :  { %v456_v6 = vadd.f32 %v440_v15, %v403_v8  ;;  %v457_v55 = vadd.f32 %v441_v19, %v404_v51  ;;  %v458_v12 = vadd.f32 %v442_v56, %v405_v20  ;;  %v479_v29 = vmul.f32 %v1948_v2, %v1913_v23  ;;  %v518_v56 = vld [vmem:[#allocation2 + $0xe1] sm:$0xff] }
  0x57   :  { %v480_v32 = vmul.f32 %v1948_v2, %v1949_v14  ;;  %v481_v39 = vmul.f32 %v1948_v2, %v1950_v16  ;;  %v482_v43 = vmul.f32 %v1948_v2, %v1951_v28  ;;  %v483_v25 = vmul.f32 %v1948_v2, %v1952_v4  ;;  %v1962_v14 = vld [vmem:[#allocation28_spill] sm:$0xff]  ;;  %v1963_v16 = vld [vmem:[#allocation11_spill] sm:$0xff] }
  0x58   :  { %v484_v51 = vmul.f32 %v1948_v2, %v1953_v33  ;;  %v485_v60 = vmul.f32 %v1948_v2, %v1954_v54  ;;  %v486_v23 = vmul.f32 %v1948_v2, %v466_v1  ;;  %v487_v8 = vmul.f32 %v1948_v2, %v1955_v42 }
  0x59   :  { %v488_v20 = vmul.f32 %v1948_v2, %v1956_v40  ;;  %v489_v62 = vmul.f32 %v1948_v2, %v1957_v31  ;;  %v490_v21 = vmul.f32 %v1948_v2, %v1958_v13  ;;  %v491_v10 = vmul.f32 %v1948_v2, %v1959_v22 }
  0x5a   :  { %v492_v30 = vmul.f32 %v1948_v2, %v1960_v5  ;;  %v493_v26 = vmul.f32 %v1948_v2, %v1961_v46  ;;  %v494_v50 = vmul.f32 %v1948_v2, %v474_v61  ;;  %v495_v52 = vadd.f32 %v479_v29, %v443_v48  ;;  %v1964_v2 = vld [vmem:[#allocation29_spill] sm:$0xff] }
  0x5b   :  { %v496_v41 = vadd.f32 %v480_v32, %v444_v7  ;;  %v497_v38 = vadd.f32 %v481_v39, %v445_v57  ;;  %v498_v27 = vadd.f32 %v482_v43, %v446_v47  ;;  %v499_v24 = vadd.f32 %v483_v25, %v447_v17  ;;  %v1965_v7 = vld [vmem:[#allocation30_spill] sm:$0xff]  ;;  %v1966_v17 = vld [vmem:[#allocation31_spill] sm:$0xff]  ;;  %v1971_v32 = vld [vmem:[#allocation36_spill] sm:$0xff] }
  0x5c   :  { %v500_v9 = vadd.f32 %v484_v51, %v448_v58  ;;  %v501_v35 = vadd.f32 %v485_v60, %v449_v53  ;;  %v502_v45 = vadd.f32 %v486_v23, %v450_v59  ;;  %v503_v34 = vadd.f32 %v487_v8, %v451_v63  ;;  %v1967_v53 = vld [vmem:[#allocation32_spill] sm:$0xff]  ;;  %v1968_v63 = vld [vmem:[#allocation33_spill] sm:$0xff]  ;;  %v1973_v43 = vld [vmem:[#allocation38_spill] sm:$0xff] }
  0x5d   :  { %v504_v11 = vadd.f32 %v488_v20, %v452_v3  ;;  %v505_v44 = vadd.f32 %v489_v62, %v453_v37  ;;  %v506_v49 = vadd.f32 %v490_v21, %v454_v0  ;;  %v507_v15 = vadd.f32 %v491_v10, %v455_v36  ;;  %v526_v37 = vld [vmem:[#allocation2 + $0x1d1] sm:$0xff]  ;;  %v1969_v0 = vld [vmem:[#allocation3_spill] sm:$0xff]  ;;  %v1975_v51 = vld [vmem:[#allocation40_spill] sm:$0xff] }
  0x5e   :  { %v508_v19 = vadd.f32 %v492_v30, %v456_v6  ;;  %v509_v1 = vadd.f32 %v493_v26, %v457_v55  ;;  %v531_v28 = vmul.f32 %v1963_v16, %v1962_v14  ;;  %v532_v48 = vmul.f32 %v1963_v16, %v1964_v2  ;;  %v1970_v55 = vld [vmem:[#allocation35_spill] sm:$0xff]  ;;  %v1972_v61 = vld [vmem:[#allocation37_spill] sm:$0xff] }
  0x5f   :  { %v533_v57 = vmul.f32 %v1963_v16, %v1965_v7  ;;  %v510_v47 = vadd.f32 %v494_v50, %v458_v12  ;;  %v534_v58 = vmul.f32 %v1963_v16, %v1966_v17  ;;  %v535_v59 = vmul.f32 %v1963_v16, %v1967_v53  ;;  %v1974_v25 = vld [vmem:[#allocation39_spill] sm:$0xff] }
  0x60   :  { %v536_v3 = vmul.f32 %v1963_v16, %v1968_v63  ;;  %v537_v36 = vmul.f32 %v1963_v16, %v1969_v0  ;;  %v538_v6 = vmul.f32 %v1963_v16, %v518_v56  ;;  %v539_v29 = vmul.f32 %v1963_v16, %v1970_v55 }
  0x61   :  { %v540_v12 = vmul.f32 %v1963_v16, %v1971_v32  ;;  %v541_v39 = vmul.f32 %v1963_v16, %v1972_v61  ;;  %v542_v4 = vmul.f32 %v1963_v16, %v1973_v43  ;;  %v543_v33 = vmul.f32 %v1963_v16, %v1974_v25 }
  0x62   :  { %v544_v54 = vmul.f32 %v1963_v16, %v1975_v51  ;;  %v545_v60 = vmul.f32 %v1963_v16, %v1280_v18  ;;  %v1399_v23 = vadd.f32 %v531_v28, %v495_v52  ;;  %v1401_v42 = vadd.f32 %v532_v48, %v496_v41 }
  0x63   :  { %v1403_v8 = vadd.f32 %v533_v57, %v497_v38  ;;  %v546_v40 = vmul.f32 %v1963_v16, %v526_v37  ;;  %v1406_v20 = vadd.f32 %v534_v58, %v498_v27  ;;  %v1408_v31 = vadd.f32 %v535_v59, %v499_v24 }
  0x64   :  { %v1410_v62 = vadd.f32 %v536_v3, %v500_v9  ;;  %v1412_v13 = vadd.f32 %v537_v36, %v501_v35  ;;  %v1414_v21 = vadd.f32 %v538_v6, %v502_v45  ;;  %v1416_v22 = vadd.f32 %v539_v29, %v503_v34 }
  0x65   :  { %v1418_v18 = vadd.f32 %v540_v12, %v504_v11  ;;  %v1420_v10 = vadd.f32 %v541_v39, %v505_v44  ;;  %v1422_v5 = vadd.f32 %v542_v4, %v506_v49  ;;  %v1424_v30 = vadd.f32 %v543_v33, %v507_v15 }
  0x66   :  { %v1426_v46 = vadd.f32 %v544_v54, %v508_v19  ;;  %v1428_v26 = vadd.f32 %v545_v60, %v509_v1  ;;  %v563_v50 = vand.u32 2147483647, %v1399_v23  ;;  %v564_v52 = vand.u32 2147483647, %v1401_v42 }
  0x67   :  { %v565_v41 = vand.u32 2147483647, %v1403_v8  ;;  %v1433_v38 = vadd.f32 %v546_v40, %v510_v47  ;;  %v566_v27 = vand.u32 2147483647, %v1406_v20  ;;  %v567_v24 = vand.u32 2147483647, %v1408_v31 }
  0x68   :  { %v568_v9 = vand.u32 2147483647, %v1410_v62  ;;  %v569_v35 = vand.u32 2147483647, %v1412_v13  ;;  %v570_v45 = vand.u32 2147483647, %v1414_v21 }
  0x69   :  { %v571_v34 = vand.u32 2147483647, %v1416_v22  ;;  %v572_v11 = vand.u32 2147483647, %v1418_v18  ;;  %v573_v44 = vand.u32 2147483647, %v1420_v10 }
  0x6a   :  { %v574_v49 = vand.u32 2147483647, %v1422_v5  ;;  %v575_v15 = vand.u32 2147483647, %v1424_v30  ;;  %v576_v19 = vand.u32 2147483647, %v1426_v46 }
  0x6b   :  { %v577_v56 = vand.u32 2147483647, %v1428_v26  ;;  %v578_v1 = vand.u32 2147483647, %v1433_v38  ;;  %v579_v14 = vsel %vm27_vm0, %v563_v50, -inf  ;;  %v580_v16 = vsel %vm27_vm0, %v564_v52, -inf }
  0x6c   :  { %v581_v28 = vsel %vm27_vm0, %v565_v41, -inf  ;;  %v582_v2 = vsel %vm27_vm0, %v566_v27, -inf  ;;  %v583_v48 = vsel %vm27_vm0, %v567_v24, -inf  ;;  %v585_v7 = vsel %vm27_vm0, %v568_v9, -inf }
  0x6d   :  { %v587_v57 = vsel %vm27_vm0, %v569_v35, -inf  ;;  %v584_v47 = vmax.f32 %v579_v14, %v583_v48  ;;  %v586_v17 = vmax.f32 %v580_v16, %v585_v7  ;;  %v589_v53 = vsel %vm27_vm0, %v570_v45, -inf }
  0x6e   :  { %v588_v58 = vmax.f32 %v581_v28, %v587_v57  ;;  %v590_v59 = vmax.f32 %v582_v2, %v589_v53  ;;  %v591_v63 = vsel %vm27_vm0, %v571_v34, -inf  ;;  %v593_v3 = vsel %vm27_vm0, %v572_v11, -inf }
  0x6f   :  { %v595_v37 = vsel %vm27_vm0, %v573_v44, -inf  ;;  %v592_v0 = vmax.f32 %v584_v47, %v591_v63  ;;  %v594_v36 = vmax.f32 %v586_v17, %v593_v3  ;;  %v597_v55 = vsel %vm27_vm0, %v574_v49, -inf }
  0x70   :  { %v596_v6 = vmax.f32 %v588_v58, %v595_v37  ;;  %v598_v29 = vmax.f32 %v590_v59, %v597_v55  ;;  %v599_v32 = vsel %vm27_vm0, %v575_v15, -inf  ;;  %v601_v12 = vsel %vm27_vm0, %v576_v19, -inf }
  0x71   :  { %v603_v61 = vsel %vm27_vm0, %v577_v56, -inf  ;;  %v600_v39 = vmax.f32 %v592_v0, %v599_v32  ;;  %v602_v43 = vmax.f32 %v594_v36, %v601_v12  ;;  %v605_v25 = vsel %vm27_vm0, %v578_v1, -inf }
  0x72   :  { %v604_v4 = vmax.f32 %v596_v6, %v603_v61  ;;  %v606_v33 = vmax.f32 %v598_v29, %v605_v25 }
  0x73   :  { %v607_v51 = vmax.f32 %v600_v39, %v602_v43 }
  0x74   :  { %v608_v54 = vmax.f32 %v604_v4, %v606_v33 }
  0x76   :  { %v609_v60 = vmax.f32 %v607_v51, %v608_v54 }
  0x78   :  { %610 = vmax.xlane.f32.xlu0 %v609_v60 }
 0x101   :  { %v611_v40 = vpop.xlane.xlu0 %610 }
 0x102   :  { %v612_v50 = vrot.slane %v611_v40, 4 }
 0x104   :  { %v613_v52 = vmax.f32 %v611_v40, %v612_v50 }
 0x106   :  { %v614_v41 = vrot.slane %v613_v52, 2 }
 0x108   :  { %v615_v27 = vmax.f32 %v613_v52, %v614_v41 }
 0x10a   :  { %v616_v24 = vrot.slane %v615_v27, 1 }
 0x10c   :  { %v617_v9 = vmax.f32 %v615_v27, %v616_v24 }
 0x10e   :  { %736 = vpush %v617_v9 }
 0x13f   :  { %s737_s0 = spop %736 }
 0x140   :  { %s619_s19 = smax.f32 %s875_s1, %s737_s0 }
 0x141   :  { %v620_v35 = vstv %s619_s19 }
 0x142   :  { %868 = vlog2.f32 %v620_v35 }
 0x14f   :  { %v869_v45 = vpop.eup %868 }
 0x150   :  { %v622_v34 = vmul.f32 0.6931472, %v869_v45 }
 0x152   :  { %v623_v11 = vmul.f32 1.442695, %v622_v34 }
 0x154   :  { %v624_v44 = vceil.f32 %v623_v11 }
 0x156   :  { %v735_v49 = vadd.f32 -7.0, %v624_v44  ;;  %v629_v56 = vsub.f32 7.0, %v624_v44 }
 0x158   :  { %v626_v15 = vmul.f32 0.6931472, %v735_v49  ;;  %v630_v1 = vmul.f32 0.6931472, %v629_v56 }
 0x15a   :  { %v627_v19 = vmul.f32 1.442695, %v626_v15  ;;  %v631_v14 = vmul.f32 1.442695, %v630_v1 }
 0x15c   :  { %870 = vpow2.f32 %v627_v19 }
 0x15d   :  { %872 = vpow2.f32 %v631_v14 }
 0x169   :  { %v1464_v16 = vpop.eup %870 }
 0x16a   :  { %v633_v28 = vmul.f32 -128.0, %v1464_v16  ;;  %v634_v2 = vmul.f32 127.0, %v1464_v16 }
 0x16c   :  { %v635_v48 = vmax.f32 %v633_v28, %v1399_v23  ;;  %v636_v7 = vmax.f32 %v633_v28, %v1401_v42  ;;  %v637_v57 = vmax.f32 %v633_v28, %v1403_v8  ;;  %v638_v47 = vmax.f32 %v633_v28, %v1406_v20 }
 0x16d   :  { %v639_v17 = vmax.f32 %v633_v28, %v1408_v31  ;;  %v640_v58 = vmax.f32 %v633_v28, %v1410_v62  ;;  %v641_v53 = vmax.f32 %v633_v28, %v1412_v13  ;;  %v642_v59 = vmax.f32 %v633_v28, %v1414_v21 }
 0x16e   :  { %v643_v63 = vmax.f32 %v633_v28, %v1416_v22  ;;  %v644_v3 = vmax.f32 %v633_v28, %v1418_v18  ;;  %v645_v23 = vmax.f32 %v633_v28, %v1420_v10  ;;  %v646_v42 = vmax.f32 %v633_v28, %v1422_v5  ;;  %v873_v5 = vpop.eup %872 }
 0x16f   :  { %v647_v8 = vmax.f32 %v633_v28, %v1424_v30  ;;  %v648_v20 = vmax.f32 %v633_v28, %v1426_v46  ;;  %v649_v31 = vmax.f32 %v633_v28, %v1428_v26  ;;  %v650_v62 = vmax.f32 %v633_v28, %v1433_v38 }
 0x170   :  { %v651_v37 = vmin.f32 %v634_v2, %v635_v48  ;;  %v652_v13 = vmin.f32 %v634_v2, %v636_v7  ;;  %v653_v0 = vmin.f32 %v634_v2, %v637_v57  ;;  %v654_v21 = vmin.f32 %v634_v2, %v638_v47 }
 0x171   :  { %v655_v36 = vmin.f32 %v634_v2, %v639_v17  ;;  %v656_v22 = vmin.f32 %v634_v2, %v640_v58  ;;  %v657_v6 = vmin.f32 %v634_v2, %v641_v53  ;;  %v658_v18 = vmin.f32 %v634_v2, %v642_v59 }
 0x172   :  { %v659_v55 = vmin.f32 %v634_v2, %v643_v63  ;;  %v660_v10 = vmin.f32 %v634_v2, %v644_v3  ;;  %v661_v29 = vmin.f32 %v634_v2, %v645_v23  ;;  %v662_v32 = vmin.f32 %v634_v2, %v646_v42 }
 0x173   :  { %v663_v30 = vmin.f32 %v634_v2, %v647_v8  ;;  %v664_v12 = vmin.f32 %v634_v2, %v648_v20  ;;  %v665_v46 = vmin.f32 %v634_v2, %v649_v31  ;;  %v666_v61 = vmin.f32 %v634_v2, %v650_v62 }
 0x174   :  { %v1484_v26 = vmul.f32 %v873_v5, %v651_v37  ;;  %v1486_v38 = vmul.f32 %v873_v5, %v652_v13  ;;  %v1488_v39 = vmul.f32 %v873_v5, %v653_v0  ;;  %v1490_v43 = vmul.f32 %v873_v5, %v654_v21 }
 0x175   :  { %v1492_v4 = vmul.f32 %v873_v5, %v655_v36  ;;  %v1494_v25 = vmul.f32 %v873_v5, %v656_v22  ;;  %v1496_v33 = vmul.f32 %v873_v5, %v657_v6  ;;  %v1498_v51 = vmul.f32 %v873_v5, %v658_v18 }
 0x176   :  { %v1500_v54 = vmul.f32 %v873_v5, %v659_v55  ;;  %v1502_v60 = vmul.f32 %v873_v5, %v660_v10  ;;  %v1504_v40 = vmul.f32 %v873_v5, %v661_v29  ;;  %v1506_v50 = vmul.f32 %v873_v5, %v662_v32 }
 0x177   :  { %v1508_v52 = vmul.f32 %v873_v5, %v663_v30  ;;  %v1510_v41 = vmul.f32 %v873_v5, %v664_v12  ;;  %v1512_v27 = vmul.f32 %v873_v5, %v665_v46  ;;  %v1514_v24 = vmul.f32 %v873_v5, %v666_v61 }
 0x178   :  { %v738_v9 = vand.u32 2147483647, %v1484_v26  ;;  %v740_v35 = vcvt.f32.s32 %v1484_v26  ;;  %v746_v45 = vand.u32 2147483647, %v1486_v38  ;;  %v743_v34 = vand.u32 2147483648, %v1484_v26 }
 0x179   :  { %v748_v11 = vcvt.f32.s32 %v1486_v38  ;;  %v754_v44 = vand.u32 2147483647, %v1488_v39  ;;  %v756_v49 = vcvt.f32.s32 %v1488_v39  ;;  %v751_v1 = vand.u32 2147483648, %v1486_v38 }
 0x17a   :  { %vm1523_vm2 = vcmp.lt.f32.partialorder %v738_v9, 8388608.0  ;;  %v741_v19 = vcvt.s32.f32 %v740_v35  ;;  %vm1527_vm3 = vcmp.lt.f32.partialorder %v746_v45, 8388608.0  ;;  %v759_v2 = vand.u32 2147483648, %v1488_v39 }
 0x17b   :  { %v749_v14 = vcvt.s32.f32 %v748_v11  ;;  %v757_v28 = vcvt.s32.f32 %v756_v49  ;;  %v762_v48 = vand.u32 2147483647, %v1490_v43  ;;  %vm1534_vm4 = vcmp.lt.f32.partialorder %v754_v44, 8388608.0 }
 0x17c   :  { %v742_v7 = vand.u32 2147483647, %v741_v19  ;;  %v764_v47 = vcvt.f32.s32 %v1490_v43  ;;  %v770_v17 = vand.u32 2147483647, %v1492_v4  ;;  %v767_v59 = vand.u32 2147483648, %v1490_v43 }
 0x17d   :  { %v750_v58 = vand.u32 2147483647, %v749_v14  ;;  %v758_v53 = vand.u32 2147483647, %v757_v28  ;;  %v772_v63 = vcvt.f32.s32 %v1492_v4  ;;  %vm1544_vm5 = vcmp.lt.f32.partialorder %v762_v48, 8388608.0 }
 0x17e   :  { %v1542_v3 = vor.u32 %v743_v34, %v742_v7  ;;  %v765_v42 = vcvt.s32.f32 %v764_v47  ;;  %vm1548_vm6 = vcmp.lt.f32.partialorder %v770_v17, 8388608.0  ;;  %v778_v37 = vand.u32 2147483647, %v1494_v25 }
 0x17f   :  { %v1552_v20 = vor.u32 %v751_v1, %v750_v58  ;;  %v1554_v31 = vor.u32 %v759_v2, %v758_v53  ;;  %v773_v62 = vcvt.s32.f32 %v772_v63  ;;  %v775_v21 = vand.u32 2147483648, %v1492_v4 }
 0x180   :  { %v745_v13 = vsel %vm1523_vm2, %v1542_v3, %v1484_v26  ;;  %v766_v0 = vand.u32 2147483647, %v765_v42  ;;  %v780_v36 = vcvt.f32.s32 %v1494_v25  ;;  %v783_v55 = vand.u32 2147483648, %v1494_v25 }
 0x181   :  { %v753_v22 = vsel %vm1527_vm3, %v1552_v20, %v1486_v38  ;;  %v761_v6 = vsel %vm1534_vm4, %v1554_v31, %v1488_v39  ;;  %v774_v18 = vand.u32 2147483647, %v773_v62  ;;  %v786_v5 = vand.u32 2147483647, %v1496_v33 }
 0x182   :  { %v1572_v10 = vor.u32 %v767_v59, %v766_v0  ;;  %v781_v29 = vcvt.s32.f32 %v780_v36  ;;  %v788_v32 = vcvt.f32.s32 %v1496_v33  ;;  %vm1578_vm7 = vcmp.lt.f32.partialorder %v778_v37, 8388608.0 }
 0x183   :  { %v1576_v30 = vor.u32 %v775_v21, %v774_v18  ;;  %v794_v46 = vand.u32 2147483647, %v1498_v51  ;;  %v796_v61 = vcvt.f32.s32 %v1498_v51  ;;  %v791_v34 = vand.u32 2147483648, %v1496_v33 }
 0x184   :  { %v769_v9 = vsel %vm1544_vm5, %v1572_v10, %v1490_v43  ;;  %v782_v35 = vand.u32 2147483647, %v781_v29  ;;  %v789_v45 = vcvt.s32.f32 %v788_v32  ;;  %vm1593_vm8 = vcmp.lt.f32.partialorder %v786_v5, 8388608.0 }
 0x185   :  { %v777_v11 = vsel %vm1548_vm6, %v1576_v30, %v1492_v4  ;;  %vm1597_vm9 = vcmp.lt.f32.partialorder %v794_v46, 8388608.0  ;;  %v797_v19 = vcvt.s32.f32 %v796_v61  ;;  %v802_v28 = vand.u32 2147483647, %v1500_v54 }
 0x186   :  { %v1601_v1 = vor.u32 %v783_v55, %v782_v35  ;;  %v790_v14 = vand.u32 2147483647, %v789_v45  ;;  %v804_v2 = vcvt.f32.s32 %v1500_v54  ;;  %v799_v7 = vand.u32 2147483648, %v1498_v51 }
 0x187   :  { %v798_v48 = vand.u32 2147483647, %v797_v19  ;;  %v810_v47 = vand.u32 2147483647, %v1502_v60  ;;  %v812_v17 = vcvt.f32.s32 %v1502_v60  ;;  %v807_v63 = vand.u32 2147483648, %v1500_v54 }
 0x188   :  { %v785_v58 = vsel %vm1578_vm7, %v1601_v1, %v1494_v25  ;;  %v1612_v53 = vor.u32 %v791_v34, %v790_v14  ;;  %v805_v59 = vcvt.s32.f32 %v804_v2  ;;  %vm1617_vm10 = vcmp.lt.f32.partialorder %v802_v28, 8388608.0 }
 0x189   :  { %v1615_v42 = vor.u32 %v799_v7, %v798_v48  ;;  %vm1621_vm11 = vcmp.lt.f32.partialorder %v810_v47, 8388608.0  ;;  %v813_v0 = vcvt.s32.f32 %v812_v17  ;;  %v815_v36 = vand.u32 2147483648, %v1502_v60 }
 0x18a   :  { %v806_v21 = vand.u32 2147483647, %v805_v59  ;;  %v818_v18 = vand.u32 2147483647, %v1504_v40  ;;  %v820_v55 = vcvt.f32.s32 %v1504_v40  ;;  %v793_v29 = vsel %vm1593_vm8, %v1612_v53, %v1496_v33 }
 0x18b   :  { %v801_v5 = vsel %vm1597_vm9, %v1615_v42, %v1498_v51  ;;  %v814_v32 = vand.u32 2147483647, %v813_v0  ;;  %v826_v46 = vand.u32 2147483647, %v1506_v50  ;;  %v823_v45 = vand.u32 2147483648, %v1504_v40 }
 0x18c   :  { %v808_v61 = vor.u32 %v807_v63, %v806_v21  ;;  %v821_v35 = vcvt.s32.f32 %v820_v55  ;;  %v828_v34 = vcvt.f32.s32 %v1506_v50  ;;  %vm1639_vm12 = vcmp.lt.f32.partialorder %v818_v18, 8388608.0 }
 0x18d   :  { %v816_v19 = vor.u32 %v815_v36, %v814_v32  ;;  %vm1643_vm13 = vcmp.lt.f32.partialorder %v826_v46, 8388608.0  ;;  %v834_v51 = vand.u32 2147483647, %v1508_v52  ;;  %v831_v28 = vand.u32 2147483648, %v1506_v50 }
 0x18e   :  { %v822_v44 = vand.u32 2147483647, %v821_v35  ;;  %v829_v49 = vcvt.s32.f32 %v828_v34  ;;  %v836_v2 = vcvt.f32.s32 %v1508_v52  ;;  %v809_v48 = vsel %vm1617_vm10, %v808_v61, %v1500_v54 }
 0x18f   :  { %v817_v7 = vsel %vm1621_vm11, %v816_v19, %v1502_v60  ;;  %vm1656_vm14 = vcmp.lt.f32.partialorder %v834_v51, 8388608.0  ;;  %v842_v17 = vand.u32 2147483647, %v1510_v41  ;;  %v844_v42 = vcvt.f32.s32 %v1510_v41 }
 0x190   :  { %v824_v53 = vor.u32 %v823_v45, %v822_v44  ;;  %v830_v59 = vand.u32 2147483647, %v829_v49  ;;  %v837_v63 = vcvt.s32.f32 %v836_v2  ;;  %v839_v0 = vand.u32 2147483648, %v1508_v52 }
 0x191   :  { %vm1663_vm15 = vcmp.lt.f32.partialorder %v842_v17, 8388608.0  ;;  %v850_v54 = vand.u32 2147483647, %v1512_v27  ;;  %v852_v60 = vcvt.f32.s32 %v1512_v27  ;;  %v845_v36 = vcvt.s32.f32 %v844_v42 }
 0x192   :  { %v832_v37 = vor.u32 %v831_v28, %v830_v59  ;;  %v838_v21 = vand.u32 2147483647, %v837_v63  ;;  %v847_v18 = vand.u32 2147483648, %v1510_v41  ;;  %v825_v55 = vsel %vm1639_vm12, %v824_v53, %v1504_v40 }
 0x193   :  { %vm1673_vm1 = vcmp.lt.f32.partialorder %v850_v54, 8388608.0  ;;  %v853_v46 = vcvt.s32.f32 %v852_v60  ;;  %v855_v61 = vand.u32 2147483648, %v1512_v27  ;;  %v846_v45 = vand.u32 2147483647, %v845_v36 }
 0x194   :  { %v840_v35 = vor.u32 %v839_v0, %v838_v21  ;;  %v858_v34 = vand.u32 2147483647, %v1514_v24  ;;  %v860_v19 = vcvt.f32.s32 %v1514_v24  ;;  %v833_v51 = vsel %vm1643_vm13, %v832_v37, %v1506_v50 }
 0x195   :  { %v854_v44 = vand.u32 2147483647, %v853_v46  ;;  %v863_v40 = vand.u32 2147483648, %v1514_v24  ;;  %v699_v14 = vmul.f32 %v1464_v16, %v745_v13  ;;  %v848_v28 = vor.u32 %v847_v18, %v846_v45 }
 0x196   :  { %v841_v49 = vsel %vm1656_vm14, %v840_v35, %v1508_v52  ;;  %v861_v2 = vcvt.s32.f32 %v860_v19  ;;  %v700_v50 = vmul.f32 %v1464_v16, %v753_v22  ;;  %v701_v26 = vmul.f32 %v1464_v16, %v761_v6 }
 0x197   :  { %v856_v33 = vor.u32 %v855_v61, %v854_v44  ;;  %v702_v52 = vmul.f32 %v1464_v16, %v769_v9  ;;  %v703_v38 = vmul.f32 %v1464_v16, %v777_v11  ;;  %715 = vst.msk [vmem:[%s1806_s2] sm:$0xff] %vm27_vm0, %v699_v14  ;;  %v849_v39 = vsel %vm1663_vm15, %v848_v28, %v1510_v41 }
 0x198   :  { %v862_v15 = vand.u32 2147483647, %v861_v2  ;;  %v704_v43 = vmul.f32 %v1464_v16, %v785_v58  ;;  %v705_v4 = vmul.f32 %v1464_v16, %v793_v29  ;;  %716 = vst.msk [vmem:[%s1806_s2 + $0x8] sm:$0xff] %vm27_vm0, %v700_v50  ;;  %v706_v41 = vmul.f32 %v1464_v16, %v801_v5  ;;  %717 = vst.msk [vmem:[%s1806_s2 + $0x10] sm:$0xff] %vm27_vm0, %v701_v26 }
 0x199   :  { %v857_v56 = vsel %vm1673_vm1, %v856_v33, %v1512_v27  ;;  %v707_v57 = vmul.f32 %v1464_v16, %v809_v48  ;;  %v708_v3 = vmul.f32 %v1464_v16, %v817_v7  ;;  %718 = vst.msk [vmem:[%s1806_s2 + $0x18] sm:$0xff] %vm27_vm0, %v702_v52  ;;  %719 = vst.msk [vmem:[%s1806_s2 + $0x20] sm:$0xff] %vm27_vm0, %v703_v38  ;;  %vm859_vm2 = vcmp.lt.f32.partialorder %v858_v34, 8388608.0 }
 0x19a   :  { %v864_v25 = vor.u32 %v863_v40, %v862_v15  ;;  %v709_v27 = vmul.f32 %v1464_v16, %v825_v55  ;;  %v710_v23 = vmul.f32 %v1464_v16, %v833_v51  ;;  %v711_v8 = vmul.f32 %v1464_v16, %v841_v49  ;;  %720 = vst.msk [vmem:[%s1806_s2 + $0x28] sm:$0xff] %vm27_vm0, %v704_v43 }
 0x19b   :  { %721 = vst.msk [vmem:[%s1806_s2 + $0x30] sm:$0xff] %vm27_vm0, %v705_v4  ;;  %v712_v20 = vmul.f32 %v1464_v16, %v849_v39  ;;  %v713_v31 = vmul.f32 %v1464_v16, %v857_v56  ;;  %722 = vst.msk [vmem:[%s1806_s2 + $0x38] sm:$0xff] %vm27_vm0, %v706_v41 }
 0x19c   :  { %723 = vst.msk [vmem:[%s1806_s2 + $0x40] sm:$0xff] %vm27_vm0, %v707_v57  ;;  %724 = vst.msk [vmem:[%s1806_s2 + $0x48] sm:$0xff] %vm27_vm0, %v708_v3  ;;  %v865_v13 = vsel %vm859_vm2, %v864_v25, %v1514_v24 }
 0x19d   :  { %725 = vst.msk [vmem:[%s1806_s2 + $0x50] sm:$0xff] %vm27_vm0, %v709_v27  ;;  %726 = vst.msk [vmem:[%s1806_s2 + $0x58] sm:$0xff] %vm27_vm0, %v710_v23  ;;  %v714_v22 = vmul.f32 %v1464_v16, %v865_v13 }
 0x19e   :  { %727 = vst.msk [vmem:[%s1806_s2 + $0x60] sm:$0xff] %vm27_vm0, %v711_v8  ;;  %728 = vst.msk [vmem:[%s1806_s2 + $0x68] sm:$0xff] %vm27_vm0, %v712_v20 }
 0x19f   :  { %729 = vst.msk [vmem:[%s1806_s2 + $0x70] sm:$0xff] %vm27_vm0, %v713_v31  ;;  %730 = vst.msk [vmem:[%s1806_s2 + $0x78] sm:$0xff] %vm27_vm0, %v714_v22 }

</bundles_post_ra>
